<compile_context>
chip_gen: v7x
topology: tpu7x:2x2x1
jax: 0.10.0
libtpu: 0.0.40
codegen_flags: <defaults>
</compile_context>

<pallas_src>
import functools

import jax
import jax.numpy as jnp
from jax import lax
from jax.experimental import pallas as pl
from jax.experimental.pallas import tpu as pltpu


_HALO = 128    # lane halo between image interiors; only needs >= W+1, 128 keeps
               # every interior start vreg-aligned (interior stride = HW + _HALO)
_NB_MAX = 4    # images per grid step. Sweep 8-64 on v5e/v6e (128 MiB VMEM),
               # keep <= ~32 on v7x (32 MiB scoped VMEM); 4 keeps the demo grid
               # even (>= 2 steps at B=8) so both v7x TensorCores are used.


def patch_cnn_kernel(x_ref, mask_ref, w1_ref, b1_ref, w2_ref, b2_ref,
                     w3_ref, b3_ref, y_ref, xpad_scr, slab_scr, *, W, NB):
    cin_p = x_ref.shape[1]
    HW = x_ref.shape[2]
    hidden = w1_ref.shape[0]
    P = _HALO
    stride = HW + P                                  # per-image stride in xpad

    masks = mask_ref[...]                            # (9, HW) bf16 {0,1}

    # Zero the NB+1 shared halo strips (interiors are fully overwritten below).
    # Kept per-step on purpose: on v7x megacore each core has its own scratch,
    # so gating this on program_id==0 would leave the second core's halos stale.
    zero_halo = jnp.zeros((xpad_scr.shape[0], P), xpad_scr.dtype)
    for n in range(NB + 1):
        xpad_scr[:, n * stride:n * stride + P] = zero_halo

    offs = [dy * W + dx for dy in (-1, 0, 1) for dx in (-1, 0, 1)]
    needs_mask = [dx != 0 for dy in (-1, 0, 1) for dx in (-1, 0, 1)]

    def build_slab(n_ch, taps):
        # im2col rows for the given taps, all NB images side-by-side (lane-dense).
        for t in taps:
            s = offs[t]
            for n in range(NB):
                base = n * stride + P
                tap = xpad_scr[0:n_ch, base + s:base + s + HW]
                if needs_mask[t]:
                    # bf16 mul; on v5e Mosaic lowers this via f32 VALU automatically.
                    tap = tap * masks[t:t + 1, :]
                slab_scr[t * n_ch:(t + 1) * n_ch, n * HW:(n + 1) * HW] = tap

    def conv3x3(n_ch, w_ref, b_col, tap_chunks):
        # One deep MXU contraction per K-chunk, f32 accumulation across chunks.
        acc = None
        for taps in tap_chunks:
            build_slab(n_ch, taps)
            k0 = taps[0] * n_ch
            k1 = (taps[-1] + 1) * n_ch
            part = jnp.dot(w_ref[:, k0:k1], slab_scr[k0:k1, :],
                           preferred_element_type=jnp.float32)
            acc = part if acc is None else acc + part
        return acc + b_col

    # ---- conv1 (3x3, pad=1) + ReLU : (hidden, 9*cin_p) @ (9*cin_p, NB*HW) ----
    for n in range(NB):
        base = n * stride + P
        xpad_scr[0:cin_p, base:base + HW] = x_ref[n, :, :]
    h1 = jnp.maximum(conv3x3(cin_p, w1_ref, b1_ref[...], [list(range(9))]), 0.0)

    # ---- conv2 (3x3, pad=1) + ReLU : two lane-aligned K chunks (128 + 160) ----
    h1b = h1.astype(xpad_scr.dtype)
    for n in range(NB):
        base = n * stride + P
        xpad_scr[0:hidden, base:base + HW] = h1b[:, n * HW:(n + 1) * HW]
    h2 = jnp.maximum(
        conv3x3(hidden, w2_ref, b2_ref[...], [[0, 1, 2, 3], [4, 5, 6, 7, 8]]), 0.0)

    # ---- conv3 (1x1) == channel matmul; lane-dense (cout, NB*HW) result -------
    y = jnp.dot(w3_ref[...], h2.astype(w3_ref.dtype),
                preferred_element_type=jnp.float32) + b3_ref[...]
    for n in range(NB):
        y_ref[n, :, :] = y[:, n * HW:(n + 1) * HW].astype(y_ref.dtype)


@jax.jit
def patch_cnn_forward(x_nchw, params):
    """x_nchw: (B, C, H, W) float32 (PyTorch layout).  Returns (B, C, H, W) f32."""
    w1, b1, w2, b2, w3, b3 = params
    B, C, H, W = x_nchw.shape
    hidden = w1.shape[-1]
    cout = w3.shape[-1]
    HW = H * W
    cin_p = ((C + 7) // 8) * 8            # sublane-align input channels (10 -> 16)
    rows = max(cin_p, hidden)

    NB = min(B, _NB_MAX)                  # images per grid step (batch blocking)
    B_pad = ((B + NB - 1) // NB) * NB

    # (B, C, H, W) -> (B_pad, cin_p, H*W) bf16: contiguous reshape, tiny zero pads.
    x_flat = x_nchw.reshape(B, C, HW).astype(jnp.bfloat16)
    x_flat = jnp.pad(x_flat, ((0, B_pad - B), (0, cin_p - C), (0, 0)))

    # im2col weights (bf16, tap-major K): w[o, t*Cin + i] = w_hwio[dy+1, dx+1, i, o]
    w1p = jnp.pad(w1, ((0, 0), (0, 0), (0, cin_p - C), (0, 0)))
    w1m = jnp.transpose(w1p, (3, 0, 1, 2)).reshape(hidden, 9 * cin_p).astype(jnp.bfloat16)
    w2m = jnp.transpose(w2, (3, 0, 1, 2)).reshape(hidden, 9 * hidden).astype(jnp.bfloat16)
    w3m = jnp.transpose(w3, (1, 0)).astype(jnp.bfloat16)       # (cout, hidden)
    b1c = b1.reshape(hidden, 1).astype(jnp.float32)
    b2c = b2.reshape(hidden, 1).astype(jnp.float32)
    b3c = b3.reshape(cout, 1).astype(jnp.float32)

    # {0,1} in-bounds mask per 3x3 tap over the flat H*W axis (constant-folded).
    yy = jnp.arange(H, dtype=jnp.int32).reshape(H, 1)
    xx = jnp.arange(W, dtype=jnp.int32).reshape(1, W)
    tap_masks = []
    for dy in (-1, 0, 1):
        for dx in (-1, 0, 1):
            ok = (yy + dy >= 0) & (yy + dy < H) & (xx + dx >= 0) & (xx + dx < W)
            tap_masks.append(ok.reshape(HW))
    masks = jnp.stack(tap_masks, axis=0).astype(jnp.bfloat16)  # (9, HW)

    cspec = lambda shape: pl.BlockSpec(shape, lambda b: (0, 0))
    out = pl.pallas_call(
        functools.partial(patch_cnn_kernel, W=W, NB=NB),
        out_shape=jax.ShapeDtypeStruct((B_pad, cout, HW), jnp.float32),
        grid=(B_pad // NB,),
        in_specs=[
            pl.BlockSpec((NB, cin_p, HW), lambda b: (b, 0, 0)),  # NB images / step
            cspec((9, HW)),                                      # tap masks
            cspec((hidden, 9 * cin_p)),                          # conv1 im2col weights
            cspec((hidden, 1)),
            cspec((hidden, 9 * hidden)),                         # conv2 im2col weights
            cspec((hidden, 1)),
            cspec((cout, hidden)),                               # conv3 (1x1) weights
            cspec((cout, 1)),
        ],
        out_specs=pl.BlockSpec((NB, cout, HW), lambda b: (b, 0, 0)),
        scratch_shapes=[
            pltpu.VMEM((rows, NB * (HW + _HALO) + _HALO), jnp.bfloat16),  # flat halo'd activations
            pltpu.VMEM((9 * rows, NB * HW), jnp.bfloat16),                # im2col slab
        ],
        compiler_params=pltpu.CompilerParams(
            dimension_semantics=("parallel",)),                  # pipeline + v7x megacore
    )(x_flat, masks, w1m, b1c, w2m, b2c, w3m, b3c)

    # TODO(synk): for large H*W, additionally tile the spatial axis on the grid
    # (with a 1-row halo in the index_map) so one block never exceeds VMEM.
    return out[:B].reshape(B, cout, H, W)


def init_params(key, num_colors=10, hidden=32):
    """Deterministic init (kaiming-like scaling); HWIO conv weights."""
    k1, k2, k3, k4, k5, k6 = jax.random.split(key, 6)

    def conv_w(k, kh, kw, cin, cout):
        scale = 1.0 / jnp.sqrt(kh * kw * cin)
        return jax.random.normal(k, (kh, kw, cin, cout), jnp.float32) * scale

    w1 = conv_w(k1, 3, 3, num_colors, hidden)            # (3,3,Cin,32)  HWIO
    b1 = jax.random.normal(k2, (1, hidden), jnp.float32) * 0.01
    w2 = conv_w(k3, 3, 3, hidden, hidden)                # (3,3,32,32)
    b2 = jax.random.normal(k4, (1, hidden), jnp.float32) * 0.01
    w3 = conv_w(k5, 1, 1, hidden, num_colors)[0, 0]      # (hidden, num_colors) for the 1x1 conv
    b3 = jax.random.normal(k6, (1, num_colors), jnp.float32) * 0.01
    return (w1, b1, w2, b2, w3, b3)


def ref_forward(x_nchw, params, match_kernel_precision=False):
    """Pure-JAX reference of the PyTorch module (NHWC convs).

    match_kernel_precision=True rounds every operand to bf16 (f32 accumulation)
    exactly like the kernel's mixed precision, isolating layout/indexing bugs
    with a tight tolerance."""
    w1, b1, w2, b2, w3, b3 = params
    if match_kernel_precision:
        cast = lambda a: a.astype(jnp.bfloat16).astype(jnp.float32)
    else:
        cast = lambda a: a
    dn = ('NHWC', 'HWIO', 'NHWC')
    hp = lax.Precision.HIGHEST
    x = jnp.transpose(x_nchw, (0, 2, 3, 1))
    h = lax.conv_general_dilated(cast(x), cast(w1), (1, 1), 'SAME',
                                 dimension_numbers=dn, precision=hp)
    h = jnp.maximum(h + b1.reshape(1, 1, 1, -1), 0.0)
    h = lax.conv_general_dilated(cast(h), cast(w2), (1, 1), 'SAME',
                                 dimension_numbers=dn, precision=hp)
    h = jnp.maximum(h + b2.reshape(1, 1, 1, -1), 0.0)
    h = jnp.einsum('bhwc,co->bhwo', cast(h), cast(w3), precision=hp) \
        + b3.reshape(1, 1, 1, -1)
    return jnp.transpose(h, (0, 3, 1, 2))


if __name__ == "__main__":
    key = jax.random.PRNGKey(0)
    k_x, k_p = jax.random.split(key)

    num_colors = 10
    B, H, W = 8, 16, 16                    # small; grid = (2,) at NB=4
    x = jax.random.normal(k_x, (B, num_colors, H, W), jnp.float32)  # NCHW like PyTorch
    params = init_params(k_p, num_colors=num_colors, hidden=32)

    y = jax.block_until_ready(patch_cnn_forward(x, params))
    assert y.shape == (B, num_colors, H, W)

    # Tight check vs a bf16-operand-matched reference (catches layout/index bugs).
    y_match = ref_forward(x, params, match_kernel_precision=True)
    err_m = float(jnp.max(jnp.abs(y - y_match)))
    assert jnp.allclose(y, y_match, atol=2e-3, rtol=2e-3), err_m

    # Loose sanity check vs the pure-f32 reference (bf16 operand rounding only).
    y_f32 = ref_forward(x, params, match_kernel_precision=False)
    err_f = float(jnp.max(jnp.abs(y - y_f32)))
    assert jnp.allclose(y, y_f32, atol=1e-1, rtol=1e-1), err_f

    print("KERNEL_OK")
</pallas_src>

<mosaic_0001>
module attributes {stable_mosaic.version = 11 : i64} {
  func.func @patch_cnn_kernel(%arg0: i32, %arg1: memref<4x16x256xbf16, #tpu.memory_space<vmem>>, %arg2: memref<9x256xbf16, #tpu.memory_space<vmem>>, %arg3: memref<32x144xbf16, #tpu.memory_space<vmem>>, %arg4: memref<32x1xf32, #tpu.memory_space<vmem>>, %arg5: memref<32x288xbf16, #tpu.memory_space<vmem>>, %arg6: memref<32x1xf32, #tpu.memory_space<vmem>>, %arg7: memref<10x32xbf16, #tpu.memory_space<vmem>>, %arg8: memref<10x1xf32, #tpu.memory_space<vmem>>, %arg9: memref<4x10x256xf32, #tpu.memory_space<vmem>>, %arg10: memref<32x1664xbf16, #tpu.memory_space<vmem>>, %arg11: memref<288x1024xbf16, #tpu.memory_space<vmem>>) attributes {dimension_semantics = [#tpu.dimension_semantics<parallel>], iteration_bounds = array<i64: 2>, scalar_prefetch = 0 : i64, scratch_operands = 2 : i64, tpu.core_type = #tpu.core_type<tc>, window_params = [{transform_indices = @transform_0, window_bounds = array<i64: 4, 16, 256>}, {pipeline_mode = #tpu.pipeline_mode<synchronous>, transform_indices = @transform_1, window_bounds = array<i64: 9, 256>}, {pipeline_mode = #tpu.pipeline_mode<synchronous>, transform_indices = @transform_2, window_bounds = array<i64: 32, 144>}, {pipeline_mode = #tpu.pipeline_mode<synchronous>, transform_indices = @transform_3, window_bounds = array<i64: 32, 1>}, {pipeline_mode = #tpu.pipeline_mode<synchronous>, transform_indices = @transform_4, window_bounds = array<i64: 32, 288>}, {pipeline_mode = #tpu.pipeline_mode<synchronous>, transform_indices = @transform_5, window_bounds = array<i64: 32, 1>}, {pipeline_mode = #tpu.pipeline_mode<synchronous>, transform_indices = @transform_6, window_bounds = array<i64: 10, 32>}, {pipeline_mode = #tpu.pipeline_mode<synchronous>, transform_indices = @transform_7, window_bounds = array<i64: 10, 1>}, {transform_indices = @transform_8, window_bounds = array<i64: 4, 10, 256>}]} {
    %c0 = arith.constant 0 : index
    %c0_0 = arith.constant 0 : index
    %0 = vector.load %arg2[%c0, %c0_0] : memref<9x256xbf16, #tpu.memory_space<vmem>>, vector<9x256xbf16>
    %cst = arith.constant 0.000000e+00 : bf16
    %1 = vector.broadcast %cst : bf16 to vector<32x128xbf16>
    %c0_1 = arith.constant 0 : index
    %c0_2 = arith.constant 0 : index
    %2 = vector.load %arg10[%c0_1, %c0_2] : memref<32x1664xbf16, #tpu.memory_space<vmem>>, vector<32x128xbf16>
    tpu.vector_store %arg10[%c0_1, %c0_2], %1 {strides = array<i32>} : memref<32x1664xbf16, #tpu.memory_space<vmem>>, vector<32x128xbf16>,
    %c0_3 = arith.constant 0 : index
    %c384 = arith.constant 384 : index
    %3 = vector.load %arg10[%c0_3, %c384] : memref<32x1664xbf16, #tpu.memory_space<vmem>>, vector<32x128xbf16>
    tpu.vector_store %arg10[%c0_3, %c384], %1 {strides = array<i32>} : memref<32x1664xbf16, #tpu.memory_space<vmem>>, vector<32x128xbf16>,
    %c0_4 = arith.constant 0 : index
    %c768 = arith.constant 768 : index
    %4 = vector.load %arg10[%c0_4, %c768] : memref<32x1664xbf16, #tpu.memory_space<vmem>>, vector<32x128xbf16>
    tpu.vector_store %arg10[%c0_4, %c768], %1 {strides = array<i32>} : memref<32x1664xbf16, #tpu.memory_space<vmem>>, vector<32x128xbf16>,
    %c0_5 = arith.constant 0 : index
    %c1152 = arith.constant 1152 : index
    %5 = vector.load %arg10[%c0_5, %c1152] : memref<32x1664xbf16, #tpu.memory_space<vmem>>, vector<32x128xbf16>
    tpu.vector_store %arg10[%c0_5, %c1152], %1 {strides = array<i32>} : memref<32x1664xbf16, #tpu.memory_space<vmem>>, vector<32x128xbf16>,
    %c0_6 = arith.constant 0 : index
    %c1536 = arith.constant 1536 : index
    %6 = vector.load %arg10[%c0_6, %c1536] : memref<32x1664xbf16, #tpu.memory_space<vmem>>, vector<32x128xbf16>
    tpu.vector_store %arg10[%c0_6, %c1536], %1 {strides = array<i32>} : memref<32x1664xbf16, #tpu.memory_space<vmem>>, vector<32x128xbf16>,
    %c0_7 = arith.constant 0 : index
    %c0_8 = arith.constant 0 : index
    %c0_9 = arith.constant 0 : index
    %7 = vector.load %arg1[%c0_7, %c0_8, %c0_9] : memref<4x16x256xbf16, #tpu.memory_space<vmem>>, vector<1x16x256xbf16>
    %8 = vector.shape_cast %7 : vector<1x16x256xbf16> to vector<16x256xbf16>
    %c0_10 = arith.constant 0 : index
    %c128 = arith.constant 128 : index
    %9 = vector.load %arg10[%c0_10, %c128] : memref<32x1664xbf16, #tpu.memory_space<vmem>>, vector<16x256xbf16>
    tpu.vector_store %arg10[%c0_10, %c128], %8 {strides = array<i32>} : memref<32x1664xbf16, #tpu.memory_space<vmem>>, vector<16x256xbf16>,
    %c1 = arith.constant 1 : index
    %c0_11 = arith.constant 0 : index
    %c0_12 = arith.constant 0 : index
    %10 = vector.load %arg1[%c1, %c0_11, %c0_12] : memref<4x16x256xbf16, #tpu.memory_space<vmem>>, vector<1x16x256xbf16>
    %11 = vector.shape_cast %10 : vector<1x16x256xbf16> to vector<16x256xbf16>
    %c0_13 = arith.constant 0 : index
    %c512 = arith.constant 512 : index
    %12 = vector.load %arg10[%c0_13, %c512] : memref<32x1664xbf16, #tpu.memory_space<vmem>>, vector<16x256xbf16>
    tpu.vector_store %arg10[%c0_13, %c512], %11 {strides = array<i32>} : memref<32x1664xbf16, #tpu.memory_space<vmem>>, vector<16x256xbf16>,
    %c2 = arith.constant 2 : index
    %c0_14 = arith.constant 0 : index
    %c0_15 = arith.constant 0 : index
    %13 = vector.load %arg1[%c2, %c0_14, %c0_15] : memref<4x16x256xbf16, #tpu.memory_space<vmem>>, vector<1x16x256xbf16>
    %14 = vector.shape_cast %13 : vector<1x16x256xbf16> to vector<16x256xbf16>
    %c0_16 = arith.constant 0 : index
    %c896 = arith.constant 896 : index
    %15 = vector.load %arg10[%c0_16, %c896] : memref<32x1664xbf16, #tpu.memory_space<vmem>>, vector<16x256xbf16>
    tpu.vector_store %arg10[%c0_16, %c896], %14 {strides = array<i32>} : memref<32x1664xbf16, #tpu.memory_space<vmem>>, vector<16x256xbf16>,
    %c3 = arith.constant 3 : index
    %c0_17 = arith.constant 0 : index
    %c0_18 = arith.constant 0 : index
    %16 = vector.load %arg1[%c3, %c0_17, %c0_18] : memref<4x16x256xbf16, #tpu.memory_space<vmem>>, vector<1x16x256xbf16>
    %17 = vector.shape_cast %16 : vector<1x16x256xbf16> to vector<16x256xbf16>
    %c0_19 = arith.constant 0 : index
    %c1280 = arith.constant 1280 : index
    %18 = vector.load %arg10[%c0_19, %c1280] : memref<32x1664xbf16, #tpu.memory_space<vmem>>, vector<16x256xbf16>
    tpu.vector_store %arg10[%c0_19, %c1280], %17 {strides = array<i32>} : memref<32x1664xbf16, #tpu.memory_space<vmem>>, vector<16x256xbf16>,
    %c0_20 = arith.constant 0 : index
    %c0_21 = arith.constant 0 : index
    %19 = vector.load %arg4[%c0_20, %c0_21] : memref<32x1xf32, #tpu.memory_space<vmem>>, vector<32x1xf32>
    %c0_22 = arith.constant 0 : index
    %c111 = arith.constant 111 : index
    %20 = vector.load %arg10[%c0_22, %c111] : memref<32x1664xbf16, #tpu.memory_space<vmem>>, vector<16x256xbf16>
    %21 = vector.extract_strided_slice %0 {offsets = [0, 0], sizes = [1, 256], strides = [1, 1]} : vector<9x256xbf16> to vector<1x256xbf16>
    %22 = vector.broadcast %21 : vector<1x256xbf16> to vector<16x256xbf16>
    %23 = arith.mulf %20, %22 : vector<16x256xbf16>
    %c0_23 = arith.constant 0 : index
    %c0_24 = arith.constant 0 : index
    %24 = vector.load %arg11[%c0_23, %c0_24] : memref<288x1024xbf16, #tpu.memory_space<vmem>>, vector<16x256xbf16>
    tpu.vector_store %arg11[%c0_23, %c0_24], %23 {strides = array<i32>} : memref<288x1024xbf16, #tpu.memory_space<vmem>>, vector<16x256xbf16>,
    %c0_25 = arith.constant 0 : index
    %c495 = arith.constant 495 : index
    %25 = vector.load %arg10[%c0_25, %c495] : memref<32x1664xbf16, #tpu.memory_space<vmem>>, vector<16x256xbf16>
    %26 = vector.extract_strided_slice %0 {offsets = [0, 0], sizes = [1, 256], strides = [1, 1]} : vector<9x256xbf16> to vector<1x256xbf16>
    %27 = vector.broadcast %26 : vector<1x256xbf16> to vector<16x256xbf16>
    %28 = arith.mulf %25, %27 : vector<16x256xbf16>
    %c0_26 = arith.constant 0 : index
    %c256 = arith.constant 256 : index
    %29 = vector.load %arg11[%c0_26, %c256] : memref<288x1024xbf16, #tpu.memory_space<vmem>>, vector<16x256xbf16>
    tpu.vector_store %arg11[%c0_26, %c256], %28 {strides = array<i32>} : memref<288x1024xbf16, #tpu.memory_space<vmem>>, vector<16x256xbf16>,
    %c0_27 = arith.constant 0 : index
    %c879 = arith.constant 879 : index
    %30 = vector.load %arg10[%c0_27, %c879] : memref<32x1664xbf16, #tpu.memory_space<vmem>>, vector<16x256xbf16>
    %31 = vector.extract_strided_slice %0 {offsets = [0, 0], sizes = [1, 256], strides = [1, 1]} : vector<9x256xbf16> to vector<1x256xbf16>
    %32 = vector.broadcast %31 : vector<1x256xbf16> to vector<16x256xbf16>
    %33 = arith.mulf %30, %32 : vector<16x256xbf16>
    %c0_28 = arith.constant 0 : index
    %c512_29 = arith.constant 512 : index
    %34 = vector.load %arg11[%c0_28, %c512_29] : memref<288x1024xbf16, #tpu.memory_space<vmem>>, vector<16x256xbf16>
    tpu.vector_store %arg11[%c0_28, %c512_29], %33 {strides = array<i32>} : memref<288x1024xbf16, #tpu.memory_space<vmem>>, vector<16x256xbf16>,
    %c0_30 = arith.constant 0 : index
    %c1263 = arith.constant 1263 : index
    %35 = vector.load %arg10[%c0_30, %c1263] : memref<32x1664xbf16, #tpu.memory_space<vmem>>, vector<16x256xbf16>
    %36 = vector.extract_strided_slice %0 {offsets = [0, 0], sizes = [1, 256], strides = [1, 1]} : vector<9x256xbf16> to vector<1x256xbf16>
    %37 = vector.broadcast %36 : vector<1x256xbf16> to vector<16x256xbf16>
    %38 = arith.mulf %35, %37 : vector<16x256xbf16>
    %c0_31 = arith.constant 0 : index
    %c768_32 = arith.constant 768 : index
    %39 = vector.load %arg11[%c0_31, %c768_32] : memref<288x1024xbf16, #tpu.memory_space<vmem>>, vector<16x256xbf16>
    tpu.vector_store %arg11[%c0_31, %c768_32], %38 {strides = array<i32>} : memref<288x1024xbf16, #tpu.memory_space<vmem>>, vector<16x256xbf16>,
    %c0_33 = arith.constant 0 : index
    %c112 = arith.constant 112 : index
    %40 = vector.load %arg10[%c0_33, %c112] : memref<32x1664xbf16, #tpu.memory_space<vmem>>, vector<16x256xbf16>
    %c16 = arith.constant 16 : index
    %c0_34 = arith.constant 0 : index
    %41 = vector.load %arg11[%c16, %c0_34] : memref<288x1024xbf16, #tpu.memory_space<vmem>>, vector<16x256xbf16>
    tpu.vector_store %arg11[%c16, %c0_34], %40 {strides = array<i32>} : memref<288x1024xbf16, #tpu.memory_space<vmem>>, vector<16x256xbf16>,
    %c0_35 = arith.constant 0 : index
    %c496 = arith.constant 496 : index
    %42 = vector.load %arg10[%c0_35, %c496] : memref<32x1664xbf16, #tpu.memory_space<vmem>>, vector<16x256xbf16>
    %c16_36 = arith.constant 16 : index
    %c256_37 = arith.constant 256 : index
    %43 = vector.load %arg11[%c16_36, %c256_37] : memref<288x1024xbf16, #tpu.memory_space<vmem>>, vector<16x256xbf16>
    tpu.vector_store %arg11[%c16_36, %c256_37], %42 {strides = array<i32>} : memref<288x1024xbf16, #tpu.memory_space<vmem>>, vector<16x256xbf16>,
    %c0_38 = arith.constant 0 : index
    %c880 = arith.constant 880 : index
    %44 = vector.load %arg10[%c0_38, %c880] : memref<32x1664xbf16, #tpu.memory_space<vmem>>, vector<16x256xbf16>
    %c16_39 = arith.constant 16 : index
    %c512_40 = arith.constant 512 : index
    %45 = vector.load %arg11[%c16_39, %c512_40] : memref<288x1024xbf16, #tpu.memory_space<vmem>>, vector<16x256xbf16>
    tpu.vector_store %arg11[%c16_39, %c512_40], %44 {strides = array<i32>} : memref<288x1024xbf16, #tpu.memory_space<vmem>>, vector<16x256xbf16>,
    %c0_41 = arith.constant 0 : index
    %c1264 = arith.constant 1264 : index
    %46 = vector.load %arg10[%c0_41, %c1264] : memref<32x1664xbf16, #tpu.memory_space<vmem>>, vector<16x256xbf16>
    %c16_42 = arith.constant 16 : index
    %c768_43 = arith.constant 768 : index
    %47 = vector.load %arg11[%c16_42, %c768_43] : memref<288x1024xbf16, #tpu.memory_space<vmem>>, vector<16x256xbf16>
    tpu.vector_store %arg11[%c16_42, %c768_43], %46 {strides = array<i32>} : memref<288x1024xbf16, #tpu.memory_space<vmem>>, vector<16x256xbf16>,
    %c0_44 = arith.constant 0 : index
    %c113 = arith.constant 113 : index
    %48 = vector.load %arg10[%c0_44, %c113] : memref<32x1664xbf16, #tpu.memory_space<vmem>>, vector<16x256xbf16>
    %49 = vector.extract_strided_slice %0 {offsets = [2, 0], sizes = [1, 256], strides = [1, 1]} : vector<9x256xbf16> to vector<1x256xbf16>
    %50 = vector.broadcast %49 : vector<1x256xbf16> to vector<16x256xbf16>
    %51 = arith.mulf %48, %50 : vector<16x256xbf16>
    %c32 = arith.constant 32 : index
    %c0_45 = arith.constant 0 : index
    %52 = vector.load %arg11[%c32, %c0_45] : memref<288x1024xbf16, #tpu.memory_space<vmem>>, vector<16x256xbf16>
    tpu.vector_store %arg11[%c32, %c0_45], %51 {strides = array<i32>} : memref<288x1024xbf16, #tpu.memory_space<vmem>>, vector<16x256xbf16>,
    %c0_46 = arith.constant 0 : index
    %c497 = arith.constant 497 : index
    %53 = vector.load %arg10[%c0_46, %c497] : memref<32x1664xbf16, #tpu.memory_space<vmem>>, vector<16x256xbf16>
    %54 = vector.extract_strided_slice %0 {offsets = [2, 0], sizes = [1, 256], strides = [1, 1]} : vector<9x256xbf16> to vector<1x256xbf16>
    %55 = vector.broadcast %54 : vector<1x256xbf16> to vector<16x256xbf16>
    %56 = arith.mulf %53, %55 : vector<16x256xbf16>
    %c32_47 = arith.constant 32 : index
    %c256_48 = arith.constant 256 : index
    %57 = vector.load %arg11[%c32_47, %c256_48] : memref<288x1024xbf16, #tpu.memory_space<vmem>>, vector<16x256xbf16>
    tpu.vector_store %arg11[%c32_47, %c256_48], %56 {strides = array<i32>} : memref<288x1024xbf16, #tpu.memory_space<vmem>>, vector<16x256xbf16>,
    %c0_49 = arith.constant 0 : index
    %c881 = arith.constant 881 : index
    %58 = vector.load %arg10[%c0_49, %c881] : memref<32x1664xbf16, #tpu.memory_space<vmem>>, vector<16x256xbf16>
    %59 = vector.extract_strided_slice %0 {offsets = [2, 0], sizes = [1, 256], strides = [1, 1]} : vector<9x256xbf16> to vector<1x256xbf16>
    %60 = vector.broadcast %59 : vector<1x256xbf16> to vector<16x256xbf16>
    %61 = arith.mulf %58, %60 : vector<16x256xbf16>
    %c32_50 = arith.constant 32 : index
    %c512_51 = arith.constant 512 : index
    %62 = vector.load %arg11[%c32_50, %c512_51] : memref<288x1024xbf16, #tpu.memory_space<vmem>>, vector<16x256xbf16>
    tpu.vector_store %arg11[%c32_50, %c512_51], %61 {strides = array<i32>} : memref<288x1024xbf16, #tpu.memory_space<vmem>>, vector<16x256xbf16>,
    %c0_52 = arith.constant 0 : index
    %c1265 = arith.constant 1265 : index
    %63 = vector.load %arg10[%c0_52, %c1265] : memref<32x1664xbf16, #tpu.memory_space<vmem>>, vector<16x256xbf16>
    %64 = vector.extract_strided_slice %0 {offsets = [2, 0], sizes = [1, 256], strides = [1, 1]} : vector<9x256xbf16> to vector<1x256xbf16>
    %65 = vector.broadcast %64 : vector<1x256xbf16> to vector<16x256xbf16>
    %66 = arith.mulf %63, %65 : vector<16x256xbf16>
    %c32_53 = arith.constant 32 : index
    %c768_54 = arith.constant 768 : index
    %67 = vector.load %arg11[%c32_53, %c768_54] : memref<288x1024xbf16, #tpu.memory_space<vmem>>, vector<16x256xbf16>
    tpu.vector_store %arg11[%c32_53, %c768_54], %66 {strides = array<i32>} : memref<288x1024xbf16, #tpu.memory_space<vmem>>, vector<16x256xbf16>,
    %c0_55 = arith.constant 0 : index
    %c127 = arith.constant 127 : index
    %68 = vector.load %arg10[%c0_55, %c127] : memref<32x1664xbf16, #tpu.memory_space<vmem>>, vector<16x256xbf16>
    %69 = vector.extract_strided_slice %0 {offsets = [3, 0], sizes = [1, 256], strides = [1, 1]} : vector<9x256xbf16> to vector<1x256xbf16>
    %70 = vector.broadcast %69 : vector<1x256xbf16> to vector<16x256xbf16>
    %71 = arith.mulf %68, %70 : vector<16x256xbf16>
    %c48 = arith.constant 48 : index
    %c0_56 = arith.constant 0 : index
    %72 = vector.load %arg11[%c48, %c0_56] : memref<288x1024xbf16, #tpu.memory_space<vmem>>, vector<16x256xbf16>
    tpu.vector_store %arg11[%c48, %c0_56], %71 {strides = array<i32>} : memref<288x1024xbf16, #tpu.memory_space<vmem>>, vector<16x256xbf16>,
    %c0_57 = arith.constant 0 : index
    %c511 = arith.constant 511 : index
    %73 = vector.load %arg10[%c0_57, %c511] : memref<32x1664xbf16, #tpu.memory_space<vmem>>, vector<16x256xbf16>
    %74 = vector.extract_strided_slice %0 {offsets = [3, 0], sizes = [1, 256], strides = [1, 1]} : vector<9x256xbf16> to vector<1x256xbf16>
    %75 = vector.broadcast %74 : vector<1x256xbf16> to vector<16x256xbf16>
    %76 = arith.mulf %73, %75 : vector<16x256xbf16>
    %c48_58 = arith.constant 48 : index
    %c256_59 = arith.constant 256 : index
    %77 = vector.load %arg11[%c48_58, %c256_59] : memref<288x1024xbf16, #tpu.memory_space<vmem>>, vector<16x256xbf16>
    tpu.vector_store %arg11[%c48_58, %c256_59], %76 {strides = array<i32>} : memref<288x1024xbf16, #tpu.memory_space<vmem>>, vector<16x256xbf16>,
    %c0_60 = arith.constant 0 : index
    %c895 = arith.constant 895 : index
    %78 = vector.load %arg10[%c0_60, %c895] : memref<32x1664xbf16, #tpu.memory_space<vmem>>, vector<16x256xbf16>
    %79 = vector.extract_strided_slice %0 {offsets = [3, 0], sizes = [1, 256], strides = [1, 1]} : vector<9x256xbf16> to vector<1x256xbf16>
    %80 = vector.broadcast %79 : vector<1x256xbf16> to vector<16x256xbf16>
    %81 = arith.mulf %78, %80 : vector<16x256xbf16>
    %c48_61 = arith.constant 48 : index
    %c512_62 = arith.constant 512 : index
    %82 = vector.load %arg11[%c48_61, %c512_62] : memref<288x1024xbf16, #tpu.memory_space<vmem>>, vector<16x256xbf16>
    tpu.vector_store %arg11[%c48_61, %c512_62], %81 {strides = array<i32>} : memref<288x1024xbf16, #tpu.memory_space<vmem>>, vector<16x256xbf16>,
    %c0_63 = arith.constant 0 : index
    %c1279 = arith.constant 1279 : index
    %83 = vector.load %arg10[%c0_63, %c1279] : memref<32x1664xbf16, #tpu.memory_space<vmem>>, vector<16x256xbf16>
    %84 = vector.extract_strided_slice %0 {offsets = [3, 0], sizes = [1, 256], strides = [1, 1]} : vector<9x256xbf16> to vector<1x256xbf16>
    %85 = vector.broadcast %84 : vector<1x256xbf16> to vector<16x256xbf16>
    %86 = arith.mulf %83, %85 : vector<16x256xbf16>
    %c48_64 = arith.constant 48 : index
    %c768_65 = arith.constant 768 : index
    %87 = vector.load %arg11[%c48_64, %c768_65] : memref<288x1024xbf16, #tpu.memory_space<vmem>>, vector<16x256xbf16>
    tpu.vector_store %arg11[%c48_64, %c768_65], %86 {strides = array<i32>} : memref<288x1024xbf16, #tpu.memory_space<vmem>>, vector<16x256xbf16>,
    %c0_66 = arith.constant 0 : index
    %c128_67 = arith.constant 128 : index
    %88 = vector.load %arg10[%c0_66, %c128_67] : memref<32x1664xbf16, #tpu.memory_space<vmem>>, vector<16x256xbf16>
    %c64 = arith.constant 64 : index
    %c0_68 = arith.constant 0 : index
    %89 = vector.load %arg11[%c64, %c0_68] : memref<288x1024xbf16, #tpu.memory_space<vmem>>, vector<16x256xbf16>
    tpu.vector_store %arg11[%c64, %c0_68], %88 {strides = array<i32>} : memref<288x1024xbf16, #tpu.memory_space<vmem>>, vector<16x256xbf16>,
    %c0_69 = arith.constant 0 : index
    %c512_70 = arith.constant 512 : index
    %90 = vector.load %arg10[%c0_69, %c512_70] : memref<32x1664xbf16, #tpu.memory_space<vmem>>, vector<16x256xbf16>
    %c64_71 = arith.constant 64 : index
    %c256_72 = arith.constant 256 : index
    %91 = vector.load %arg11[%c64_71, %c256_72] : memref<288x1024xbf16, #tpu.memory_space<vmem>>, vector<16x256xbf16>
    tpu.vector_store %arg11[%c64_71, %c256_72], %90 {strides = array<i32>} : memref<288x1024xbf16, #tpu.memory_space<vmem>>, vector<16x256xbf16>,
    %c0_73 = arith.constant 0 : index
    %c896_74 = arith.constant 896 : index
    %92 = vector.load %arg10[%c0_73, %c896_74] : memref<32x1664xbf16, #tpu.memory_space<vmem>>, vector<16x256xbf16>
    %c64_75 = arith.constant 64 : index
    %c512_76 = arith.constant 512 : index
    %93 = vector.load %arg11[%c64_75, %c512_76] : memref<288x1024xbf16, #tpu.memory_space<vmem>>, vector<16x256xbf16>
    tpu.vector_store %arg11[%c64_75, %c512_76], %92 {strides = array<i32>} : memref<288x1024xbf16, #tpu.memory_space<vmem>>, vector<16x256xbf16>,
    %c0_77 = arith.constant 0 : index
    %c1280_78 = arith.constant 1280 : index
    %94 = vector.load %arg10[%c0_77, %c1280_78] : memref<32x1664xbf16, #tpu.memory_space<vmem>>, vector<16x256xbf16>
    %c64_79 = arith.constant 64 : index
    %c768_80 = arith.constant 768 : index
    %95 = vector.load %arg11[%c64_79, %c768_80] : memref<288x1024xbf16, #tpu.memory_space<vmem>>, vector<16x256xbf16>
    tpu.vector_store %arg11[%c64_79, %c768_80], %94 {strides = array<i32>} : memref<288x1024xbf16, #tpu.memory_space<vmem>>, vector<16x256xbf16>,
    %c0_81 = arith.constant 0 : index
    %c129 = arith.constant 129 : index
    %96 = vector.load %arg10[%c0_81, %c129] : memref<32x1664xbf16, #tpu.memory_space<vmem>>, vector<16x256xbf16>
    %97 = vector.extract_strided_slice %0 {offsets = [5, 0], sizes = [1, 256], strides = [1, 1]} : vector<9x256xbf16> to vector<1x256xbf16>
    %98 = vector.broadcast %97 : vector<1x256xbf16> to vector<16x256xbf16>
    %99 = arith.mulf %96, %98 : vector<16x256xbf16>
    %c80 = arith.constant 80 : index
    %c0_82 = arith.constant 0 : index
    %100 = vector.load %arg11[%c80, %c0_82] : memref<288x1024xbf16, #tpu.memory_space<vmem>>, vector<16x256xbf16>
    tpu.vector_store %arg11[%c80, %c0_82], %99 {strides = array<i32>} : memref<288x1024xbf16, #tpu.memory_space<vmem>>, vector<16x256xbf16>,
    %c0_83 = arith.constant 0 : index
    %c513 = arith.constant 513 : index
    %101 = vector.load %arg10[%c0_83, %c513] : memref<32x1664xbf16, #tpu.memory_space<vmem>>, vector<16x256xbf16>
    %102 = vector.extract_strided_slice %0 {offsets = [5, 0], sizes = [1, 256], strides = [1, 1]} : vector<9x256xbf16> to vector<1x256xbf16>
    %103 = vector.broadcast %102 : vector<1x256xbf16> to vector<16x256xbf16>
    %104 = arith.mulf %101, %103 : vector<16x256xbf16>
    %c80_84 = arith.constant 80 : index
    %c256_85 = arith.constant 256 : index
    %105 = vector.load %arg11[%c80_84, %c256_85] : memref<288x1024xbf16, #tpu.memory_space<vmem>>, vector<16x256xbf16>
    tpu.vector_store %arg11[%c80_84, %c256_85], %104 {strides = array<i32>} : memref<288x1024xbf16, #tpu.memory_space<vmem>>, vector<16x256xbf16>,
    %c0_86 = arith.constant 0 : index
    %c897 = arith.constant 897 : index
    %106 = vector.load %arg10[%c0_86, %c897] : memref<32x1664xbf16, #tpu.memory_space<vmem>>, vector<16x256xbf16>
    %107 = vector.extract_strided_slice %0 {offsets = [5, 0], sizes = [1, 256], strides = [1, 1]} : vector<9x256xbf16> to vector<1x256xbf16>
    %108 = vector.broadcast %107 : vector<1x256xbf16> to vector<16x256xbf16>
    %109 = arith.mulf %106, %108 : vector<16x256xbf16>
    %c80_87 = arith.constant 80 : index
    %c512_88 = arith.constant 512 : index
    %110 = vector.load %arg11[%c80_87, %c512_88] : memref<288x1024xbf16, #tpu.memory_space<vmem>>, vector<16x256xbf16>
    tpu.vector_store %arg11[%c80_87, %c512_88], %109 {strides = array<i32>} : memref<288x1024xbf16, #tpu.memory_space<vmem>>, vector<16x256xbf16>,
    %c0_89 = arith.constant 0 : index
    %c1281 = arith.constant 1281 : index
    %111 = vector.load %arg10[%c0_89, %c1281] : memref<32x1664xbf16, #tpu.memory_space<vmem>>, vector<16x256xbf16>
    %112 = vector.extract_strided_slice %0 {offsets = [5, 0], sizes = [1, 256], strides = [1, 1]} : vector<9x256xbf16> to vector<1x256xbf16>
    %113 = vector.broadcast %112 : vector<1x256xbf16> to vector<16x256xbf16>
    %114 = arith.mulf %111, %113 : vector<16x256xbf16>
    %c80_90 = arith.constant 80 : index
    %c768_91 = arith.constant 768 : index
    %115 = vector.load %arg11[%c80_90, %c768_91] : memref<288x1024xbf16, #tpu.memory_space<vmem>>, vector<16x256xbf16>
    tpu.vector_store %arg11[%c80_90, %c768_91], %114 {strides = array<i32>} : memref<288x1024xbf16, #tpu.memory_space<vmem>>, vector<16x256xbf16>,
    %c0_92 = arith.constant 0 : index
    %c143 = arith.constant 143 : index
    %116 = vector.load %arg10[%c0_92, %c143] : memref<32x1664xbf16, #tpu.memory_space<vmem>>, vector<16x256xbf16>
    %117 = vector.extract_strided_slice %0 {offsets = [6, 0], sizes = [1, 256], strides = [1, 1]} : vector<9x256xbf16> to vector<1x256xbf16>
    %118 = vector.broadcast %117 : vector<1x256xbf16> to vector<16x256xbf16>
    %119 = arith.mulf %116, %118 : vector<16x256xbf16>
    %c96 = arith.constant 96 : index
    %c0_93 = arith.constant 0 : index
    %120 = vector.load %arg11[%c96, %c0_93] : memref<288x1024xbf16, #tpu.memory_space<vmem>>, vector<16x256xbf16>
    tpu.vector_store %arg11[%c96, %c0_93], %119 {strides = array<i32>} : memref<288x1024xbf16, #tpu.memory_space<vmem>>, vector<16x256xbf16>,
    %c0_94 = arith.constant 0 : index
    %c527 = arith.constant 527 : index
    %121 = vector.load %arg10[%c0_94, %c527] : memref<32x1664xbf16, #tpu.memory_space<vmem>>, vector<16x256xbf16>
    %122 = vector.extract_strided_slice %0 {offsets = [6, 0], sizes = [1, 256], strides = [1, 1]} : vector<9x256xbf16> to vector<1x256xbf16>
    %123 = vector.broadcast %122 : vector<1x256xbf16> to vector<16x256xbf16>
    %124 = arith.mulf %121, %123 : vector<16x256xbf16>
    %c96_95 = arith.constant 96 : index
    %c256_96 = arith.constant 256 : index
    %125 = vector.load %arg11[%c96_95, %c256_96] : memref<288x1024xbf16, #tpu.memory_space<vmem>>, vector<16x256xbf16>
    tpu.vector_store %arg11[%c96_95, %c256_96], %124 {strides = array<i32>} : memref<288x1024xbf16, #tpu.memory_space<vmem>>, vector<16x256xbf16>,
    %c0_97 = arith.constant 0 : index
    %c911 = arith.constant 911 : index
    %126 = vector.load %arg10[%c0_97, %c911] : memref<32x1664xbf16, #tpu.memory_space<vmem>>, vector<16x256xbf16>
    %127 = vector.extract_strided_slice %0 {offsets = [6, 0], sizes = [1, 256], strides = [1, 1]} : vector<9x256xbf16> to vector<1x256xbf16>
    %128 = vector.broadcast %127 : vector<1x256xbf16> to vector<16x256xbf16>
    %129 = arith.mulf %126, %128 : vector<16x256xbf16>
    %c96_98 = arith.constant 96 : index
    %c512_99 = arith.constant 512 : index
    %130 = vector.load %arg11[%c96_98, %c512_99] : memref<288x1024xbf16, #tpu.memory_space<vmem>>, vector<16x256xbf16>
    tpu.vector_store %arg11[%c96_98, %c512_99], %129 {strides = array<i32>} : memref<288x1024xbf16, #tpu.memory_space<vmem>>, vector<16x256xbf16>,
    %c0_100 = arith.constant 0 : index
    %c1295 = arith.constant 1295 : index
    %131 = vector.load %arg10[%c0_100, %c1295] : memref<32x1664xbf16, #tpu.memory_space<vmem>>, vector<16x256xbf16>
    %132 = vector.extract_strided_slice %0 {offsets = [6, 0], sizes = [1, 256], strides = [1, 1]} : vector<9x256xbf16> to vector<1x256xbf16>
    %133 = vector.broadcast %132 : vector<1x256xbf16> to vector<16x256xbf16>
    %134 = arith.mulf %131, %133 : vector<16x256xbf16>
    %c96_101 = arith.constant 96 : index
    %c768_102 = arith.constant 768 : index
    %135 = vector.load %arg11[%c96_101, %c768_102] : memref<288x1024xbf16, #tpu.memory_space<vmem>>, vector<16x256xbf16>
    tpu.vector_store %arg11[%c96_101, %c768_102], %134 {strides = array<i32>} : memref<288x1024xbf16, #tpu.memory_space<vmem>>, vector<16x256xbf16>,
    %c0_103 = arith.constant 0 : index
    %c144 = arith.constant 144 : index
    %136 = vector.load %arg10[%c0_103, %c144] : memref<32x1664xbf16, #tpu.memory_space<vmem>>, vector<16x256xbf16>
    %c112_104 = arith.constant 112 : index
    %c0_105 = arith.constant 0 : index
    %137 = vector.load %arg11[%c112_104, %c0_105] : memref<288x1024xbf16, #tpu.memory_space<vmem>>, vector<16x256xbf16>
    tpu.vector_store %arg11[%c112_104, %c0_105], %136 {strides = array<i32>} : memref<288x1024xbf16, #tpu.memory_space<vmem>>, vector<16x256xbf16>,
    %c0_106 = arith.constant 0 : index
    %c528 = arith.constant 528 : index
    %138 = vector.load %arg10[%c0_106, %c528] : memref<32x1664xbf16, #tpu.memory_space<vmem>>, vector<16x256xbf16>
    %c112_107 = arith.constant 112 : index
    %c256_108 = arith.constant 256 : index
    %139 = vector.load %arg11[%c112_107, %c256_108] : memref<288x1024xbf16, #tpu.memory_space<vmem>>, vector<16x256xbf16>
    tpu.vector_store %arg11[%c112_107, %c256_108], %138 {strides = array<i32>} : memref<288x1024xbf16, #tpu.memory_space<vmem>>, vector<16x256xbf16>,
    %c0_109 = arith.constant 0 : index
    %c912 = arith.constant 912 : index
    %140 = vector.load %arg10[%c0_109, %c912] : memref<32x1664xbf16, #tpu.memory_space<vmem>>, vector<16x256xbf16>
    %c112_110 = arith.constant 112 : index
    %c512_111 = arith.constant 512 : index
    %141 = vector.load %arg11[%c112_110, %c512_111] : memref<288x1024xbf16, #tpu.memory_space<vmem>>, vector<16x256xbf16>
    tpu.vector_store %arg11[%c112_110, %c512_111], %140 {strides = array<i32>} : memref<288x1024xbf16, #tpu.memory_space<vmem>>, vector<16x256xbf16>,
    %c0_112 = arith.constant 0 : index
    %c1296 = arith.constant 1296 : index
    %142 = vector.load %arg10[%c0_112, %c1296] : memref<32x1664xbf16, #tpu.memory_space<vmem>>, vector<16x256xbf16>
    %c112_113 = arith.constant 112 : index
    %c768_114 = arith.constant 768 : index
    %143 = vector.load %arg11[%c112_113, %c768_114] : memref<288x1024xbf16, #tpu.memory_space<vmem>>, vector<16x256xbf16>
    tpu.vector_store %arg11[%c112_113, %c768_114], %142 {strides = array<i32>} : memref<288x1024xbf16, #tpu.memory_space<vmem>>, vector<16x256xbf16>,
    %c0_115 = arith.constant 0 : index
    %c145 = arith.constant 145 : index
    %144 = vector.load %arg10[%c0_115, %c145] : memref<32x1664xbf16, #tpu.memory_space<vmem>>, vector<16x256xbf16>
    %145 = vector.extract_strided_slice %0 {offsets = [8, 0], sizes = [1, 256], strides = [1, 1]} : vector<9x256xbf16> to vector<1x256xbf16>
    %146 = vector.broadcast %145 : vector<1x256xbf16> to vector<16x256xbf16>
    %147 = arith.mulf %144, %146 : vector<16x256xbf16>
    %c128_116 = arith.constant 128 : index
    %c0_117 = arith.constant 0 : index
    %148 = vector.load %arg11[%c128_116, %c0_117] : memref<288x1024xbf16, #tpu.memory_space<vmem>>, vector<16x256xbf16>
    tpu.vector_store %arg11[%c128_116, %c0_117], %147 {strides = array<i32>} : memref<288x1024xbf16, #tpu.memory_space<vmem>>, vector<16x256xbf16>,
    %c0_118 = arith.constant 0 : index
    %c529 = arith.constant 529 : index
    %149 = vector.load %arg10[%c0_118, %c529] : memref<32x1664xbf16, #tpu.memory_space<vmem>>, vector<16x256xbf16>
    %150 = vector.extract_strided_slice %0 {offsets = [8, 0], sizes = [1, 256], strides = [1, 1]} : vector<9x256xbf16> to vector<1x256xbf16>
    %151 = vector.broadcast %150 : vector<1x256xbf16> to vector<16x256xbf16>
    %152 = arith.mulf %149, %151 : vector<16x256xbf16>
    %c128_119 = arith.constant 128 : index
    %c256_120 = arith.constant 256 : index
    %153 = vector.load %arg11[%c128_119, %c256_120] : memref<288x1024xbf16, #tpu.memory_space<vmem>>, vector<16x256xbf16>
    tpu.vector_store %arg11[%c128_119, %c256_120], %152 {strides = array<i32>} : memref<288x1024xbf16, #tpu.memory_space<vmem>>, vector<16x256xbf16>,
    %c0_121 = arith.constant 0 : index
    %c913 = arith.constant 913 : index
    %154 = vector.load %arg10[%c0_121, %c913] : memref<32x1664xbf16, #tpu.memory_space<vmem>>, vector<16x256xbf16>
    %155 = vector.extract_strided_slice %0 {offsets = [8, 0], sizes = [1, 256], strides = [1, 1]} : vector<9x256xbf16> to vector<1x256xbf16>
    %156 = vector.broadcast %155 : vector<1x256xbf16> to vector<16x256xbf16>
    %157 = arith.mulf %154, %156 : vector<16x256xbf16>
    %c128_122 = arith.constant 128 : index
    %c512_123 = arith.constant 512 : index
    %158 = vector.load %arg11[%c128_122, %c512_123] : memref<288x1024xbf16, #tpu.memory_space<vmem>>, vector<16x256xbf16>
    tpu.vector_store %arg11[%c128_122, %c512_123], %157 {strides = array<i32>} : memref<288x1024xbf16, #tpu.memory_space<vmem>>, vector<16x256xbf16>,
    %c0_124 = arith.constant 0 : index
    %c1297 = arith.constant 1297 : index
    %159 = vector.load %arg10[%c0_124, %c1297] : memref<32x1664xbf16, #tpu.memory_space<vmem>>, vector<16x256xbf16>
    %160 = vector.extract_strided_slice %0 {offsets = [8, 0], sizes = [1, 256], strides = [1, 1]} : vector<9x256xbf16> to vector<1x256xbf16>
    %161 = vector.broadcast %160 : vector<1x256xbf16> to vector<16x256xbf16>
    %162 = arith.mulf %159, %161 : vector<16x256xbf16>
    %c128_125 = arith.constant 128 : index
    %c768_126 = arith.constant 768 : index
    %163 = vector.load %arg11[%c128_125, %c768_126] : memref<288x1024xbf16, #tpu.memory_space<vmem>>, vector<16x256xbf16>
    tpu.vector_store %arg11[%c128_125, %c768_126], %162 {strides = array<i32>} : memref<288x1024xbf16, #tpu.memory_space<vmem>>, vector<16x256xbf16>,
    %c0_127 = arith.constant 0 : index
    %c0_128 = arith.constant 0 : index
    %164 = vector.load %arg3[%c0_127, %c0_128] : memref<32x144xbf16, #tpu.memory_space<vmem>>, vector<32x144xbf16>
    %c0_129 = arith.constant 0 : index
    %c0_130 = arith.constant 0 : index
    %165 = vector.load %arg11[%c0_129, %c0_130] : memref<288x1024xbf16, #tpu.memory_space<vmem>>, vector<144x1024xbf16>
    %cst_131 = arith.constant dense<0.000000e+00> : vector<32x1024xf32>
    %166 = tpu.matmul %164, %165, %cst_131 {dimension_numbers = #tpu.dot_dimension_numbers<[1], [0], [0], [1], [0, 0, 1, 1], [], []>} : vector<32x144xbf16>, vector<144x1024xbf16>, vector<32x1024xf32> -> vector<32x1024xf32>
    %167 = vector.broadcast %19 : vector<32x1xf32> to vector<32x1024xf32>
    %168 = arith.addf %166, %167 : vector<32x1024xf32>
    %cst_132 = arith.constant 0.000000e+00 : f32
    %169 = vector.broadcast %cst_132 : f32 to vector<32x1024xf32>
    %170 = arith.maximumf %168, %169 : vector<32x1024xf32>
    %171 = arith.truncf %170 : vector<32x1024xf32> to vector<32x1024xbf16>
    %172 = vector.extract_strided_slice %171 {offsets = [0, 0], sizes = [32, 256], strides = [1, 1]} : vector<32x1024xbf16> to vector<32x256xbf16>
    %c0_133 = arith.constant 0 : index
    %c128_134 = arith.constant 128 : index
    %173 = vector.load %arg10[%c0_133, %c128_134] : memref<32x1664xbf16, #tpu.memory_space<vmem>>, vector<32x256xbf16>
    tpu.vector_store %arg10[%c0_133, %c128_134], %172 {strides = array<i32>} : memref<32x1664xbf16, #tpu.memory_space<vmem>>, vector<32x256xbf16>,
    %174 = vector.extract_strided_slice %171 {offsets = [0, 256], sizes = [32, 256], strides = [1, 1]} : vector<32x1024xbf16> to vector<32x256xbf16>
    %c0_135 = arith.constant 0 : index
    %c512_136 = arith.constant 512 : index
    %175 = vector.load %arg10[%c0_135, %c512_136] : memref<32x1664xbf16, #tpu.memory_space<vmem>>, vector<32x256xbf16>
    tpu.vector_store %arg10[%c0_135, %c512_136], %174 {strides = array<i32>} : memref<32x1664xbf16, #tpu.memory_space<vmem>>, vector<32x256xbf16>,
    %176 = vector.extract_strided_slice %171 {offsets = [0, 512], sizes = [32, 256], strides = [1, 1]} : vector<32x1024xbf16> to vector<32x256xbf16>
    %c0_137 = arith.constant 0 : index
    %c896_138 = arith.constant 896 : index
    %177 = vector.load %arg10[%c0_137, %c896_138] : memref<32x1664xbf16, #tpu.memory_space<vmem>>, vector<32x256xbf16>
    tpu.vector_store %arg10[%c0_137, %c896_138], %176 {strides = array<i32>} : memref<32x1664xbf16, #tpu.memory_space<vmem>>, vector<32x256xbf16>,
    %178 = vector.extract_strided_slice %171 {offsets = [0, 768], sizes = [32, 256], strides = [1, 1]} : vector<32x1024xbf16> to vector<32x256xbf16>
    %c0_139 = arith.constant 0 : index
    %c1280_140 = arith.constant 1280 : index
    %179 = vector.load %arg10[%c0_139, %c1280_140] : memref<32x1664xbf16, #tpu.memory_space<vmem>>, vector<32x256xbf16>
    tpu.vector_store %arg10[%c0_139, %c1280_140], %178 {strides = array<i32>} : memref<32x1664xbf16, #tpu.memory_space<vmem>>, vector<32x256xbf16>,
    %c0_141 = arith.constant 0 : index
    %c0_142 = arith.constant 0 : index
    %180 = vector.load %arg6[%c0_141, %c0_142] : memref<32x1xf32, #tpu.memory_space<vmem>>, vector<32x1xf32>
    %c0_143 = arith.constant 0 : index
    %c111_144 = arith.constant 111 : index
    %181 = vector.load %arg10[%c0_143, %c111_144] : memref<32x1664xbf16, #tpu.memory_space<vmem>>, vector<32x256xbf16>
    %182 = vector.extract_strided_slice %0 {offsets = [0, 0], sizes = [1, 256], strides = [1, 1]} : vector<9x256xbf16> to vector<1x256xbf16>
    %183 = vector.broadcast %182 : vector<1x256xbf16> to vector<32x256xbf16>
    %184 = arith.mulf %181, %183 : vector<32x256xbf16>
    %c0_145 = arith.constant 0 : index
    %c0_146 = arith.constant 0 : index
    %185 = vector.load %arg11[%c0_145, %c0_146] : memref<288x1024xbf16, #tpu.memory_space<vmem>>, vector<32x256xbf16>
    tpu.vector_store %arg11[%c0_145, %c0_146], %184 {strides = array<i32>} : memref<288x1024xbf16, #tpu.memory_space<vmem>>, vector<32x256xbf16>,
    %c0_147 = arith.constant 0 : index
    %c495_148 = arith.constant 495 : index
    %186 = vector.load %arg10[%c0_147, %c495_148] : memref<32x1664xbf16, #tpu.memory_space<vmem>>, vector<32x256xbf16>
    %187 = vector.extract_strided_slice %0 {offsets = [0, 0], sizes = [1, 256], strides = [1, 1]} : vector<9x256xbf16> to vector<1x256xbf16>
    %188 = vector.broadcast %187 : vector<1x256xbf16> to vector<32x256xbf16>
    %189 = arith.mulf %186, %188 : vector<32x256xbf16>
    %c0_149 = arith.constant 0 : index
    %c256_150 = arith.constant 256 : index
    %190 = vector.load %arg11[%c0_149, %c256_150] : memref<288x1024xbf16, #tpu.memory_space<vmem>>, vector<32x256xbf16>
    tpu.vector_store %arg11[%c0_149, %c256_150], %189 {strides = array<i32>} : memref<288x1024xbf16, #tpu.memory_space<vmem>>, vector<32x256xbf16>,
    %c0_151 = arith.constant 0 : index
    %c879_152 = arith.constant 879 : index
    %191 = vector.load %arg10[%c0_151, %c879_152] : memref<32x1664xbf16, #tpu.memory_space<vmem>>, vector<32x256xbf16>
    %192 = vector.extract_strided_slice %0 {offsets = [0, 0], sizes = [1, 256], strides = [1, 1]} : vector<9x256xbf16> to vector<1x256xbf16>
    %193 = vector.broadcast %192 : vector<1x256xbf16> to vector<32x256xbf16>
    %194 = arith.mulf %191, %193 : vector<32x256xbf16>
    %c0_153 = arith.constant 0 : index
    %c512_154 = arith.constant 512 : index
    %195 = vector.load %arg11[%c0_153, %c512_154] : memref<288x1024xbf16, #tpu.memory_space<vmem>>, vector<32x256xbf16>
    tpu.vector_store %arg11[%c0_153, %c512_154], %194 {strides = array<i32>} : memref<288x1024xbf16, #tpu.memory_space<vmem>>, vector<32x256xbf16>,
    %c0_155 = arith.constant 0 : index
    %c1263_156 = arith.constant 1263 : index
    %196 = vector.load %arg10[%c0_155, %c1263_156] : memref<32x1664xbf16, #tpu.memory_space<vmem>>, vector<32x256xbf16>
    %197 = vector.extract_strided_slice %0 {offsets = [0, 0], sizes = [1, 256], strides = [1, 1]} : vector<9x256xbf16> to vector<1x256xbf16>
    %198 = vector.broadcast %197 : vector<1x256xbf16> to vector<32x256xbf16>
    %199 = arith.mulf %196, %198 : vector<32x256xbf16>
    %c0_157 = arith.constant 0 : index
    %c768_158 = arith.constant 768 : index
    %200 = vector.load %arg11[%c0_157, %c768_158] : memref<288x1024xbf16, #tpu.memory_space<vmem>>, vector<32x256xbf16>
    tpu.vector_store %arg11[%c0_157, %c768_158], %199 {strides = array<i32>} : memref<288x1024xbf16, #tpu.memory_space<vmem>>, vector<32x256xbf16>,
    %c0_159 = arith.constant 0 : index
    %c112_160 = arith.constant 112 : index
    %201 = vector.load %arg10[%c0_159, %c112_160] : memref<32x1664xbf16, #tpu.memory_space<vmem>>, vector<32x256xbf16>
    %c32_161 = arith.constant 32 : index
    %c0_162 = arith.constant 0 : index
    %202 = vector.load %arg11[%c32_161, %c0_162] : memref<288x1024xbf16, #tpu.memory_space<vmem>>, vector<32x256xbf16>
    tpu.vector_store %arg11[%c32_161, %c0_162], %201 {strides = array<i32>} : memref<288x1024xbf16, #tpu.memory_space<vmem>>, vector<32x256xbf16>,
    %c0_163 = arith.constant 0 : index
    %c496_164 = arith.constant 496 : index
    %203 = vector.load %arg10[%c0_163, %c496_164] : memref<32x1664xbf16, #tpu.memory_space<vmem>>, vector<32x256xbf16>
    %c32_165 = arith.constant 32 : index
    %c256_166 = arith.constant 256 : index
    %204 = vector.load %arg11[%c32_165, %c256_166] : memref<288x1024xbf16, #tpu.memory_space<vmem>>, vector<32x256xbf16>
    tpu.vector_store %arg11[%c32_165, %c256_166], %203 {strides = array<i32>} : memref<288x1024xbf16, #tpu.memory_space<vmem>>, vector<32x256xbf16>,
    %c0_167 = arith.constant 0 : index
    %c880_168 = arith.constant 880 : index
    %205 = vector.load %arg10[%c0_167, %c880_168] : memref<32x1664xbf16, #tpu.memory_space<vmem>>, vector<32x256xbf16>
    %c32_169 = arith.constant 32 : index
    %c512_170 = arith.constant 512 : index
    %206 = vector.load %arg11[%c32_169, %c512_170] : memref<288x1024xbf16, #tpu.memory_space<vmem>>, vector<32x256xbf16>
    tpu.vector_store %arg11[%c32_169, %c512_170], %205 {strides = array<i32>} : memref<288x1024xbf16, #tpu.memory_space<vmem>>, vector<32x256xbf16>,
    %c0_171 = arith.constant 0 : index
    %c1264_172 = arith.constant 1264 : index
    %207 = vector.load %arg10[%c0_171, %c1264_172] : memref<32x1664xbf16, #tpu.memory_space<vmem>>, vector<32x256xbf16>
    %c32_173 = arith.constant 32 : index
    %c768_174 = arith.constant 768 : index
    %208 = vector.load %arg11[%c32_173, %c768_174] : memref<288x1024xbf16, #tpu.memory_space<vmem>>, vector<32x256xbf16>
    tpu.vector_store %arg11[%c32_173, %c768_174], %207 {strides = array<i32>} : memref<288x1024xbf16, #tpu.memory_space<vmem>>, vector<32x256xbf16>,
    %c0_175 = arith.constant 0 : index
    %c113_176 = arith.constant 113 : index
    %209 = vector.load %arg10[%c0_175, %c113_176] : memref<32x1664xbf16, #tpu.memory_space<vmem>>, vector<32x256xbf16>
    %210 = vector.extract_strided_slice %0 {offsets = [2, 0], sizes = [1, 256], strides = [1, 1]} : vector<9x256xbf16> to vector<1x256xbf16>
    %211 = vector.broadcast %210 : vector<1x256xbf16> to vector<32x256xbf16>
    %212 = arith.mulf %209, %211 : vector<32x256xbf16>
    %c64_177 = arith.constant 64 : index
    %c0_178 = arith.constant 0 : index
    %213 = vector.load %arg11[%c64_177, %c0_178] : memref<288x1024xbf16, #tpu.memory_space<vmem>>, vector<32x256xbf16>
    tpu.vector_store %arg11[%c64_177, %c0_178], %212 {strides = array<i32>} : memref<288x1024xbf16, #tpu.memory_space<vmem>>, vector<32x256xbf16>,
    %c0_179 = arith.constant 0 : index
    %c497_180 = arith.constant 497 : index
    %214 = vector.load %arg10[%c0_179, %c497_180] : memref<32x1664xbf16, #tpu.memory_space<vmem>>, vector<32x256xbf16>
    %215 = vector.extract_strided_slice %0 {offsets = [2, 0], sizes = [1, 256], strides = [1, 1]} : vector<9x256xbf16> to vector<1x256xbf16>
    %216 = vector.broadcast %215 : vector<1x256xbf16> to vector<32x256xbf16>
    %217 = arith.mulf %214, %216 : vector<32x256xbf16>
    %c64_181 = arith.constant 64 : index
    %c256_182 = arith.constant 256 : index
    %218 = vector.load %arg11[%c64_181, %c256_182] : memref<288x1024xbf16, #tpu.memory_space<vmem>>, vector<32x256xbf16>
    tpu.vector_store %arg11[%c64_181, %c256_182], %217 {strides = array<i32>} : memref<288x1024xbf16, #tpu.memory_space<vmem>>, vector<32x256xbf16>,
    %c0_183 = arith.constant 0 : index
    %c881_184 = arith.constant 881 : index
    %219 = vector.load %arg10[%c0_183, %c881_184] : memref<32x1664xbf16, #tpu.memory_space<vmem>>, vector<32x256xbf16>
    %220 = vector.extract_strided_slice %0 {offsets = [2, 0], sizes = [1, 256], strides = [1, 1]} : vector<9x256xbf16> to vector<1x256xbf16>
    %221 = vector.broadcast %220 : vector<1x256xbf16> to vector<32x256xbf16>
    %222 = arith.mulf %219, %221 : vector<32x256xbf16>
    %c64_185 = arith.constant 64 : index
    %c512_186 = arith.constant 512 : index
    %223 = vector.load %arg11[%c64_185, %c512_186] : memref<288x1024xbf16, #tpu.memory_space<vmem>>, vector<32x256xbf16>
    tpu.vector_store %arg11[%c64_185, %c512_186], %222 {strides = array<i32>} : memref<288x1024xbf16, #tpu.memory_space<vmem>>, vector<32x256xbf16>,
    %c0_187 = arith.constant 0 : index
    %c1265_188 = arith.constant 1265 : index
    %224 = vector.load %arg10[%c0_187, %c1265_188] : memref<32x1664xbf16, #tpu.memory_space<vmem>>, vector<32x256xbf16>
    %225 = vector.extract_strided_slice %0 {offsets = [2, 0], sizes = [1, 256], strides = [1, 1]} : vector<9x256xbf16> to vector<1x256xbf16>
    %226 = vector.broadcast %225 : vector<1x256xbf16> to vector<32x256xbf16>
    %227 = arith.mulf %224, %226 : vector<32x256xbf16>
    %c64_189 = arith.constant 64 : index
    %c768_190 = arith.constant 768 : index
    %228 = vector.load %arg11[%c64_189, %c768_190] : memref<288x1024xbf16, #tpu.memory_space<vmem>>, vector<32x256xbf16>
    tpu.vector_store %arg11[%c64_189, %c768_190], %227 {strides = array<i32>} : memref<288x1024xbf16, #tpu.memory_space<vmem>>, vector<32x256xbf16>,
    %c0_191 = arith.constant 0 : index
    %c127_192 = arith.constant 127 : index
    %229 = vector.load %arg10[%c0_191, %c127_192] : memref<32x1664xbf16, #tpu.memory_space<vmem>>, vector<32x256xbf16>
    %230 = vector.extract_strided_slice %0 {offsets = [3, 0], sizes = [1, 256], strides = [1, 1]} : vector<9x256xbf16> to vector<1x256xbf16>
    %231 = vector.broadcast %230 : vector<1x256xbf16> to vector<32x256xbf16>
    %232 = arith.mulf %229, %231 : vector<32x256xbf16>
    %c96_193 = arith.constant 96 : index
    %c0_194 = arith.constant 0 : index
    %233 = vector.load %arg11[%c96_193, %c0_194] : memref<288x1024xbf16, #tpu.memory_space<vmem>>, vector<32x256xbf16>
    tpu.vector_store %arg11[%c96_193, %c0_194], %232 {strides = array<i32>} : memref<288x1024xbf16, #tpu.memory_space<vmem>>, vector<32x256xbf16>,
    %c0_195 = arith.constant 0 : index
    %c511_196 = arith.constant 511 : index
    %234 = vector.load %arg10[%c0_195, %c511_196] : memref<32x1664xbf16, #tpu.memory_space<vmem>>, vector<32x256xbf16>
    %235 = vector.extract_strided_slice %0 {offsets = [3, 0], sizes = [1, 256], strides = [1, 1]} : vector<9x256xbf16> to vector<1x256xbf16>
    %236 = vector.broadcast %235 : vector<1x256xbf16> to vector<32x256xbf16>
    %237 = arith.mulf %234, %236 : vector<32x256xbf16>
    %c96_197 = arith.constant 96 : index
    %c256_198 = arith.constant 256 : index
    %238 = vector.load %arg11[%c96_197, %c256_198] : memref<288x1024xbf16, #tpu.memory_space<vmem>>, vector<32x256xbf16>
    tpu.vector_store %arg11[%c96_197, %c256_198], %237 {strides = array<i32>} : memref<288x1024xbf16, #tpu.memory_space<vmem>>, vector<32x256xbf16>,
    %c0_199 = arith.constant 0 : index
    %c895_200 = arith.constant 895 : index
    %239 = vector.load %arg10[%c0_199, %c895_200] : memref<32x1664xbf16, #tpu.memory_space<vmem>>, vector<32x256xbf16>
    %240 = vector.extract_strided_slice %0 {offsets = [3, 0], sizes = [1, 256], strides = [1, 1]} : vector<9x256xbf16> to vector<1x256xbf16>
    %241 = vector.broadcast %240 : vector<1x256xbf16> to vector<32x256xbf16>
    %242 = arith.mulf %239, %241 : vector<32x256xbf16>
    %c96_201 = arith.constant 96 : index
    %c512_202 = arith.constant 512 : index
    %243 = vector.load %arg11[%c96_201, %c512_202] : memref<288x1024xbf16, #tpu.memory_space<vmem>>, vector<32x256xbf16>
    tpu.vector_store %arg11[%c96_201, %c512_202], %242 {strides = array<i32>} : memref<288x1024xbf16, #tpu.memory_space<vmem>>, vector<32x256xbf16>,
    %c0_203 = arith.constant 0 : index
    %c1279_204 = arith.constant 1279 : index
    %244 = vector.load %arg10[%c0_203, %c1279_204] : memref<32x1664xbf16, #tpu.memory_space<vmem>>, vector<32x256xbf16>
    %245 = vector.extract_strided_slice %0 {offsets = [3, 0], sizes = [1, 256], strides = [1, 1]} : vector<9x256xbf16> to vector<1x256xbf16>
    %246 = vector.broadcast %245 : vector<1x256xbf16> to vector<32x256xbf16>
    %247 = arith.mulf %244, %246 : vector<32x256xbf16>
    %c96_205 = arith.constant 96 : index
    %c768_206 = arith.constant 768 : index
    %248 = vector.load %arg11[%c96_205, %c768_206] : memref<288x1024xbf16, #tpu.memory_space<vmem>>, vector<32x256xbf16>
    tpu.vector_store %arg11[%c96_205, %c768_206], %247 {strides = array<i32>} : memref<288x1024xbf16, #tpu.memory_space<vmem>>, vector<32x256xbf16>,
    %c0_207 = arith.constant 0 : index
    %c0_208 = arith.constant 0 : index
    %249 = vector.load %arg5[%c0_207, %c0_208] : memref<32x288xbf16, #tpu.memory_space<vmem>>, vector<32x128xbf16>
    %c0_209 = arith.constant 0 : index
    %c0_210 = arith.constant 0 : index
    %250 = vector.load %arg11[%c0_209, %c0_210] : memref<288x1024xbf16, #tpu.memory_space<vmem>>, vector<128x1024xbf16>
    %cst_211 = arith.constant dense<0.000000e+00> : vector<32x1024xf32>
    %251 = tpu.matmul %249, %250, %cst_211 {dimension_numbers = #tpu.dot_dimension_numbers<[1], [0], [0], [1], [0, 0, 1, 1], [], []>} : vector<32x128xbf16>, vector<128x1024xbf16>, vector<32x1024xf32> -> vector<32x1024xf32>
    %c0_212 = arith.constant 0 : index
    %c128_213 = arith.constant 128 : index
    %252 = vector.load %arg10[%c0_212, %c128_213] : memref<32x1664xbf16, #tpu.memory_space<vmem>>, vector<32x256xbf16>
    %c128_214 = arith.constant 128 : index
    %c0_215 = arith.constant 0 : index
    %253 = vector.load %arg11[%c128_214, %c0_215] : memref<288x1024xbf16, #tpu.memory_space<vmem>>, vector<32x256xbf16>
    tpu.vector_store %arg11[%c128_214, %c0_215], %252 {strides = array<i32>} : memref<288x1024xbf16, #tpu.memory_space<vmem>>, vector<32x256xbf16>,
    %c0_216 = arith.constant 0 : index
    %c512_217 = arith.constant 512 : index
    %254 = vector.load %arg10[%c0_216, %c512_217] : memref<32x1664xbf16, #tpu.memory_space<vmem>>, vector<32x256xbf16>
    %c128_218 = arith.constant 128 : index
    %c256_219 = arith.constant 256 : index
    %255 = vector.load %arg11[%c128_218, %c256_219] : memref<288x1024xbf16, #tpu.memory_space<vmem>>, vector<32x256xbf16>
    tpu.vector_store %arg11[%c128_218, %c256_219], %254 {strides = array<i32>} : memref<288x1024xbf16, #tpu.memory_space<vmem>>, vector<32x256xbf16>,
    %c0_220 = arith.constant 0 : index
    %c896_221 = arith.constant 896 : index
    %256 = vector.load %arg10[%c0_220, %c896_221] : memref<32x1664xbf16, #tpu.memory_space<vmem>>, vector<32x256xbf16>
    %c128_222 = arith.constant 128 : index
    %c512_223 = arith.constant 512 : index
    %257 = vector.load %arg11[%c128_222, %c512_223] : memref<288x1024xbf16, #tpu.memory_space<vmem>>, vector<32x256xbf16>
    tpu.vector_store %arg11[%c128_222, %c512_223], %256 {strides = array<i32>} : memref<288x1024xbf16, #tpu.memory_space<vmem>>, vector<32x256xbf16>,
    %c0_224 = arith.constant 0 : index
    %c1280_225 = arith.constant 1280 : index
    %258 = vector.load %arg10[%c0_224, %c1280_225] : memref<32x1664xbf16, #tpu.memory_space<vmem>>, vector<32x256xbf16>
    %c128_226 = arith.constant 128 : index
    %c768_227 = arith.constant 768 : index
    %259 = vector.load %arg11[%c128_226, %c768_227] : memref<288x1024xbf16, #tpu.memory_space<vmem>>, vector<32x256xbf16>
    tpu.vector_store %arg11[%c128_226, %c768_227], %258 {strides = array<i32>} : memref<288x1024xbf16, #tpu.memory_space<vmem>>, vector<32x256xbf16>,
    %c0_228 = arith.constant 0 : index
    %c129_229 = arith.constant 129 : index
    %260 = vector.load %arg10[%c0_228, %c129_229] : memref<32x1664xbf16, #tpu.memory_space<vmem>>, vector<32x256xbf16>
    %261 = vector.extract_strided_slice %0 {offsets = [5, 0], sizes = [1, 256], strides = [1, 1]} : vector<9x256xbf16> to vector<1x256xbf16>
    %262 = vector.broadcast %261 : vector<1x256xbf16> to vector<32x256xbf16>
    %263 = arith.mulf %260, %262 : vector<32x256xbf16>
    %c160 = arith.constant 160 : index
    %c0_230 = arith.constant 0 : index
    %264 = vector.load %arg11[%c160, %c0_230] : memref<288x1024xbf16, #tpu.memory_space<vmem>>, vector<32x256xbf16>
    tpu.vector_store %arg11[%c160, %c0_230], %263 {strides = array<i32>} : memref<288x1024xbf16, #tpu.memory_space<vmem>>, vector<32x256xbf16>,
    %c0_231 = arith.constant 0 : index
    %c513_232 = arith.constant 513 : index
    %265 = vector.load %arg10[%c0_231, %c513_232] : memref<32x1664xbf16, #tpu.memory_space<vmem>>, vector<32x256xbf16>
    %266 = vector.extract_strided_slice %0 {offsets = [5, 0], sizes = [1, 256], strides = [1, 1]} : vector<9x256xbf16> to vector<1x256xbf16>
    %267 = vector.broadcast %266 : vector<1x256xbf16> to vector<32x256xbf16>
    %268 = arith.mulf %265, %267 : vector<32x256xbf16>
    %c160_233 = arith.constant 160 : index
    %c256_234 = arith.constant 256 : index
    %269 = vector.load %arg11[%c160_233, %c256_234] : memref<288x1024xbf16, #tpu.memory_space<vmem>>, vector<32x256xbf16>
    tpu.vector_store %arg11[%c160_233, %c256_234], %268 {strides = array<i32>} : memref<288x1024xbf16, #tpu.memory_space<vmem>>, vector<32x256xbf16>,
    %c0_235 = arith.constant 0 : index
    %c897_236 = arith.constant 897 : index
    %270 = vector.load %arg10[%c0_235, %c897_236] : memref<32x1664xbf16, #tpu.memory_space<vmem>>, vector<32x256xbf16>
    %271 = vector.extract_strided_slice %0 {offsets = [5, 0], sizes = [1, 256], strides = [1, 1]} : vector<9x256xbf16> to vector<1x256xbf16>
    %272 = vector.broadcast %271 : vector<1x256xbf16> to vector<32x256xbf16>
    %273 = arith.mulf %270, %272 : vector<32x256xbf16>
    %c160_237 = arith.constant 160 : index
    %c512_238 = arith.constant 512 : index
    %274 = vector.load %arg11[%c160_237, %c512_238] : memref<288x1024xbf16, #tpu.memory_space<vmem>>, vector<32x256xbf16>
    tpu.vector_store %arg11[%c160_237, %c512_238], %273 {strides = array<i32>} : memref<288x1024xbf16, #tpu.memory_space<vmem>>, vector<32x256xbf16>,
    %c0_239 = arith.constant 0 : index
    %c1281_240 = arith.constant 1281 : index
    %275 = vector.load %arg10[%c0_239, %c1281_240] : memref<32x1664xbf16, #tpu.memory_space<vmem>>, vector<32x256xbf16>
    %276 = vector.extract_strided_slice %0 {offsets = [5, 0], sizes = [1, 256], strides = [1, 1]} : vector<9x256xbf16> to vector<1x256xbf16>
    %277 = vector.broadcast %276 : vector<1x256xbf16> to vector<32x256xbf16>
    %278 = arith.mulf %275, %277 : vector<32x256xbf16>
    %c160_241 = arith.constant 160 : index
    %c768_242 = arith.constant 768 : index
    %279 = vector.load %arg11[%c160_241, %c768_242] : memref<288x1024xbf16, #tpu.memory_space<vmem>>, vector<32x256xbf16>
    tpu.vector_store %arg11[%c160_241, %c768_242], %278 {strides = array<i32>} : memref<288x1024xbf16, #tpu.memory_space<vmem>>, vector<32x256xbf16>,
    %c0_243 = arith.constant 0 : index
    %c143_244 = arith.constant 143 : index
    %280 = vector.load %arg10[%c0_243, %c143_244] : memref<32x1664xbf16, #tpu.memory_space<vmem>>, vector<32x256xbf16>
    %281 = vector.extract_strided_slice %0 {offsets = [6, 0], sizes = [1, 256], strides = [1, 1]} : vector<9x256xbf16> to vector<1x256xbf16>
    %282 = vector.broadcast %281 : vector<1x256xbf16> to vector<32x256xbf16>
    %283 = arith.mulf %280, %282 : vector<32x256xbf16>
    %c192 = arith.constant 192 : index
    %c0_245 = arith.constant 0 : index
    %284 = vector.load %arg11[%c192, %c0_245] : memref<288x1024xbf16, #tpu.memory_space<vmem>>, vector<32x256xbf16>
    tpu.vector_store %arg11[%c192, %c0_245], %283 {strides = array<i32>} : memref<288x1024xbf16, #tpu.memory_space<vmem>>, vector<32x256xbf16>,
    %c0_246 = arith.constant 0 : index
    %c527_247 = arith.constant 527 : index
    %285 = vector.load %arg10[%c0_246, %c527_247] : memref<32x1664xbf16, #tpu.memory_space<vmem>>, vector<32x256xbf16>
    %286 = vector.extract_strided_slice %0 {offsets = [6, 0], sizes = [1, 256], strides = [1, 1]} : vector<9x256xbf16> to vector<1x256xbf16>
    %287 = vector.broadcast %286 : vector<1x256xbf16> to vector<32x256xbf16>
    %288 = arith.mulf %285, %287 : vector<32x256xbf16>
    %c192_248 = arith.constant 192 : index
    %c256_249 = arith.constant 256 : index
    %289 = vector.load %arg11[%c192_248, %c256_249] : memref<288x1024xbf16, #tpu.memory_space<vmem>>, vector<32x256xbf16>
    tpu.vector_store %arg11[%c192_248, %c256_249], %288 {strides = array<i32>} : memref<288x1024xbf16, #tpu.memory_space<vmem>>, vector<32x256xbf16>,
    %c0_250 = arith.constant 0 : index
    %c911_251 = arith.constant 911 : index
    %290 = vector.load %arg10[%c0_250, %c911_251] : memref<32x1664xbf16, #tpu.memory_space<vmem>>, vector<32x256xbf16>
    %291 = vector.extract_strided_slice %0 {offsets = [6, 0], sizes = [1, 256], strides = [1, 1]} : vector<9x256xbf16> to vector<1x256xbf16>
    %292 = vector.broadcast %291 : vector<1x256xbf16> to vector<32x256xbf16>
    %293 = arith.mulf %290, %292 : vector<32x256xbf16>
    %c192_252 = arith.constant 192 : index
    %c512_253 = arith.constant 512 : index
    %294 = vector.load %arg11[%c192_252, %c512_253] : memref<288x1024xbf16, #tpu.memory_space<vmem>>, vector<32x256xbf16>
    tpu.vector_store %arg11[%c192_252, %c512_253], %293 {strides = array<i32>} : memref<288x1024xbf16, #tpu.memory_space<vmem>>, vector<32x256xbf16>,
    %c0_254 = arith.constant 0 : index
    %c1295_255 = arith.constant 1295 : index
    %295 = vector.load %arg10[%c0_254, %c1295_255] : memref<32x1664xbf16, #tpu.memory_space<vmem>>, vector<32x256xbf16>
    %296 = vector.extract_strided_slice %0 {offsets = [6, 0], sizes = [1, 256], strides = [1, 1]} : vector<9x256xbf16> to vector<1x256xbf16>
    %297 = vector.broadcast %296 : vector<1x256xbf16> to vector<32x256xbf16>
    %298 = arith.mulf %295, %297 : vector<32x256xbf16>
    %c192_256 = arith.constant 192 : index
    %c768_257 = arith.constant 768 : index
    %299 = vector.load %arg11[%c192_256, %c768_257] : memref<288x1024xbf16, #tpu.memory_space<vmem>>, vector<32x256xbf16>
    tpu.vector_store %arg11[%c192_256, %c768_257], %298 {strides = array<i32>} : memref<288x1024xbf16, #tpu.memory_space<vmem>>, vector<32x256xbf16>,
    %c0_258 = arith.constant 0 : index
    %c144_259 = arith.constant 144 : index
    %300 = vector.load %arg10[%c0_258, %c144_259] : memref<32x1664xbf16, #tpu.memory_space<vmem>>, vector<32x256xbf16>
    %c224 = arith.constant 224 : index
    %c0_260 = arith.constant 0 : index
    %301 = vector.load %arg11[%c224, %c0_260] : memref<288x1024xbf16, #tpu.memory_space<vmem>>, vector<32x256xbf16>
    tpu.vector_store %arg11[%c224, %c0_260], %300 {strides = array<i32>} : memref<288x1024xbf16, #tpu.memory_space<vmem>>, vector<32x256xbf16>,
    %c0_261 = arith.constant 0 : index
    %c528_262 = arith.constant 528 : index
    %302 = vector.load %arg10[%c0_261, %c528_262] : memref<32x1664xbf16, #tpu.memory_space<vmem>>, vector<32x256xbf16>
    %c224_263 = arith.constant 224 : index
    %c256_264 = arith.constant 256 : index
    %303 = vector.load %arg11[%c224_263, %c256_264] : memref<288x1024xbf16, #tpu.memory_space<vmem>>, vector<32x256xbf16>
    tpu.vector_store %arg11[%c224_263, %c256_264], %302 {strides = array<i32>} : memref<288x1024xbf16, #tpu.memory_space<vmem>>, vector<32x256xbf16>,
    %c0_265 = arith.constant 0 : index
    %c912_266 = arith.constant 912 : index
    %304 = vector.load %arg10[%c0_265, %c912_266] : memref<32x1664xbf16, #tpu.memory_space<vmem>>, vector<32x256xbf16>
    %c224_267 = arith.constant 224 : index
    %c512_268 = arith.constant 512 : index
    %305 = vector.load %arg11[%c224_267, %c512_268] : memref<288x1024xbf16, #tpu.memory_space<vmem>>, vector<32x256xbf16>
    tpu.vector_store %arg11[%c224_267, %c512_268], %304 {strides = array<i32>} : memref<288x1024xbf16, #tpu.memory_space<vmem>>, vector<32x256xbf16>,
    %c0_269 = arith.constant 0 : index
    %c1296_270 = arith.constant 1296 : index
    %306 = vector.load %arg10[%c0_269, %c1296_270] : memref<32x1664xbf16, #tpu.memory_space<vmem>>, vector<32x256xbf16>
    %c224_271 = arith.constant 224 : index
    %c768_272 = arith.constant 768 : index
    %307 = vector.load %arg11[%c224_271, %c768_272] : memref<288x1024xbf16, #tpu.memory_space<vmem>>, vector<32x256xbf16>
    tpu.vector_store %arg11[%c224_271, %c768_272], %306 {strides = array<i32>} : memref<288x1024xbf16, #tpu.memory_space<vmem>>, vector<32x256xbf16>,
    %c0_273 = arith.constant 0 : index
    %c145_274 = arith.constant 145 : index
    %308 = vector.load %arg10[%c0_273, %c145_274] : memref<32x1664xbf16, #tpu.memory_space<vmem>>, vector<32x256xbf16>
    %309 = vector.extract_strided_slice %0 {offsets = [8, 0], sizes = [1, 256], strides = [1, 1]} : vector<9x256xbf16> to vector<1x256xbf16>
    %310 = vector.broadcast %309 : vector<1x256xbf16> to vector<32x256xbf16>
    %311 = arith.mulf %308, %310 : vector<32x256xbf16>
    %c256_275 = arith.constant 256 : index
    %c0_276 = arith.constant 0 : index
    %312 = vector.load %arg11[%c256_275, %c0_276] : memref<288x1024xbf16, #tpu.memory_space<vmem>>, vector<32x256xbf16>
    tpu.vector_store %arg11[%c256_275, %c0_276], %311 {strides = array<i32>} : memref<288x1024xbf16, #tpu.memory_space<vmem>>, vector<32x256xbf16>,
    %c0_277 = arith.constant 0 : index
    %c529_278 = arith.constant 529 : index
    %313 = vector.load %arg10[%c0_277, %c529_278] : memref<32x1664xbf16, #tpu.memory_space<vmem>>, vector<32x256xbf16>
    %314 = vector.extract_strided_slice %0 {offsets = [8, 0], sizes = [1, 256], strides = [1, 1]} : vector<9x256xbf16> to vector<1x256xbf16>
    %315 = vector.broadcast %314 : vector<1x256xbf16> to vector<32x256xbf16>
    %316 = arith.mulf %313, %315 : vector<32x256xbf16>
    %c256_279 = arith.constant 256 : index
    %c256_280 = arith.constant 256 : index
    %317 = vector.load %arg11[%c256_279, %c256_280] : memref<288x1024xbf16, #tpu.memory_space<vmem>>, vector<32x256xbf16>
    tpu.vector_store %arg11[%c256_279, %c256_280], %316 {strides = array<i32>} : memref<288x1024xbf16, #tpu.memory_space<vmem>>, vector<32x256xbf16>,
    %c0_281 = arith.constant 0 : index
    %c913_282 = arith.constant 913 : index
    %318 = vector.load %arg10[%c0_281, %c913_282] : memref<32x1664xbf16, #tpu.memory_space<vmem>>, vector<32x256xbf16>
    %319 = vector.extract_strided_slice %0 {offsets = [8, 0], sizes = [1, 256], strides = [1, 1]} : vector<9x256xbf16> to vector<1x256xbf16>
    %320 = vector.broadcast %319 : vector<1x256xbf16> to vector<32x256xbf16>
    %321 = arith.mulf %318, %320 : vector<32x256xbf16>
    %c256_283 = arith.constant 256 : index
    %c512_284 = arith.constant 512 : index
    %322 = vector.load %arg11[%c256_283, %c512_284] : memref<288x1024xbf16, #tpu.memory_space<vmem>>, vector<32x256xbf16>
    tpu.vector_store %arg11[%c256_283, %c512_284], %321 {strides = array<i32>} : memref<288x1024xbf16, #tpu.memory_space<vmem>>, vector<32x256xbf16>,
    %c0_285 = arith.constant 0 : index
    %c1297_286 = arith.constant 1297 : index
    %323 = vector.load %arg10[%c0_285, %c1297_286] : memref<32x1664xbf16, #tpu.memory_space<vmem>>, vector<32x256xbf16>
    %324 = vector.extract_strided_slice %0 {offsets = [8, 0], sizes = [1, 256], strides = [1, 1]} : vector<9x256xbf16> to vector<1x256xbf16>
    %325 = vector.broadcast %324 : vector<1x256xbf16> to vector<32x256xbf16>
    %326 = arith.mulf %323, %325 : vector<32x256xbf16>
    %c256_287 = arith.constant 256 : index
    %c768_288 = arith.constant 768 : index
    %327 = vector.load %arg11[%c256_287, %c768_288] : memref<288x1024xbf16, #tpu.memory_space<vmem>>, vector<32x256xbf16>
    tpu.vector_store %arg11[%c256_287, %c768_288], %326 {strides = array<i32>} : memref<288x1024xbf16, #tpu.memory_space<vmem>>, vector<32x256xbf16>,
    %c0_289 = arith.constant 0 : index
    %c128_290 = arith.constant 128 : index
    %328 = vector.load %arg5[%c0_289, %c128_290] : memref<32x288xbf16, #tpu.memory_space<vmem>>, vector<32x160xbf16>
    %c128_291 = arith.constant 128 : index
    %c0_292 = arith.constant 0 : index
    %329 = vector.load %arg11[%c128_291, %c0_292] : memref<288x1024xbf16, #tpu.memory_space<vmem>>, vector<160x1024xbf16>
    %cst_293 = arith.constant dense<0.000000e+00> : vector<32x1024xf32>
    %330 = tpu.matmul %328, %329, %cst_293 {dimension_numbers = #tpu.dot_dimension_numbers<[1], [0], [0], [1], [0, 0, 1, 1], [], []>} : vector<32x160xbf16>, vector<160x1024xbf16>, vector<32x1024xf32> -> vector<32x1024xf32>
    %331 = arith.addf %251, %330 : vector<32x1024xf32>
    %332 = vector.broadcast %180 : vector<32x1xf32> to vector<32x1024xf32>
    %333 = arith.addf %331, %332 : vector<32x1024xf32>
    %cst_294 = arith.constant 0.000000e+00 : f32
    %334 = vector.broadcast %cst_294 : f32 to vector<32x1024xf32>
    %335 = arith.maximumf %333, %334 : vector<32x1024xf32>
    %c0_295 = arith.constant 0 : index
    %c0_296 = arith.constant 0 : index
    %336 = vector.load %arg7[%c0_295, %c0_296] : memref<10x32xbf16, #tpu.memory_space<vmem>>, vector<10x32xbf16>
    %337 = arith.truncf %335 : vector<32x1024xf32> to vector<32x1024xbf16>
    %cst_297 = arith.constant dense<0.000000e+00> : vector<10x1024xf32>
    %338 = tpu.matmul %336, %337, %cst_297 {dimension_numbers = #tpu.dot_dimension_numbers<[1], [0], [0], [1], [0, 0, 1, 1], [], []>} : vector<10x32xbf16>, vector<32x1024xbf16>, vector<10x1024xf32> -> vector<10x1024xf32>
    %c0_298 = arith.constant 0 : index
    %c0_299 = arith.constant 0 : index
    %339 = vector.load %arg8[%c0_298, %c0_299] : memref<10x1xf32, #tpu.memory_space<vmem>>, vector<10x1xf32>
    %340 = vector.broadcast %339 : vector<10x1xf32> to vector<10x1024xf32>
    %341 = arith.addf %338, %340 : vector<10x1024xf32>
    %342 = vector.extract_strided_slice %341 {offsets = [0, 0], sizes = [10, 256], strides = [1, 1]} : vector<10x1024xf32> to vector<10x256xf32>
    %c0_300 = arith.constant 0 : index
    %c0_301 = arith.constant 0 : index
    %c0_302 = arith.constant 0 : index
    %343 = vector.load %arg9[%c0_300, %c0_301, %c0_302] : memref<4x10x256xf32, #tpu.memory_space<vmem>>, vector<1x10x256xf32>
    %344 = vector.shape_cast %343 : vector<1x10x256xf32> to vector<10x256xf32>
    %345 = vector.shape_cast %342 : vector<10x256xf32> to vector<1x10x256xf32>
    tpu.vector_store %arg9[%c0_300, %c0_301, %c0_302], %345 {strides = array<i32>} : memref<4x10x256xf32, #tpu.memory_space<vmem>>, vector<1x10x256xf32>,
    %346 = vector.extract_strided_slice %341 {offsets = [0, 256], sizes = [10, 256], strides = [1, 1]} : vector<10x1024xf32> to vector<10x256xf32>
    %c1_303 = arith.constant 1 : index
    %c0_304 = arith.constant 0 : index
    %c0_305 = arith.constant 0 : index
    %347 = vector.load %arg9[%c1_303, %c0_304, %c0_305] : memref<4x10x256xf32, #tpu.memory_space<vmem>>, vector<1x10x256xf32>
    %348 = vector.shape_cast %347 : vector<1x10x256xf32> to vector<10x256xf32>
    %349 = vector.shape_cast %346 : vector<10x256xf32> to vector<1x10x256xf32>
    tpu.vector_store %arg9[%c1_303, %c0_304, %c0_305], %349 {strides = array<i32>} : memref<4x10x256xf32, #tpu.memory_space<vmem>>, vector<1x10x256xf32>,
    %350 = vector.extract_strided_slice %341 {offsets = [0, 512], sizes = [10, 256], strides = [1, 1]} : vector<10x1024xf32> to vector<10x256xf32>
    %c2_306 = arith.constant 2 : index
    %c0_307 = arith.constant 0 : index
    %c0_308 = arith.constant 0 : index
    %351 = vector.load %arg9[%c2_306, %c0_307, %c0_308] : memref<4x10x256xf32, #tpu.memory_space<vmem>>, vector<1x10x256xf32>
    %352 = vector.shape_cast %351 : vector<1x10x256xf32> to vector<10x256xf32>
    %353 = vector.shape_cast %350 : vector<10x256xf32> to vector<1x10x256xf32>
    tpu.vector_store %arg9[%c2_306, %c0_307, %c0_308], %353 {strides = array<i32>} : memref<4x10x256xf32, #tpu.memory_space<vmem>>, vector<1x10x256xf32>,
    %354 = vector.extract_strided_slice %341 {offsets = [0, 768], sizes = [10, 256], strides = [1, 1]} : vector<10x1024xf32> to vector<10x256xf32>
    %c3_309 = arith.constant 3 : index
    %c0_310 = arith.constant 0 : index
    %c0_311 = arith.constant 0 : index
    %355 = vector.load %arg9[%c3_309, %c0_310, %c0_311] : memref<4x10x256xf32, #tpu.memory_space<vmem>>, vector<1x10x256xf32>
    %356 = vector.shape_cast %355 : vector<1x10x256xf32> to vector<10x256xf32>
    %357 = vector.shape_cast %354 : vector<10x256xf32> to vector<1x10x256xf32>
    tpu.vector_store %arg9[%c3_309, %c0_310, %c0_311], %357 {strides = array<i32>} : memref<4x10x256xf32, #tpu.memory_space<vmem>>, vector<1x10x256xf32>,
    return
  }
  func.func @transform_0(%arg0: i32) -> (i32, i32, i32) {
    %c0_i32 = arith.constant 0 : i32
    %c0_i32_0 = arith.constant 0 : i32
    %c0_i32_1 = arith.constant 0 : i32
    return %arg0, %c0_i32, %c0_i32_0 : i32, i32, i32
  }
  func.func @transform_1(%arg0: i32) -> (i32, i32) {
    %c0_i32 = arith.constant 0 : i32
    %c0_i32_0 = arith.constant 0 : i32
    %c0_i32_1 = arith.constant 0 : i32
    return %c0_i32, %c0_i32_0 : i32, i32
  }
  func.func @transform_2(%arg0: i32) -> (i32, i32) {
    %c0_i32 = arith.constant 0 : i32
    %c0_i32_0 = arith.constant 0 : i32
    %c0_i32_1 = arith.constant 0 : i32
    return %c0_i32, %c0_i32_0 : i32, i32
  }
  func.func @transform_3(%arg0: i32) -> (i32, i32) {
    %c0_i32 = arith.constant 0 : i32
    %c0_i32_0 = arith.constant 0 : i32
    %c0_i32_1 = arith.constant 0 : i32
    return %c0_i32, %c0_i32_0 : i32, i32
  }
  func.func @transform_4(%arg0: i32) -> (i32, i32) {
    %c0_i32 = arith.constant 0 : i32
    %c0_i32_0 = arith.constant 0 : i32
    %c0_i32_1 = arith.constant 0 : i32
    return %c0_i32, %c0_i32_0 : i32, i32
  }
  func.func @transform_5(%arg0: i32) -> (i32, i32) {
    %c0_i32 = arith.constant 0 : i32
    %c0_i32_0 = arith.constant 0 : i32
    %c0_i32_1 = arith.constant 0 : i32
    return %c0_i32, %c0_i32_0 : i32, i32
  }
  func.func @transform_6(%arg0: i32) -> (i32, i32) {
    %c0_i32 = arith.constant 0 : i32
    %c0_i32_0 = arith.constant 0 : i32
    %c0_i32_1 = arith.constant 0 : i32
    return %c0_i32, %c0_i32_0 : i32, i32
  }
  func.func @transform_7(%arg0: i32) -> (i32, i32) {
    %c0_i32 = arith.constant 0 : i32
    %c0_i32_0 = arith.constant 0 : i32
    %c0_i32_1 = arith.constant 0 : i32
    return %c0_i32, %c0_i32_0 : i32, i32
  }
  func.func @transform_8(%arg0: i32) -> (i32, i32, i32) {
    %c0_i32 = arith.constant 0 : i32
    %c0_i32_0 = arith.constant 0 : i32
    %c0_i32_1 = arith.constant 0 : i32
    return %arg0, %c0_i32, %c0_i32_0 : i32, i32, i32
  }
}

</mosaic_0001>

<bundles_post_ra>
// kernel: patch_cnn_forward.1
= control target key start
LH: loop header
LB: loop body
LE: loop exit
PB: predicated region body
PF: predicated region fallthrough
CT: control target
= control target key end

     0   :  { %s4191_s27 = smov 0   ;;  %s6101_s0 = inlined_call_operand.vmem [shape: bf16[8,16,256], index: 0, kind: input, shape index: {}]   ;;  %s6102_s1 = inlined_call_operand.vmem [shape: bf16[9,256], index: 1, kind: input, shape index: {}]   ;;  %s6103_s2 = inlined_call_operand.vmem [shape: bf16[32,144], index: 2, kind: input, shape index: {}]   ;;  %s6104_s3 = inlined_call_operand.vmem [shape: f32[32,1], index: 3, kind: input, shape index: {}]   ;;  %s6105_s4 = inlined_call_operand.vmem [shape: bf16[32,288], index: 4, kind: input, shape index: {}]   ;;  %s6106_s5 = inlined_call_operand.vmem [shape: f32[32,1], index: 5, kind: input, shape index: {}]   ;;  %s6107_s6 = inlined_call_operand.vmem [shape: bf16[10,32], index: 6, kind: input, shape index: {}]   ;;  %s6108_s7 = inlined_call_operand.vmem [shape: f32[10,1], index: 7, kind: input, shape index: {}]   ;;  %s6109_s8 = inlined_call_operand.vmem [shape: f32[8,10,256], index: 8, kind: output, shape index: {}]  }
   0x1 LB: > { %s3911_s28 = sadd.s32 4294967295, %s4135_s27   ;;  %p3915_p0 = scmp.ge.s32.totalorder %s4135_s27, 1  ;;  %s4135_s27 = sphi %s4191_s27, %s18_s27  }
   0x2   : > { %p264_p1 = scmp.lt.s32.totalorder %s4135_s27, 3 }
   0x4   : > { %p265_p2 = pnand %p3915_p0, %p264_p1 }
   0x6   : > { %268 = sbr.rel (%p265_p2) target bundleno = 1427 (0x593), region = 52 }
   0xd   : > { %v315_v0 = vld [vmem:[%s6102_s1] sm:$0xff]  ;;  %v401_v1 = vlaneseq  ;;  %v6110_v4 = vmov 0   ;;  %s3916_s9 = sshll.u32 %s3911_s28, 2  ;;  %s4138_s10 = smov 113   ;;  %v316_v21 = vld [vmem:[%s6102_s1 + $0x8] sm:$0x11] }
   0xe   : > { %v3936_v2 = vcombine.low %v315_v0, %v315_v0  ;;  %v3937_v3 = vcombine.high %v315_v0, %v315_v0  ;;  %4056 = vset.pattern.permute.xlu0 %v6110_v4  ;;  %4057 = vset.pattern.permute.xlu1 %v6110_v4  ;;  %p301_p3 = scmp.lt.s32.totalorder %s3916_s9, 7  ;;  %s4139_s11 = smov 111   ;;  %v3938_v22 = vcombine.low %v316_v21, %v316_v21  ;;  %vm418_vm0 = vcmask 908288  }
   0xf   : > { %v402_v5 = vshrl.u32 %v401_v1, 7  ;;  %s4140_s18 = smov 127   ;;  %v3939_v26 = vcombine.high %v316_v21, %v316_v21  ;;  %s4141_s19 = smov 1   ;;  %vm595_vm1 = vcmask 924672   ;;  %vm612_vm2 = vcmask 121856  }
  0x10   : > { %v399_v6 = vpack.i.b16 %v3936_v2, %v3936_v2  ;;  %v692_v7 = vshrl.u32 %v3937_v3, 16  ;;  %v406_v10 = vpack.i.b16 %v3937_v3, %v3937_v3  ;;  %v685_v11 = vshrl.u32 %v3936_v2, 16  ;;  %s6235_s9 = smov (!%p301_p3, %s3916_s9), 7  ;;  %s4142_s20 = smov 15  }
  0x11   : > { %v583_v8 = vsub.s32 1, %v402_v5  ;;  %v403_v9 = vsub.s32 0, %v402_v5  ;;  %s3985_s12 = sshll.u32 %s6235_s9, 4  ;;  %v813_v20 = vsub.s32 2, %v402_v5  ;;  %v915_v25 = vsub.s32 3, %v402_v5  ;;  %s4143_s21 = smov 17  }
  0x12   : > { %v693_v14 = vpack.i.b16 %v692_v7, %v692_v7  ;;  %v686_v17 = vpack.i.b16 %v685_v11, %v685_v11  ;;  %s4212_s15 = scalar_lea.vmem %s6101_s0, %s3985_s12  ;;  %v1094_v27 = vpack.i.b16 %v3938_v22, %v3938_v22  ;;  %v1101_v30 = vpack.i.b16 %v3939_v26, %v3939_v26  ;;  %s4144_s22 = smov 16  }
  0x13   : > { %v584_v12 = vrot.slane %v399_v6, %v583_v8  ;;  %v404_v13 = vrot.slane %v399_v6, %v403_v9  ;;  %v588_v15 = vrot.slane %v406_v10, %v583_v8  ;;  %v411_v16 = vrot.slane %v406_v10, %v403_v9  ;;  %v4228_v33 = vld [vmem:[%s4212_s15] ss:$8 sps:$4 sm:$0xff]   ;;  %v4231_v34 = vld [vmem:[%s4212_s15 + $0x4] ss:$8 sps:$4 sm:$0xff]   ;;  %v4238_v35 = vld [vmem:[%s4212_s15 + $0x10] ss:$8 sps:$4 sm:$0xff]  }
  0x14   : > { %v698_v18 = vrot.slane %v693_v14, %v583_v8  ;;  %v691_v19 = vrot.slane %v686_v17, %v583_v8  ;;  %v818_v23 = vrot.slane %v693_v14, %v813_v20  ;;  %v814_v24 = vrot.slane %v686_v17, %v813_v20  ;;  %v4245_v36 = vld [vmem:[%s4212_s15 + $0x14] ss:$8 sps:$4 sm:$0xff]   ;;  %s4145_s23 = smov 112   ;;  %v4326_v62 = vld [vmem:[%s4212_s15 + $0x24] ss:$8 sps:$4 sm:$0xff]  }
  0x15   : > { %591 = vrot.lane.b32.xlu1 %v584_v12, %s4138_s10  ;;  %414 = vrot.lane.b32.xlu0 %v404_v13, %s4139_s11  ;;  %v920_v28 = vrot.slane %v406_v10, %v915_v25  ;;  %v916_v29 = vrot.slane %v399_v6, %v915_v25  ;;  %v1099_v31 = vrot.slane %v1094_v27, %v403_v9  ;;  %v4323_v61 = vld [vmem:[%s4212_s15 + $0x34] ss:$8 sps:$4 sm:$0xff]   ;;  %vm435_vm3 = vcmask 138240   ;;  %v4410_v22 = vld [vmem:[%s4212_s15 + $0x30] ss:$8 sps:$4 sm:$0xff]  }
  0x16   : > { %v1106_v32 = vrot.slane %v1101_v30, %v403_v9  ;;  %vm705_vm4 = vcmask 1039360   ;;  %vm722_vm5 = vcmask 7168   ;;  %vm517_vm6 = vcmask 130048  }
  0x17   : > { %vm1024_vm7 = vcmask 916480   ;;  %vm3097_vm8 = vcmask 261120  }
  0x19   : > { %593 = vrot.lane.b32.xlu1 %v588_v15, %s4138_s10  ;;  %416 = vrot.lane.b32.xlu0 %v411_v16, %s4139_s11 }
  0x1d   : > { %703 = vrot.lane.b32.xlu1 %v698_v18, %s4140_s18  ;;  %701 = vrot.lane.b32.xlu0 %v691_v19, %s4140_s18  ;;  %v4401_v19 = vld [vmem:[%s4212_s15 + $0x20] ss:$8 sps:$4 sm:$0xff]  }
  0x21   : > { %823 = vrot.lane.b32.xlu1 %v818_v23, %s4141_s19  ;;  %821 = vrot.lane.b32.xlu0 %v814_v24, %s4141_s19 }
  0x25   : > { %925 = vrot.lane.b32.xlu1 %v920_v28, %s4142_s20  ;;  %923 = vrot.lane.b32.xlu0 %v916_v29, %s4142_s20 }
  0x29   : > { %1109 = vrot.lane.b32.xlu0 %v1099_v31, %s4143_s21  ;;  %1111 = vrot.lane.b32.xlu1 %v1106_v32, %s4143_s21  ;;  %v4446_v31 = vld [vmem:[%s6103_s2 + $0x4] ss:$8 sps:$4 sm:$0xff]  }
  0x2a   : > { %3946 = vmatprep.mubr.msk.bf16.mxu1 %vm517_vm6, %v4446_v31  ;;  %3944 = vmatprep.mubr.msk.bf16.mxu0 %vm517_vm6, %v4446_v31 }
  0x2d   : > { %513 = vrot.lane.b32.xlu0 %v4228_v33, %s4144_s22  ;;  %515 = vrot.lane.b32.xlu1 %v4231_v34, %s4144_s22 }
  0x31   : > { %4037 = vrot.lane.b32.xlu0 %v6110_v4, %s4144_s22  ;;  %532 = vrot.lane.b32.xlu1 %v4238_v35, %s4144_s22 }
  0x35   : > { %534 = vrot.lane.b32.xlu0 %v4245_v36, %s4144_s22  ;;  %1020 = vrot.lane.b32.xlu1 %v4231_v34, %s4145_s23 }
  0x39   : > { %4042 = vrot.lane.b32.xlu0 %v6110_v4, %s4145_s23  ;;  %1018 = vrot.lane.b32.xlu1 %v4228_v33, %s4145_s23 }
  0x3d   : > { %1039 = vrot.lane.b32.xlu0 %v4245_v36, %s4145_s23  ;;  %1037 = vrot.lane.b32.xlu1 %v4238_v35, %s4145_s23 }
  0x87   : > { %v592_v37 = vpop.permute.xlu1 %591  ;;  %v415_v38 = vpop.permute.xlu0 %414 }
  0x88   : > { %v4259_v39 = vmul.bf16 0, %v415_v38  ;;  %v4286_v49 = vmul.bf16 0, %v592_v37 }
  0x8a   : > { %429 = vrot.lane.b32.xlu0 %v4259_v39, %s4143_s21 }
  0x8b   : > { %v4263_v40 = vpop.permute.xlu1 %593  ;;  %v4265_v41 = vpop.permute.xlu0 %416 }
  0x8c   : > { %6133 = vst [vmem:[#allocation4_spill] sm:$0xff] %v4263_v40  ;;  %v425_v42 = vmul.bf16 %v4231_v34, %v4265_v41  ;;  %v447_v43 = vmul.bf16 %v4245_v36, %v4265_v41  ;;  %v602_v46 = vmul.bf16 %v4231_v34, %v4263_v40  ;;  %v624_v53 = vmul.bf16 %v4245_v36, %v4263_v40 }
  0x8d   : > { %v489_v63 = vmul.bf16 %v4323_v61, %v4265_v41  ;;  %v468_v0 = vmul.bf16 %v4326_v62, %v4265_v41  ;;  %v4337_v1 = vsel %vm418_vm0, %v415_v38, %v4265_v41  ;;  %v4345_v3 = vsel %vm595_vm1, %v592_v37, %v4263_v40 }
  0x8e   : > { %433 = vrot.lane.b32.xlu1 %v425_v42, %s4143_s21  ;;  %455 = vrot.lane.b32.xlu0 %v447_v43, %s4143_s21  ;;  %v424_v2 = vmul.bf16 %v4228_v33, %v4337_v1  ;;  %v446_v5 = vmul.bf16 %v4238_v35, %v4337_v1  ;;  %v623_v6 = vmul.bf16 %v4238_v35, %v4345_v3 }
  0x8f   : > { %v4273_v44 = vpop.permute.xlu1 %703  ;;  %v4275_v45 = vpop.permute.xlu0 %701  ;;  %v601_v7 = vmul.bf16 %v4228_v33, %v4345_v3  ;;  %v467_v21 = vmul.bf16 %v4401_v19, %v4337_v1  ;;  %v488_v24 = vmul.bf16 %v4410_v22, %v4337_v1  ;;  %v644_v38 = vmul.bf16 %v4401_v19, %v4345_v3 }
  0x90   : > { %6134 = vst [vmem:[#allocation5_spill] sm:$0xff] %v4273_v44  ;;  %v712_v8 = vmul.bf16 %v4231_v34, %v4273_v44  ;;  %v4363_v9 = vmul.bf16 0, %v4275_v45  ;;  %v734_v11 = vmul.bf16 %v4245_v36, %v4273_v44  ;;  %v4415_v23 = vsel %vm705_vm4, %v4275_v45, %v4273_v44 }
  0x91   : > { %v733_v25 = vmul.bf16 %v4238_v35, %v4415_v23  ;;  %v711_v27 = vmul.bf16 %v4228_v33, %v4415_v23  ;;  %v645_v42 = vmul.bf16 %v4326_v62, %v4263_v40 }
  0x92   : > { %451 = vrot.lane.b32.xlu1 %v4259_v39, %s4143_s21  ;;  %610 = vrot.lane.b32.xlu0 %v602_v46, %s4142_s20  ;;  %v665_v46 = vmul.bf16 %v4410_v22, %v4345_v3 }
  0x93   : > { %v4282_v47 = vpop.permute.xlu1 %823  ;;  %v4284_v48 = vpop.permute.xlu0 %821 }
  0x94   : > { %v4370_v10 = vmul.bf16 0, %v4282_v47  ;;  %v829_v12 = vmul.bf16 %v4228_v33, %v4284_v48  ;;  %v850_v13 = vmul.bf16 %v4238_v35, %v4284_v48  ;;  %v4426_v26 = vsel %vm722_vm5, %v4284_v48, %v4282_v47 }
  0x95   : > { %v851_v28 = vmul.bf16 %v4245_v36, %v4426_v26  ;;  %v830_v29 = vmul.bf16 %v4231_v34, %v4426_v26 }
  0x96   : > { %606 = vrot.lane.b32.xlu1 %v4286_v49, %s4142_s20  ;;  %628 = vrot.lane.b32.xlu0 %v4286_v49, %s4142_s20 }
  0x97   : > { %v926_v50 = vpop.permute.xlu1 %925  ;;  %v4292_v51 = vpop.permute.xlu0 %923 }
  0x98   : > { %v4294_v52 = vmul.bf16 0, %v926_v50  ;;  %v952_v54 = vmul.bf16 %v4238_v35, %v4292_v51  ;;  %v931_v55 = vmul.bf16 %v4228_v33, %v4292_v51  ;;  %v4383_v14 = vsel %vm612_vm2, %v4292_v51, %v926_v50 }
  0x99   : > { %v953_v15 = vmul.bf16 %v4245_v36, %v4383_v14  ;;  %v932_v17 = vmul.bf16 %v4231_v34, %v4383_v14 }
  0x9a   : > { %632 = vrot.lane.b32.xlu1 %v624_v53, %s4142_s20  ;;  %941 = vrot.lane.b32.xlu0 %v4294_v52, %s4138_s10  ;;  %v666_v53 = vmul.bf16 %v4323_v61, %v4263_v40 }
  0x9b   : > { %v4305_v56 = vpop.permute.xlu0 %1109  ;;  %v1112_v58 = vpop.permute.xlu1 %1111 }
  0x9c   : > { %v1117_v57 = vmul.bf16 %v4228_v33, %v4305_v56  ;;  %v4311_v59 = vmul.bf16 0, %v1112_v58  ;;  %v1138_v60 = vmul.bf16 %v4238_v35, %v4305_v56  ;;  %v4391_v16 = vsel %vm435_vm3, %v4305_v56, %v1112_v58 }
  0x9d   : > { %v1118_v18 = vmul.bf16 %v4231_v34, %v4391_v16  ;;  %v1139_v20 = vmul.bf16 %v4245_v36, %v4391_v16 }
  0x9e   : > { %958 = vrot.lane.b32.xlu0 %v952_v54, %s4138_s10  ;;  %937 = vrot.lane.b32.xlu1 %v931_v55, %s4138_s10  ;;  %v754_v54 = vmul.bf16 %v4401_v19, %v4415_v23  ;;  %v755_v55 = vmul.bf16 %v4326_v62, %v4273_v44 }
  0x9f   : > { %v4441_v30 = vpop.permute.xlu0 %513  ;;  %v4456_v32 = vpop.permute.xlu1 %515 }
  0xa2   : > { %1123 = vrot.lane.b32.xlu0 %v1117_v57, %s4139_s11  ;;  %962 = vrot.lane.b32.xlu1 %v4294_v52, %s4138_s10 }
  0xa3   : > { %v4462_v37 = vpop.permute.xlu0 %4037  ;;  %v4470_v43 = vpop.permute.xlu1 %532 }
  0xa6   : > { %1148 = vrot.lane.b32.xlu0 %v4311_v59, %s4139_s11  ;;  %1127 = vrot.lane.b32.xlu1 %v4311_v59, %s4139_s11 }
  0xa7   : > { %v4472_v45 = vpop.permute.xlu0 %534  ;;  %v4479_v47 = vpop.permute.xlu1 %1020 }
  0xaa   : > { %472 = vrot.lane.b32.xlu0 %v4259_v39, %s4143_s21  ;;  %1144 = vrot.lane.b32.xlu1 %v1138_v60, %s4139_s11  ;;  %v775_v60 = vmul.bf16 %v4410_v22, %v4415_v23 }
  0xab   : > { %v4481_v50 = vpop.permute.xlu0 %4042  ;;  %v4492_v57 = vpop.permute.xlu1 %1018 }
  0xae   : > { %497 = vrot.lane.b32.xlu0 %v489_v63, %s4143_s21  ;;  %476 = vrot.lane.b32.xlu1 %v468_v0, %s4143_s21 }
  0xaf   : > { %v4496_v58 = vpop.permute.xlu0 %1039  ;;  %v4503_v63 = vpop.permute.xlu1 %1037 }
  0xb2   : > { %493 = vrot.lane.b32.xlu1 %v4259_v39, %s4143_s21  ;;  %431 = vrot.lane.b32.xlu0 %v424_v2, %s4143_s21  ;;  %v776_v2 = vmul.bf16 %v4323_v61, %v4273_v44 }
  0xb6   : > { %453 = vrot.lane.b32.xlu1 %v446_v5, %s4143_s21  ;;  %630 = vrot.lane.b32.xlu0 %v623_v6, %s4142_s20 }
  0xba   : > { %608 = vrot.lane.b32.xlu1 %v601_v7, %s4142_s20  ;;  %720 = vrot.lane.b32.xlu0 %v712_v8, %s4141_s19  ;;  %v872_v7 = vmul.bf16 %v4326_v62, %v4426_v26 }
  0xbe   : > { %716 = vrot.lane.b32.xlu1 %v4363_v9, %s4141_s19  ;;  %738 = vrot.lane.b32.xlu0 %v4363_v9, %s4141_s19 }
  0xc2   : > { %742 = vrot.lane.b32.xlu1 %v734_v11, %s4141_s19  ;;  %839 = vrot.lane.b32.xlu0 %v4370_v10, %s4140_s18 }
  0xc6   : > { %835 = vrot.lane.b32.xlu1 %v829_v12, %s4140_s18  ;;  %856 = vrot.lane.b32.xlu0 %v850_v13, %s4140_s18  ;;  %v871_v12 = vmul.bf16 %v4401_v19, %v4284_v48  ;;  %v893_v13 = vmul.bf16 %v4323_v61, %v4426_v26 }
  0xca   : > { %860 = vrot.lane.b32.xlu1 %v4370_v10, %s4140_s18  ;;  %960 = vrot.lane.b32.xlu0 %v953_v15, %s4138_s10 }
  0xce   : > { %939 = vrot.lane.b32.xlu1 %v932_v17, %s4138_s10  ;;  %1125 = vrot.lane.b32.xlu0 %v1118_v18, %s4139_s11  ;;  %v892_v18 = vmul.bf16 %v4410_v22, %v4284_v48 }
  0xd2   : > { %1146 = vrot.lane.b32.xlu1 %v1139_v20, %s4139_s11  ;;  %474 = vrot.lane.b32.xlu0 %v467_v21, %s4143_s21 }
  0xd6   : > { %495 = vrot.lane.b32.xlu1 %v488_v24, %s4143_s21  ;;  %740 = vrot.lane.b32.xlu0 %v733_v25, %s4141_s19  ;;  %v974_v24 = vmul.bf16 %v4326_v62, %v4383_v14 }
  0xda   : > { %718 = vrot.lane.b32.xlu1 %v711_v27, %s4141_s19  ;;  %858 = vrot.lane.b32.xlu0 %v851_v28, %s4140_s18  ;;  %v973_v28 = vmul.bf16 %v4401_v19, %v4292_v51 }
  0xde   : > { %837 = vrot.lane.b32.xlu1 %v830_v29, %s4140_s18  ;;  %550 = vrot.lane.b32.xlu0 %v4401_v19, %s4144_s22  ;;  %v995_v29 = vmul.bf16 %v4323_v61, %v4383_v14 }
  0xe2   : > { %552 = vrot.lane.b32.xlu1 %v4326_v62, %s4144_s22  ;;  %4047 = vrot.lane.b32.xlu0 %v6110_v4, %s4144_s22 }
  0xe6   : > { %568 = vrot.lane.b32.xlu1 %v4410_v22, %s4144_s22  ;;  %570 = vrot.lane.b32.xlu0 %v4323_v61, %s4144_s22 }
  0xea   : > { %651 = vrot.lane.b32.xlu1 %v644_v38, %s4142_s20  ;;  %653 = vrot.lane.b32.xlu0 %v645_v42, %s4142_s20 }
  0xee   : > { %649 = vrot.lane.b32.xlu1 %v4286_v49, %s4142_s20  ;;  %672 = vrot.lane.b32.xlu0 %v665_v46, %s4142_s20  ;;  %v994_v46 = vmul.bf16 %v4410_v22, %v4292_v51 }
  0xf2   : > { %674 = vrot.lane.b32.xlu1 %v666_v53, %s4142_s20  ;;  %670 = vrot.lane.b32.xlu0 %v4286_v49, %s4142_s20 }
  0xf6   : > { %761 = vrot.lane.b32.xlu1 %v754_v54, %s4141_s19  ;;  %763 = vrot.lane.b32.xlu0 %v755_v55, %s4141_s19 }
  0xfa   : > { %759 = vrot.lane.b32.xlu1 %v4363_v9, %s4141_s19  ;;  %782 = vrot.lane.b32.xlu0 %v775_v60, %s4141_s19 }
  0xfc   : > { %v430_v0 = vpop.permute.xlu0 %429 }
  0xfe   : > { %784 = vrot.lane.b32.xlu1 %v776_v2, %s4141_s19  ;;  %780 = vrot.lane.b32.xlu0 %v4363_v9, %s4141_s19 }
 0x100   : > { %v434_v5 = vpop.permute.xlu1 %433  ;;  %v456_v6 = vpop.permute.xlu0 %455 }
 0x102   : > { %879 = vrot.lane.b32.xlu1 %v872_v7, %s4140_s18  ;;  %881 = vrot.lane.b32.xlu0 %v4370_v10, %s4140_s18 }
 0x104   : > { %v452_v8 = vpop.permute.xlu1 %451  ;;  %v4515_v11 = vpop.permute.xlu0 %610 }
 0x106   : > { %877 = vrot.lane.b32.xlu1 %v871_v12, %s4140_s18  ;;  %900 = vrot.lane.b32.xlu0 %v893_v13, %s4140_s18  ;;  %v1160_v12 = vmul.bf16 %v4326_v62, %v4391_v16 }
 0x108   : > { %v4523_v15 = vpop.permute.xlu1 %606  ;;  %v4525_v17 = vpop.permute.xlu0 %628 }
 0x10a   : > { %902 = vrot.lane.b32.xlu1 %v4370_v10, %s4140_s18  ;;  %898 = vrot.lane.b32.xlu0 %v892_v18, %s4140_s18 }
 0x10c   : > { %v4532_v20 = vpop.permute.xlu1 %632  ;;  %v4534_v21 = vpop.permute.xlu0 %941 }
 0x10e   : > { %981 = vrot.lane.b32.xlu1 %v974_v24, %s4138_s10  ;;  %983 = vrot.lane.b32.xlu0 %v4294_v52, %s4138_s10  ;;  %v1159_v24 = vmul.bf16 %v4401_v19, %v4305_v56 }
 0x110   : > { %v4541_v25 = vpop.permute.xlu0 %958  ;;  %v4543_v27 = vpop.permute.xlu1 %937 }
 0x112   : > { %979 = vrot.lane.b32.xlu1 %v973_v28, %s4138_s10  ;;  %1002 = vrot.lane.b32.xlu0 %v995_v29, %s4138_s10 }
 0x114   : > { %v4551_v38 = vpop.permute.xlu0 %1123  ;;  %v4553_v42 = vpop.permute.xlu1 %962 }
 0x116   : > { %1004 = vrot.lane.b32.xlu1 %v4294_v52, %s4138_s10  ;;  %1000 = vrot.lane.b32.xlu0 %v994_v46, %s4138_s10  ;;  %v4039_v46 = vunpack.i.l.bf16 %v4462_v37 }
 0x118   : > { %v4560_v53 = vpop.permute.xlu0 %1148  ;;  %v4562_v54 = vpop.permute.xlu1 %1127 }
 0x11a   : > { %1057 = vrot.lane.b32.xlu1 %v4326_v62, %s4145_s23  ;;  %4052 = vrot.lane.b32.xlu0 %v6110_v4, %s4145_s23  ;;  %v519_v4 = vsel %vm517_vm6, %v4441_v30, %v4456_v32  ;;  %v518_v32 = vsel %vm517_vm6, %v4039_v46, %v4441_v30 }
 0x11c   : > { %v4568_v55 = vpop.permute.xlu0 %472  ;;  %v4570_v60 = vpop.permute.xlu1 %1144 }
 0x11e   : > { %1055 = vrot.lane.b32.xlu1 %v4401_v19, %s4145_s23  ;;  %1075 = vrot.lane.b32.xlu0 %v4323_v61, %s4145_s23 }
 0x120   : > { %v4576_v2 = vpop.permute.xlu0 %497  ;;  %v4578_v7 = vpop.permute.xlu1 %476 }
 0x122   : > { %1073 = vrot.lane.b32.xlu1 %v4410_v22, %s4145_s23  ;;  %1167 = vrot.lane.b32.xlu0 %v1160_v12, %s4139_s11 }
 0x124   : > { %v4585_v13 = vpop.permute.xlu1 %493  ;;  %v432_v18 = vpop.permute.xlu0 %431 }
 0x125   : > { %v437_v28 = vsel %vm435_vm3, %v432_v18, %v434_v5  ;;  %v436_v29 = vsel %vm435_vm3, %v430_v0, %v432_v18  ;;  %v1181_v5 = vmul.bf16 %v4323_v61, %v4391_v16 }
 0x126   : > { %1169 = vrot.lane.b32.xlu1 %v4311_v59, %s4139_s11  ;;  %1165 = vrot.lane.b32.xlu0 %v1159_v24, %s4139_s11  ;;  %v4040_v24 = vunpack.i.h.bf16 %v4462_v37  ;;  %v1180_v37 = vmul.bf16 %v4410_v22, %v4305_v56 }
 0x127   : > { %1319 = vmatprep.subr.bf16.mxu0 %v437_v28  ;;  %v386_v28 = vld [vmem:[%s6104_s3] sm:$0xff] }
 0x128   : > { %1320 = vmatpush1.bf16.msra.mxu0 %v436_v29  ;;  %v454_v12 = vpop.permute.xlu1 %453  ;;  %v631_v44 = vpop.permute.xlu0 %630 }
 0x129   : > { %1321 = vmatprep.subr.bf16.mxu0 %v519_v4  ;;  %v458_v0 = vsel %vm435_vm3, %v454_v12, %v456_v6  ;;  %v457_v18 = vsel %vm435_vm3, %v452_v8, %v454_v12  ;;  %v537_v4 = vsel %vm517_vm6, %v4470_v43, %v4472_v45  ;;  %v536_v45 = vsel %vm517_vm6, %v4040_v24, %v4470_v43  ;;  %v387_v12 = vld [vmem:[%s6104_s3 + $0x8] sm:$0xff] }
 0x12a   : > { %1372 = vmatprep.subr.bf16.mxu1 %v458_v0  ;;  %1188 = vrot.lane.b32.xlu1 %v1181_v5, %s4139_s11  ;;  %v635_v46 = vsel %vm612_vm2, %v631_v44, %v4532_v20  ;;  %v634_v43 = vsel %vm612_vm2, %v4525_v17, %v631_v44  ;;  %v388_v20 = vld [vmem:[%s6104_s3 + $0x10] sm:$0xff] }
 0x12b   : > { %1190 = vrot.lane.b32.xlu0 %v4311_v59, %s4139_s11  ;;  %1373 = vmatpush1.bf16.msra.mxu1 %v457_v18 }
 0x12c   : > { %1322 = vmatpush1.bf16.msra.mxu0 %v518_v32  ;;  %1374 = vmatprep.subr.bf16.mxu1 %v537_v4  ;;  %v609_v6 = vpop.permute.xlu1 %608  ;;  %v721_v8 = vpop.permute.xlu0 %720 }
 0x12d   : > { %v614_v29 = vsel %vm612_vm2, %v609_v6, %v4515_v11  ;;  %v613_v30 = vsel %vm612_vm2, %v4523_v15, %v609_v6  ;;  %v389_v15 = vld [vmem:[%s6104_s3 + $0x18] sm:$0xff] }
 0x12e   : > { %1186 = vrot.lane.b32.xlu1 %v1180_v37, %s4139_s11  ;;  %1323 = vmatprep.subr.bf16.mxu0 %v614_v29  ;;  %v6135_v29 = vmov 0  }
 0x12f   : > { %1276 = vperm.xlu0 %4056, %v386_v28   ;;  %1375 = vmatpush1.bf16.msra.mxu1 %v536_v45 }
 0x130   : > { %1324 = vmatpush1.bf16.msra.mxu0 %v613_v30  ;;  %v717_v11 = vpop.permute.xlu1 %716  ;;  %1376 = vmatprep.subr.bf16.mxu1 %v635_v46  ;;  %v739_v5 = vpop.permute.xlu0 %738 }
 0x132   : > { %1281 = vperm.xlu1 %4057, %v387_v12  }
 0x133   : > { %1291 = vperm.xlu0 %4056, %v389_v15   ;;  %1377 = vmatpush1.bf16.msra.mxu1 %v634_v43 }
 0x134   : > { %v743_v0 = vpop.permute.xlu1 %742  ;;  %v840_v18 = vpop.permute.xlu0 %839 }
 0x136   : > { %1286 = vperm.xlu1 %4057, %v388_v20  }
 0x137   : > { %2369 = vrot.lane.b32.xlu0 %v4370_v10, %s4140_s18 }
 0x138   : > { %v836_v24 = vpop.permute.xlu1 %835  ;;  %v857_v32 = vpop.permute.xlu0 %856 }
 0x13a   : > { %2411 = vrot.lane.b32.xlu1 %v4370_v10, %s4140_s18 }
 0x13b   : > { %2375 = vrot.lane.b32.xlu0 %v4370_v10, %s4140_s18 }
 0x13c   : > { %v861_v44 = vpop.permute.xlu1 %860  ;;  %v961_v17 = vpop.permute.xlu0 %960 }
 0x13e   : > { %2417 = vrot.lane.b32.xlu1 %v4370_v10, %s4140_s18 }
 0x13f   : > { %2537 = vrot.lane.b32.xlu0 %v4294_v52, %s4138_s10 }
 0x140   : > { %v940_v4 = vpop.permute.xlu1 %939  ;;  %v4646_v6 = vpop.permute.xlu0 %1125 }
 0x142   : > { %2579 = vrot.lane.b32.xlu1 %v4294_v52, %s4138_s10 }
 0x143   : > { %2543 = vrot.lane.b32.xlu0 %v4294_v52, %s4138_s10 }
 0x144   : > { %v4652_v37 = vpop.permute.xlu1 %1146  ;;  %v4654_v28 = vpop.permute.xlu0 %474 }
 0x146   : > { %2585 = vrot.lane.b32.xlu1 %v4294_v52, %s4138_s10 }
 0x147   : > { %4059 = vrot.lane.b32.xlu0 %v6135_v29, %s4145_s23 }
 0x148   : > { %v4660_v30 = vpop.permute.xlu1 %495  ;;  %v741_v45 = vpop.permute.xlu0 %740 }
 0x149   : > { %v745_v46 = vsel %vm722_vm5, %v741_v45, %v743_v0  ;;  %v744_v12 = vsel %vm722_vm5, %v739_v5, %v741_v45 }
 0x14a   : > { %4064 = vrot.lane.b32.xlu1 %v6135_v29, %s4145_s23  ;;  %1378 = vmatprep.subr.bf16.mxu1 %v745_v46 }
 0x14b   : > { %2849 = vrot.lane.b32.xlu0 %v4311_v59, %s4139_s11  ;;  %1379 = vmatpush1.bf16.msra.mxu1 %v744_v12 }
 0x14c   : > { %v719_v15 = vpop.permute.xlu1 %718  ;;  %v859_v43 = vpop.permute.xlu0 %858  ;;  %1380 = vmatprep.subr.bf16.mxu1 %v4245_v36 }
 0x14d   : > { %v724_v20 = vsel %vm722_vm5, %v719_v15, %v721_v8  ;;  %v723_v40 = vsel %vm722_vm5, %v717_v11, %v719_v15  ;;  %v863_v0 = vsel %vm705_vm4, %v859_v43, %v861_v44  ;;  %v862_v36 = vsel %vm705_vm4, %v857_v32, %v859_v43 }
 0x14e   : > { %2891 = vrot.lane.b32.xlu1 %v4311_v59, %s4139_s11  ;;  %1325 = vmatprep.subr.bf16.mxu0 %v724_v20  ;;  %v4044_v32 = vunpack.i.l.bf16 %v4481_v50  ;;  %v479_v43 = vsel %vm435_vm3, %v4654_v28, %v4578_v7  ;;  %v478_v7 = vsel %vm435_vm3, %v4568_v55, %v4654_v28 }
 0x14f   : > { %2855 = vrot.lane.b32.xlu0 %v4311_v59, %s4139_s11  ;;  %1326 = vmatpush1.bf16.msra.mxu0 %v723_v40  ;;  %v4045_v40 = vunpack.i.h.bf16 %v4481_v50  ;;  %v943_v50 = vsel %vm595_vm1, %v4543_v27, %v940_v4 }
 0x150   : > { %1381 = vmatpush1.bf16.msra.mxu1 %v4238_v35  ;;  %v838_v5 = vpop.permute.xlu1 %837  ;;  %v4677_v45 = vpop.permute.xlu0 %550  ;;  %1327 = vmatprep.subr.bf16.mxu0 %v4231_v34  ;;  %v965_v34 = vsel %vm595_vm1, %v961_v17, %v4553_v42  ;;  %v944_v42 = vsel %vm595_vm1, %v940_v4, %v4534_v21  ;;  %v1043_v21 = vsel %vm1024_vm7, %v4503_v63, %v4496_v58  ;;  %v4738_v4 = vld [vmem:[%s6103_s2] ss:$8 sps:$4 sm:$0xff]  }
 0x151   : > { %1382 = vmatprep.subr.bf16.mxu1 %v863_v0  ;;  %v842_v35 = vsel %vm705_vm4, %v838_v5, %v840_v18  ;;  %v964_v18 = vsel %vm595_vm1, %v4541_v25, %v961_v17  ;;  %v1044_v46 = vsel %vm1024_vm7, %v4496_v58, %v4045_v40  ;;  %v1026_v25 = vsel %vm1024_vm7, %v4479_v47, %v4044_v32 }
 0x152   : > { %2897 = vrot.lane.b32.xlu1 %v4311_v59, %s4139_s11  ;;  %v1025_v58 = vsel %vm1024_vm7, %v4492_v57, %v4479_v47  ;;  %v1150_v63 = vsel %vm418_vm0, %v4570_v60, %v4652_v37  ;;  %v500_v47 = vsel %vm435_vm3, %v4660_v30, %v4576_v2  ;;  %v4750_v60 = vld [vmem:[%s6103_s2 + $0x14] ss:$8 sps:$4 sm:$0xff]   ;;  %v1129_v2 = vsel %vm418_vm0, %v4551_v38, %v4646_v6 }
 0x153   : > { %2453 = vrot.lane.b32.xlu0 %v4370_v10, %s4140_s18  ;;  %1328 = vmatpush1.bf16.msra.mxu0 %v4228_v33  ;;  %v841_v33 = vsel %vm705_vm4, %v836_v24, %v838_v5 }
 0x154   : > { %1383 = vmatpush1.bf16.msra.mxu1 %v862_v36  ;;  %v4688_v8 = vpop.permute.xlu1 %552  ;;  %1329 = vmatprep.subr.bf16.mxu0 %v842_v35  ;;  %v4692_v11 = vpop.permute.xlu0 %4047 }
 0x155   : > { %1384 = vmatprep.subr.bf16.mxu1 %v965_v34  ;;  %v4050_v15 = vunpack.i.h.bf16 %v4692_v11  ;;  %v4049_v5 = vunpack.i.l.bf16 %v4692_v11  ;;  %v555_v38 = vsel %vm517_vm6, %v4677_v45, %v4688_v8 }
 0x156   : > { %2495 = vrot.lane.b32.xlu1 %v4370_v10, %s4140_s18 }
 0x157   : > { %2459 = vrot.lane.b32.xlu0 %v4370_v10, %s4140_s18  ;;  %1330 = vmatpush1.bf16.msra.mxu0 %v841_v33  ;;  %v554_v35 = vsel %vm517_vm6, %v4049_v5, %v4677_v45 }
 0x158   : > { %1385 = vmatpush1.bf16.msra.mxu1 %v964_v18  ;;  %v569_v44 = vpop.permute.xlu1 %568  ;;  %1331 = vmatprep.subr.bf16.mxu0 %v944_v42  ;;  %v571_v24 = vpop.permute.xlu0 %570 }
 0x159   : > { %1386 = vmatprep.subr.bf16.mxu1 %v1044_v46  ;;  %v572_v0 = vsel %vm517_vm6, %v4050_v15, %v569_v44 }
 0x15a   : > { %2501 = vrot.lane.b32.xlu1 %v4370_v10, %s4140_s18  ;;  %v1151_v10 = vsel %vm418_vm0, %v4652_v37, %v4560_v53  ;;  %v1130_v53 = vsel %vm418_vm0, %v4646_v6, %v4562_v54  ;;  %v573_v54 = vsel %vm517_vm6, %v569_v44, %v571_v24 }
 0x15b   : > { %2621 = vrot.lane.b32.xlu0 %v4294_v52, %s4138_s10  ;;  %1332 = vmatpush1.bf16.msra.mxu0 %v943_v50 }
 0x15c   : > { %1387 = vmatpush1.bf16.msra.mxu1 %v1043_v21  ;;  %v4717_v17 = vpop.permute.xlu1 %651  ;;  %1333 = vmatprep.subr.bf16.mxu0 %v1026_v25  ;;  %v654_v27 = vpop.permute.xlu0 %653 }
 0x15d   : > { %1388 = vmatprep.subr.bf16.mxu1 %v1151_v10  ;;  %v656_v45 = vsel %vm612_vm2, %v4717_v17, %v654_v27 }
 0x15e   : > { %2663 = vrot.lane.b32.xlu1 %v4294_v52, %s4138_s10 }
 0x15f   : > { %2627 = vrot.lane.b32.xlu0 %v4294_v52, %s4138_s10  ;;  %1334 = vmatpush1.bf16.msra.mxu0 %v1025_v58 }
 0x160   : > { %1389 = vmatpush1.bf16.msra.mxu1 %v1150_v63  ;;  %v650_v12 = vpop.permute.xlu1 %649  ;;  %1335 = vmatprep.subr.bf16.mxu0 %v1130_v53  ;;  %v673_v57 = vpop.permute.xlu0 %672 }
 0x161   : > { %1478 = vmatprep.subr.bf16.mxu1 %v500_v47  ;;  %v655_v8 = vsel %vm612_vm2, %v650_v12, %v4717_v17 }
 0x162   : > { %2669 = vrot.lane.b32.xlu1 %v4294_v52, %s4138_s10  ;;  %v499_v52 = vsel %vm435_vm3, %v4585_v13, %v4660_v30  ;;  %v4782_v13 = vld [vmem:[%s6103_s2 + $0x10] ss:$8 sps:$4 sm:$0xff]  }
 0x163   : > { %4069 = vrot.lane.b32.xlu0 %v6135_v29, %s4145_s23  ;;  %1405 = vmatmul.mubr.bf16.vlgmr.msra.gmra.mrb[0].mxu1 %v4738_v4 }
 0x164   : > { %1336 = vmatpush1.bf16.msra.mxu0 %v1129_v2  ;;  %1479 = vmatpush1.bf16.msra.mxu1 %v499_v52  ;;  %v675_v37 = vpop.permute.xlu1 %674  ;;  %v671_v20 = vpop.permute.xlu0 %670 }
 0x165   : > { %1425 = vmatprep.subr.bf16.mxu0 %v479_v43  ;;  %1480 = vmatprep.subr.bf16.mxu1 %v573_v54  ;;  %v677_v36 = vsel %vm612_vm2, %v673_v57, %v675_v37  ;;  %v676_v55 = vsel %vm612_vm2, %v671_v20, %v673_v57 }
 0x166   : > { %4074 = vrot.lane.b32.xlu1 %v6135_v29, %s4145_s23  ;;  %3947 = vmatprep.mubr.msk.bf16.mxu1 %vm517_vm6, %v4750_v60 }
 0x167   : > { %2933 = vrot.lane.b32.xlu0 %v4311_v59, %s4139_s11  ;;  %1352 = vmatmul.mubr.bf16.vlgmr.msra.gmra.mrb[0].mxu0 %v4738_v4 }
 0x168   : > { %1426 = vmatpush1.bf16.msra.mxu0 %v478_v7  ;;  %1481 = vmatpush1.bf16.msra.mxu1 %v572_v0  ;;  %v762_v6 = vpop.permute.xlu1 %761  ;;  %v764_v30 = vpop.permute.xlu0 %763 }
 0x169   : > { %1482 = vmatprep.subr.bf16.mxu1 %v677_v36  ;;  %1427 = vmatprep.subr.bf16.mxu0 %v555_v38  ;;  %v766_v33 = vsel %vm722_vm5, %v762_v6, %v764_v30 }
 0x16a   : > { %2975 = vrot.lane.b32.xlu1 %v4311_v59, %s4139_s11  ;;  %3945 = vmatprep.mubr.msk.bf16.mxu0 %vm517_vm6, %v4750_v60 }
 0x16b   : > { %2939 = vrot.lane.b32.xlu0 %v4311_v59, %s4139_s11  ;;  %1415 = vmatmul.mubr.bf16.gmra.mrb[4].mxu1 %v4782_v13 }
 0x16c   : > { %1428 = vmatpush1.bf16.msra.mxu0 %v554_v35  ;;  %1483 = vmatpush1.bf16.msra.mxu1 %v676_v55  ;;  %v760_v28 = vpop.permute.xlu1 %759  ;;  %v783_v40 = vpop.permute.xlu0 %782 }
 0x16d   : > { %1429 = vmatprep.subr.bf16.mxu0 %v656_v45  ;;  %3950 = vmatprep.mubr.msk.bf16.mxu1 %vm517_vm6, %v4446_v31  ;;  %v765_v18 = vsel %vm722_vm5, %v760_v28, %v762_v6 }
 0x16e   : > { %2981 = vrot.lane.b32.xlu1 %v4311_v59, %s4139_s11 }
 0x16f   : > { %1659 = vrot.lane.b32.xlu0 %v4259_v39, %s4143_s21  ;;  %1362 = vmatmul.mubr.bf16.gmra.mrb[4].mxu0 %v4782_v13 }
 0x170   : > { %1430 = vmatpush1.bf16.msra.mxu0 %v655_v8  ;;  %v785_v34 = vpop.permute.xlu1 %784  ;;  %v781_v11 = vpop.permute.xlu0 %780  ;;  %3948 = vmatprep.mubr.msk.bf16.mxu0 %vm517_vm6, %v4446_v31 }
 0x171   : > { %v786_v32 = vsel %vm722_vm5, %v781_v11, %v783_v40  ;;  %1431 = vmatprep.subr.bf16.mxu0 %v766_v33  ;;  %v787_v59 = vsel %vm722_vm5, %v783_v40, %v785_v34 }
 0x172   : > { %1617 = vrot.lane.b32.xlu1 %v4259_v39, %s4143_s21  ;;  %1484 = vmatprep.subr.bf16.mxu1 %v787_v59 }
 0x173   : > { %1665 = vrot.lane.b32.xlu0 %v4259_v39, %s4143_s21  ;;  %1485 = vmatpush1.bf16.msra.mxu1 %v786_v32 }
 0x174   : > { %1432 = vmatpush1.bf16.msra.mxu0 %v765_v18  ;;  %v880_v42 = vpop.permute.xlu1 %879  ;;  %v882_v44 = vpop.permute.xlu0 %881  ;;  %1486 = vmatprep.subr.bf16.mxu1 %v4323_v61 }
 0x175   : > { %1433 = vmatprep.subr.bf16.mxu0 %v4326_v62  ;;  %v884_v24 = vsel %vm705_vm4, %v880_v42, %v882_v44 }
 0x176   : > { %1623 = vrot.lane.b32.xlu1 %v4259_v39, %s4143_s21 }
 0x177   : > { %4084 = vrot.lane.b32.xlu0 %v6135_v29, %s4144_s22  ;;  %1487 = vmatpush1.bf16.msra.mxu1 %v4410_v22 }
 0x178   : > { %1434 = vmatpush1.bf16.msra.mxu0 %v4401_v19  ;;  %v878_v31 = vpop.permute.xlu1 %877  ;;  %v901_v46 = vpop.permute.xlu0 %900 }
 0x179   : > { %v883_v50 = vsel %vm705_vm4, %v878_v31, %v880_v42  ;;  %1435 = vmatprep.subr.bf16.mxu0 %v884_v24 }
 0x17a   : > { %4079 = vrot.lane.b32.xlu1 %v6135_v29, %s4144_s22 }
 0x17b   : > { %1971 = vrot.lane.b32.xlu0 %v4286_v49, %s4142_s20 }
 0x17c   : > { %1436 = vmatpush1.bf16.msra.mxu0 %v883_v50  ;;  %v903_v61 = vpop.permute.xlu1 %902  ;;  %v899_v62 = vpop.permute.xlu0 %898 }
 0x17d   : > { %v904_v22 = vsel %vm705_vm4, %v899_v62, %v901_v46  ;;  %v905_v19 = vsel %vm705_vm4, %v901_v46, %v903_v61 }
 0x17e   : > { %1929 = vrot.lane.b32.xlu1 %v4286_v49, %s4142_s20  ;;  %1488 = vmatprep.subr.bf16.mxu1 %v905_v19 }
 0x17f   : > { %1977 = vrot.lane.b32.xlu0 %v4286_v49, %s4142_s20  ;;  %1489 = vmatpush1.bf16.msra.mxu1 %v904_v22 }
 0x180   : > { %v982_v21 = vpop.permute.xlu1 %981  ;;  %v984_v25 = vpop.permute.xlu0 %983 }
 0x181   : > { %v986_v17 = vsel %vm595_vm1, %v982_v21, %v984_v25 }
 0x182   : > { %1935 = vrot.lane.b32.xlu1 %v4286_v49, %s4142_s20  ;;  %1437 = vmatprep.subr.bf16.mxu0 %v986_v17 }
 0x183   : > { %2139 = vrot.lane.b32.xlu0 %v4363_v9, %s4141_s19 }
 0x184   : > { %v980_v10 = vpop.permute.xlu1 %979  ;;  %v1003_v27 = vpop.permute.xlu0 %1002 }
 0x185   : > { %v985_v58 = vsel %vm595_vm1, %v980_v10, %v982_v21 }
 0x186   : > { %2097 = vrot.lane.b32.xlu1 %v4363_v9, %s4141_s19  ;;  %1438 = vmatpush1.bf16.msra.mxu0 %v985_v58 }
 0x187   : > { %2145 = vrot.lane.b32.xlu0 %v4363_v9, %s4141_s19 }
 0x188   : > { %v1005_v63 = vpop.permute.xlu1 %1004  ;;  %v1001_v53 = vpop.permute.xlu0 %1000 }
 0x189   : > { %v1006_v12 = vsel %vm595_vm1, %v1001_v53, %v1003_v27  ;;  %v1007_v47 = vsel %vm595_vm1, %v1003_v27, %v1005_v63 }
 0x18a   : > { %2103 = vrot.lane.b32.xlu1 %v4363_v9, %s4141_s19  ;;  %1490 = vmatprep.subr.bf16.mxu1 %v1007_v47 }
 0x18b   : > { %1491 = vmatpush1.bf16.msra.mxu1 %v1006_v12 }
 0x18c   : > { %v1058_v57 = vpop.permute.xlu1 %1057  ;;  %v4053_v15 = vpop.permute.xlu0 %4052 }
 0x18d   : > { %v4055_v54 = vunpack.i.h.bf16 %v4053_v15  ;;  %v4054_v2 = vunpack.i.l.bf16 %v4053_v15 }
 0x18e   : > { %1701 = vrot.lane.b32.xlu1 %v4259_v39, %s4143_s21 }
 0x18f   : > { %v1062_v52 = vsel %vm1024_vm7, %v1058_v57, %v4054_v2 }
 0x190   : > { %v1056_v37 = vpop.permute.xlu1 %1055  ;;  %v1076_v43 = vpop.permute.xlu0 %1075  ;;  %1439 = vmatprep.subr.bf16.mxu0 %v1062_v52 }
 0x191   : > { %v1061_v20 = vsel %vm1024_vm7, %v1056_v37, %v1058_v57  ;;  %v1080_v5 = vsel %vm1024_vm7, %v1076_v43, %v4055_v54 }
 0x192   : > { %1440 = vmatpush1.bf16.msra.mxu0 %v1061_v20  ;;  %1492 = vmatprep.subr.bf16.mxu1 %v1080_v5 }
 0x194   : > { %v1074_v0 = vpop.permute.xlu1 %1073  ;;  %v1168_v38 = vpop.permute.xlu0 %1167 }
 0x195   : > { %v1079_v7 = vsel %vm1024_vm7, %v1074_v0, %v1076_v43 }
 0x196   : > { %1493 = vmatpush1.bf16.msra.mxu1 %v1079_v7 }
 0x198   : > { %v1170_v6 = vpop.permute.xlu1 %1169  ;;  %v1166_v30 = vpop.permute.xlu0 %1165 }
 0x199   : > { %v1171_v36 = vsel %vm418_vm0, %v1166_v30, %v1168_v38  ;;  %v1172_v35 = vsel %vm418_vm0, %v1168_v38, %v1170_v6 }
 0x19a   : > { %1441 = vmatprep.subr.bf16.mxu0 %v1172_v35 }
 0x19b   : > { %1442 = vmatpush1.bf16.msra.mxu0 %v1171_v36 }
 0x19c   : > { %v1189_v55 = vpop.permute.xlu1 %1188 }
 0x19d   : > { %v1191_v28 = vpop.permute.xlu0 %1190 }
 0x19e   : > { %1458 = vmatmul.mubr.bf16.vlgmr.msra.gmra.mrb[8].mxu0 %v4738_v4  ;;  %v1193_v40 = vsel %vm418_vm0, %v1189_v55, %v1191_v28 }
 0x19f   : > { %1494 = vmatprep.subr.bf16.mxu1 %v1193_v40  ;;  %3949 = vmatprep.mubr.msk.bf16.mxu0 %vm517_vm6, %v4750_v60 }
 0x1a0   : > { %v1187_v45 = vpop.permute.xlu1 %1186 }
 0x1a1   : > { %v1192_v8 = vsel %vm418_vm0, %v1187_v45, %v1189_v55 }
 0x1a2   : > { %1495 = vmatpush1.bf16.msra.mxu1 %v1192_v8 }
 0x1a5   : > { %1511 = vmatmul.mubr.bf16.vlgmr.msra.gmra.mrb[8].mxu1 %v4738_v4 }
 0x1a6   : > { %1468 = vmatmul.mubr.bf16.gmra.mrb[12].mxu0 %v4782_v13  ;;  %3951 = vmatprep.mubr.msk.bf16.mxu1 %vm517_vm6, %v4750_v60 }
 0x1ad   : > { %1521 = vmatmul.mubr.bf16.gmra.mrb[12].mxu1 %v4782_v13 }
 0x1ae   : > { %v4870_v11 = vpop.permute.xlu0 %1276 }
 0x1b1   : > { %v4868_v34 = vpop.permute.xlu1 %1281 }
 0x1b2   : > { %v4874_v32 = vpop.permute.xlu0 %1291 }
 0x1b5   : > { %v4872_v33 = vpop.permute.xlu1 %1286 }
 0x1b6   : > { %v4878_v18 = vpop.permute.xlu0 %2369 }
 0x1b9   : > { %v4876_v59 = vpop.permute.xlu1 %2411 }
 0x1ba   : > { %v4886_v22 = vpop.permute.xlu0 %2375 }
 0x1bd   : > { %v4880_v4 = vpop.permute.xlu1 %2417 }
 0x1be   : > { %v4903_v7 = vpop.permute.xlu0 %2537 }
 0x1c1   : > { %v4889_v17 = vpop.permute.xlu1 %2579 }
 0x1c5   : > { %v4909_v35 = vpop.permute.xlu1 %2585 }
 0x236   : > { %v1406_v42 = vpop.f32.mrb[0].mxu1 }
 0x237   : > { %v1407_v44 = vadd.f32 %v1406_v42, %v4870_v11  ;;  %v1408_v60 = vpop.f32.mrb[1].mxu1 }
 0x238   : > { %v1409_v13 = vadd.f32 %v1408_v60, %v4870_v11  ;;  %v1410_v31 = vpop.f32.mrb[2].mxu1 }
 0x239   : > { %v1533_v46 = vmax.f32 %v1407_v44, 0.0  ;;  %v1411_v24 = vadd.f32 %v1410_v31, %v4868_v34  ;;  %v1412_v50 = vpop.f32.mrb[3].mxu1 }
 0x23a   : > { %v1413_v61 = vadd.f32 %v1412_v50, %v4868_v34  ;;  %v1353_v62 = vpop.f32.mrb[0].mxu0  ;;  %v1534_v10 = vmax.f32 %v1409_v13, 0.0 }
 0x23b   : > { %v1541_v19 = vmax.f32 %v1411_v24, 0.0  ;;  %v1354_v21 = vadd.f32 %v1353_v62, %v4870_v11  ;;  %v1355_v25 = vpop.f32.mrb[1].mxu0 }
 0x23c   : > { %v1542_v27 = vmax.f32 %v1413_v61, 0.0  ;;  %v1356_v58 = vadd.f32 %v1355_v25, %v4870_v11  ;;  %v1357_v63 = vpop.f32.mrb[2].mxu0 }
 0x23d   : > { %v4892_v53 = vpack.c.bf16 %v1541_v19, %v1533_v46  ;;  %v1358_v12 = vadd.f32 %v1357_v63, %v4868_v34  ;;  %v1359_v47 = vpop.f32.mrb[3].mxu0  ;;  %v1531_v2 = vmax.f32 %v1354_v21, 0.0  ;;  %v4928_v21 = vpop.permute.xlu0 %2543 }
 0x23e   : > { %v4895_v57 = vpack.c.bf16 %v1542_v27, %v1534_v10  ;;  %v1360_v15 = vadd.f32 %v1359_v47, %v4868_v34  ;;  %v1416_v54 = vpop.f32.mrb[4].mxu1  ;;  %v1532_v20 = vmax.f32 %v1356_v58, 0.0  ;;  %v4934_v27 = vpop.permute.xlu1 %4064 }
 0x23f   : > { %v1539_v52 = vmax.f32 %v1358_v12, 0.0  ;;  %v1417_v37 = vadd.f32 %v1416_v54, %v4872_v33  ;;  %v1418_v43 = vpop.f32.mrb[5].mxu1  ;;  %1817 = vrot.lane.b32.xlu0 %v4892_v53, %s4144_s22  ;;  %v2395_v47 = vmul.bf16 %v4892_v53, %v4284_v48 }
 0x240   : > { %v1540_v5 = vmax.f32 %v1360_v15, 0.0  ;;  %v1419_v0 = vadd.f32 %v1418_v43, %v4872_v33  ;;  %v1420_v38 = vpop.f32.mrb[6].mxu1  ;;  %3157 = vmatprep.subr.bf16.mxu1 %v4895_v57 }
 0x241   : > { %v4905_v6 = vpack.c.bf16 %v1539_v52, %v1531_v2  ;;  %v1421_v30 = vadd.f32 %v1420_v38, %v4874_v32  ;;  %v1422_v36 = vpop.f32.mrb[7].mxu1  ;;  %3158 = vmatpush1.bf16.msra.mxu1 %v4892_v53  ;;  %v1549_v45 = vmax.f32 %v1417_v37, 0.0  ;;  %v4948_v54 = vpop.permute.xlu0 %4059  ;;  %v2563_v2 = vmul.bf16 %v4892_v53, %v4292_v51 }
 0x242   : > { %v4911_v55 = vpack.c.bf16 %v1540_v5, %v1532_v20  ;;  %v1423_v28 = vadd.f32 %v1422_v36, %v4874_v32  ;;  %v1363_v40 = vpop.f32.mrb[4].mxu0  ;;  %v1550_v60 = vmax.f32 %v1419_v0, 0.0  ;;  %v4953_v52 = vpop.permute.xlu1 %2891  ;;  %v2875_v37 = vmul.bf16 %v4892_v53, %v4305_v56 }
 0x243   : > { %v1557_v8 = vmax.f32 %v1421_v30, 0.0  ;;  %v1364_v42 = vadd.f32 %v1363_v40, %v4872_v33  ;;  %v1365_v44 = vpop.f32.mrb[5].mxu0  ;;  %2733 = vrot.lane.b32.xlu0 %v4895_v57, %s4145_s23  ;;  %2695 = vrot.lane.b32.xlu1 %v4905_v6, %s4145_s23  ;;  %v1648_v5 = vmul.bf16 %v4892_v53, %v4337_v1  ;;  %v2353_v0 = vmul.bf16 %v4905_v6, %v4284_v48 }
 0x244   : > { %v1558_v13 = vmax.f32 %v1423_v28, 0.0  ;;  %v1366_v31 = vadd.f32 %v1365_v44, %v4872_v33  ;;  %v1367_v46 = vpop.f32.mrb[6].mxu0  ;;  %3104 = vmatprep.subr.bf16.mxu0 %v4911_v55  ;;  %v1960_v30 = vmul.bf16 %v4892_v53, %v4345_v3  ;;  %v2521_v36 = vmul.bf16 %v4905_v6, %v4292_v51 }
 0x245   : > { %v4921_v24 = vpack.c.bf16 %v1557_v8, %v1549_v45  ;;  %v1368_v50 = vadd.f32 %v1367_v46, %v4874_v32  ;;  %v1369_v61 = vpop.f32.mrb[7].mxu0  ;;  %3105 = vmatpush1.bf16.msra.mxu0 %v4905_v6  ;;  %v1547_v25 = vmax.f32 %v1364_v42, 0.0  ;;  %v4960_v43 = vpop.permute.xlu0 %2849  ;;  %v2128_v40 = vmul.bf16 %v4892_v53, %v4415_v23 }
 0x246   : > { %v4925_v62 = vpack.c.bf16 %v1558_v13, %v1550_v60  ;;  %v1370_v19 = vadd.f32 %v1369_v61, %v4874_v32  ;;  %v1548_v58 = vmax.f32 %v1366_v31, 0.0  ;;  %v4965_v20 = vpop.permute.xlu1 %2897  ;;  %v2833_v45 = vmul.bf16 %v4905_v6, %v4305_v56 }
 0x247   : > { %v1555_v10 = vmax.f32 %v1368_v50, 0.0  ;;  %1783 = vrot.lane.b32.xlu0 %v4911_v55, %s4144_s22  ;;  %2731 = vrot.lane.b32.xlu1 %v4892_v53, %s4145_s23  ;;  %v2396_v44 = vmul.bf16 %v4895_v57, %v4426_v26  ;;  %v1606_v60 = vmul.bf16 %v4905_v6, %v4337_v1  ;;  %v2564_v13 = vmul.bf16 %v4895_v57, %v4383_v14 }
 0x248   : > { %v1556_v63 = vmax.f32 %v1370_v19, 0.0  ;;  %3159 = vmatprep.subr.bf16.mxu1 %v4925_v62  ;;  %v1918_v31 = vmul.bf16 %v4905_v6, %v4345_v3  ;;  %v2876_v50 = vmul.bf16 %v4895_v57, %v4391_v16  ;;  %v2086_v61 = vmul.bf16 %v4905_v6, %v4415_v23 }
 0x249   : > { %v4937_v12 = vpack.c.bf16 %v1555_v10, %v1547_v25  ;;  %3160 = vmatpush1.bf16.msra.mxu1 %v4921_v24  ;;  %v4973_v38 = vpop.permute.xlu0 %2855  ;;  %v1607_v10 = vmul.bf16 %v4911_v55, %v4265_v41 }
 0x24a   : > { %v4942_v15 = vpack.c.bf16 %v1556_v63, %v1548_v58  ;;  %v4979_v28 = vpop.permute.xlu1 %2495  ;;  %v2354_v58 = vmul.bf16 %v4911_v55, %v4426_v26 }
 0x24b   : > { %2407 = vrot.lane.b32.xlu0 %v2395_v47, %s4140_s18  ;;  %1781 = vrot.lane.b32.xlu1 %v4905_v6, %s4144_s22  ;;  %v6141_v47 = vld [vmem:[#allocation4_spill] sm:$0xff] }
 0x24c   : > { %3106 = vmatprep.subr.bf16.mxu0 %v4942_v15 }
 0x24d   : > { %3107 = vmatpush1.bf16.msra.mxu0 %v4937_v12  ;;  %v4987_v8 = vpop.permute.xlu0 %2453 }
 0x24e   : > { %v4991_v42 = vpop.permute.xlu1 %2501 }
 0x24f   : > { %2575 = vrot.lane.b32.xlu0 %v2563_v2, %s4138_s10  ;;  %2697 = vrot.lane.b32.xlu1 %v4911_v55, %s4145_s23  ;;  %v1919_v2 = vmul.bf16 %v4911_v55, %v6141_v47 }
 0x251   : > { %v4999_v53 = vpop.permute.xlu0 %2459 }
 0x252   : > { %6136 = vst [vmem:[#allocation6_spill] sm:$0xff] %v4999_v53  ;;  %v5005_v46 = vpop.permute.xlu1 %2663 }
 0x253   : > { %2887 = vrot.lane.b32.xlu0 %v2875_v37, %s4139_s11  ;;  %1819 = vrot.lane.b32.xlu1 %v4895_v57, %s4144_s22  ;;  %6137 = vst [vmem:[#allocation7_spill] sm:$0xff] %v5005_v46  ;;  %v2522_v37 = vmul.bf16 %v4911_v55, %v4383_v14 }
 0x255   : > { %v5013_v19 = vpop.permute.xlu0 %2621 }
 0x256   : > { %6138 = vst [vmem:[#allocation8_spill] sm:$0xff] %v5013_v19  ;;  %v5017_v25 = vpop.permute.xlu1 %2669 }
 0x257   : > { %1661 = vrot.lane.b32.xlu0 %v1648_v5, %s4143_s21  ;;  %2365 = vrot.lane.b32.xlu1 %v2353_v0, %s4140_s18  ;;  %6139 = vst [vmem:[#allocation9_spill] sm:$0xff] %v5017_v25  ;;  %v1961_v25 = vmul.bf16 %v4895_v57, %v6141_v47 }
 0x259   : > { %v5025_v63 = vpop.permute.xlu0 %2627 }
 0x25a   : > { %6140 = vst [vmem:[#allocation10_spill] sm:$0xff] %v5025_v63  ;;  %v5031_v5 = vpop.permute.xlu1 %4074 }
 0x25b   : > { %1973 = vrot.lane.b32.xlu0 %v1960_v30, %s4142_s20  ;;  %2533 = vrot.lane.b32.xlu1 %v2521_v36, %s4138_s10  ;;  %6142 = vst [vmem:[#allocation4_spill] sm:$0xff] %v5031_v5 }
 0x25f   : > { %2141 = vrot.lane.b32.xlu0 %v2128_v40, %s4141_s19  ;;  %2845 = vrot.lane.b32.xlu1 %v2833_v45, %s4139_s11 }
 0x263   : > { %2409 = vrot.lane.b32.xlu0 %v2396_v44, %s4140_s18  ;;  %1619 = vrot.lane.b32.xlu1 %v1606_v60, %s4143_s21 }
 0x267   : > { %2577 = vrot.lane.b32.xlu0 %v2564_v13, %s4138_s10  ;;  %1931 = vrot.lane.b32.xlu1 %v1918_v31, %s4142_s20  ;;  %v6143_v13 = vld [vmem:[#allocation5_spill] sm:$0xff] }
 0x268   : > { %v2087_v31 = vmul.bf16 %v4911_v55, %v6143_v13 }
 0x26b   : > { %2889 = vrot.lane.b32.xlu0 %v2876_v50, %s4139_s11  ;;  %2099 = vrot.lane.b32.xlu1 %v2086_v61, %s4141_s19  ;;  %v2834_v50 = vmul.bf16 %v4911_v55, %v4391_v16 }
 0x26f   : > { %1621 = vrot.lane.b32.xlu0 %v1607_v10, %s4143_s21  ;;  %2367 = vrot.lane.b32.xlu1 %v2354_v58, %s4140_s18  ;;  %v5043_v58 = vpop.permute.xlu0 %4069 }
 0x270   : > { %6144 = vst [vmem:[#allocation5_spill] sm:$0xff] %v5043_v58 }
 0x271   : > { %v1459_v6 = vpop.f32.mrb[8].mxu0 }
 0x272   : > { %v1460_v0 = vadd.f32 %v1459_v6, %v4870_v11  ;;  %v1461_v30 = vpop.f32.mrb[9].mxu0 }
 0x273   : > { %1933 = vrot.lane.b32.xlu0 %v1919_v2, %s4142_s20  ;;  %2535 = vrot.lane.b32.xlu1 %v2522_v37, %s4138_s10  ;;  %v1462_v36 = vadd.f32 %v1461_v30, %v4870_v11  ;;  %v1463_v40 = vpop.f32.mrb[10].mxu0  ;;  %v5047_v37 = vpop.permute.xlu1 %2975 }
 0x274   : > { %v1464_v45 = vadd.f32 %v1463_v40, %v4868_v34  ;;  %v1465_v44 = vpop.f32.mrb[11].mxu0  ;;  %v1535_v61 = vmax.f32 %v1460_v0, 0.0  ;;  %6145 = vst [vmem:[#allocation11_spill] sm:$0xff] %v5047_v37  ;;  %v5065_v63 = vpop.permute.xlu0 %2933 }
 0x275   : > { %v1466_v60 = vadd.f32 %v1465_v44, %v4868_v34  ;;  %v1536_v6 = vmax.f32 %v1462_v36, 0.0 }
 0x276   : > { %v1543_v10 = vmax.f32 %v1464_v45, 0.0  ;;  %v1649_v45 = vmul.bf16 %v4895_v57, %v4265_v41 }
 0x277   : > { %v1544_v2 = vmax.f32 %v1466_v60, 0.0  ;;  %2101 = vrot.lane.b32.xlu0 %v2087_v31, %s4141_s19  ;;  %2847 = vrot.lane.b32.xlu1 %v2834_v50, %s4139_s11 }
 0x278   : > { %v5049_v30 = vpack.c.bf16 %v1543_v10, %v1535_v61  ;;  %v1512_v40 = vpop.f32.mrb[8].mxu1 }
 0x279   : > { %v5051_v44 = vpack.c.bf16 %v1544_v2, %v1536_v6  ;;  %v1513_v5 = vadd.f32 %v1512_v40, %v4870_v11  ;;  %v1469_v55 = vpop.f32.mrb[12].mxu0  ;;  %v1514_v0 = vpop.f32.mrb[9].mxu1 }
 0x27a   : > { %v1470_v36 = vadd.f32 %v1469_v55, %v4872_v33  ;;  %v1515_v60 = vadd.f32 %v1514_v0, %v4870_v11  ;;  %v1471_v31 = vpop.f32.mrb[13].mxu0  ;;  %v1516_v50 = vpop.f32.mrb[10].mxu1 }
 0x27b   : > { %1663 = vrot.lane.b32.xlu1 %v1649_v45, %s4143_s21  ;;  %2701 = vrot.lane.b32.xlu0 %v4937_v12, %s4145_s23  ;;  %v1472_v61 = vadd.f32 %v1471_v31, %v4872_v33  ;;  %v1517_v10 = vadd.f32 %v1516_v50, %v4868_v34  ;;  %v1473_v6 = vpop.f32.mrb[14].mxu0  ;;  %v1518_v2 = vpop.f32.mrb[11].mxu1  ;;  %v1537_v11 = vmax.f32 %v1513_v5, 0.0 }
 0x27c   : > { %v1474_v40 = vadd.f32 %v1473_v6, %v4874_v32  ;;  %v1519_v37 = vadd.f32 %v1518_v2, %v4868_v34  ;;  %v1475_v55 = vpop.f32.mrb[15].mxu0  ;;  %v1551_v58 = vmax.f32 %v1470_v36, 0.0  ;;  %v1538_v31 = vmax.f32 %v1515_v60, 0.0  ;;  %v5079_v2 = vpop.permute.xlu1 %2981 }
 0x27d   : > { %v1545_v0 = vmax.f32 %v1517_v10, 0.0  ;;  %v1476_v45 = vadd.f32 %v1475_v55, %v4874_v32  ;;  %v1552_v46 = vmax.f32 %v1472_v61, 0.0  ;;  %6146 = vst [vmem:[#allocation12_spill] sm:$0xff] %v5079_v2  ;;  %v2129_v61 = vmul.bf16 %v4895_v57, %v6143_v13  ;;  %v5087_v55 = vpop.permute.xlu0 %2939 }
 0x27e   : > { %v1559_v19 = vmax.f32 %v1474_v40, 0.0  ;;  %v1546_v50 = vmax.f32 %v1519_v37, 0.0  ;;  %6147 = vst [vmem:[#allocation13_spill] sm:$0xff] %v5087_v55 }
 0x27f   : > { %v5070_v53 = vpack.c.bf16 %v1545_v0, %v1537_v11  ;;  %v1560_v6 = vmax.f32 %v1476_v45, 0.0  ;;  %1975 = vrot.lane.b32.xlu1 %v1961_v25, %s4142_s20  ;;  %2737 = vrot.lane.b32.xlu0 %v4921_v24, %s4145_s23 }
 0x280   : > { %v5075_v34 = vpack.c.bf16 %v1559_v19, %v1551_v58  ;;  %v5077_v5 = vpack.c.bf16 %v1546_v50, %v1538_v31  ;;  %v1522_v10 = vpop.f32.mrb[12].mxu1  ;;  %v5094_v57 = vpop.permute.xlu1 %1617 }
 0x281   : > { %v5081_v36 = vpack.c.bf16 %v1560_v6, %v1552_v46  ;;  %v1523_v37 = vadd.f32 %v1522_v10, %v4872_v33  ;;  %v1524_v60 = vpop.f32.mrb[13].mxu1  ;;  %6148 = vst [vmem:[#allocation14_spill] sm:$0xff] %v5094_v57  ;;  %v5104_v6 = vpop.permute.xlu0 %1659  ;;  %v2398_v10 = vmul.bf16 %v4921_v24, %v4284_v48 }
 0x282   : > { %v1525_v25 = vadd.f32 %v1524_v60, %v4872_v33  ;;  %v1526_v40 = vpop.f32.mrb[14].mxu1  ;;  %6149 = vst [vmem:[#allocation15_spill] sm:$0xff] %v5104_v6  ;;  %v2566_v60 = vmul.bf16 %v4921_v24, %v4292_v51 }
 0x283   : > { %2143 = vrot.lane.b32.xlu1 %v2129_v61, %s4141_s19  ;;  %1787 = vrot.lane.b32.xlu0 %v4937_v12, %s4144_s22  ;;  %v1527_v19 = vadd.f32 %v1526_v40, %v4874_v32  ;;  %v1528_v46 = vpop.f32.mrb[15].mxu1  ;;  %v1553_v11 = vmax.f32 %v1523_v37, 0.0  ;;  %v2356_v61 = vmul.bf16 %v4937_v12, %v4284_v48 }
 0x284   : > { %v1529_v58 = vadd.f32 %v1528_v46, %v4874_v32  ;;  %v1554_v45 = vmax.f32 %v1525_v25, 0.0  ;;  %v5110_v32 = vpop.permute.xlu1 %1623  ;;  %v2524_v46 = vmul.bf16 %v4937_v12, %v4292_v51 }
 0x285   : > { %v1561_v0 = vmax.f32 %v1527_v19, 0.0  ;;  %6150 = vst [vmem:[#allocation16_spill] sm:$0xff] %v5110_v32  ;;  %v5114_v37 = vpop.permute.xlu0 %1665  ;;  %v2878_v19 = vmul.bf16 %v4921_v24, %v4305_v56  ;;  %v2480_v32 = vmul.bf16 %v5077_v5, %v4426_v26 }
 0x286   : > { %v1562_v31 = vmax.f32 %v1529_v58, 0.0  ;;  %6151 = vst [vmem:[#allocation17_spill] sm:$0xff] %v5114_v37 }
 0x287   : > { %v5096_v33 = vpack.c.bf16 %v1561_v0, %v1553_v11  ;;  %1823 = vrot.lane.b32.xlu1 %v4921_v24, %s4144_s22  ;;  %2703 = vrot.lane.b32.xlu0 %v4942_v15, %s4145_s23  ;;  %v1651_v11 = vmul.bf16 %v4921_v24, %v4337_v1  ;;  %v2836_v0 = vmul.bf16 %v4937_v12, %v4305_v56 }
 0x288   : > { %v5102_v50 = vpack.c.bf16 %v1562_v31, %v1554_v45  ;;  %v5123_v25 = vpop.permute.xlu1 %4079  ;;  %v1963_v31 = vmul.bf16 %v4921_v24, %v4345_v3 }
 0x289   : > { %6152 = vst [vmem:[#allocation18_spill] sm:$0xff] %v5123_v25  ;;  %v5127_v40 = vpop.permute.xlu0 %4084 }
 0x28a   : > { %6153 = vst [vmem:[#allocation19_spill] sm:$0xff] %v5127_v40 }
 0x28b   : > { %2739 = vrot.lane.b32.xlu1 %v4925_v62, %s4145_s23  ;;  %1825 = vrot.lane.b32.xlu0 %v4925_v62, %s4144_s22 }
 0x28c   : > { %v5135_v58 = vpop.permute.xlu1 %1929 }
 0x28d   : > { %6154 = vst [vmem:[#allocation20_spill] sm:$0xff] %v5135_v58  ;;  %v5141_v45 = vpop.permute.xlu0 %1971  ;;  %v2132_v58 = vmul.bf16 %v4925_v62, %v6143_v13 }
 0x28e   : > { %6155 = vst [vmem:[#allocation21_spill] sm:$0xff] %v5141_v45 }
 0x28f   : > { %1789 = vrot.lane.b32.xlu1 %v4942_v15, %s4144_s22  ;;  %2413 = vrot.lane.b32.xlu0 %v2398_v10, %s4140_s18  ;;  %v1609_v10 = vmul.bf16 %v4937_v12, %v4337_v1 }
 0x293   : > { %2581 = vrot.lane.b32.xlu0 %v2566_v60, %s4138_s10  ;;  %2371 = vrot.lane.b32.xlu1 %v2356_v61, %s4140_s18  ;;  %v5149_v60 = vpop.permute.xlu1 %1935  ;;  %v5153_v61 = vpop.permute.xlu0 %1977 }
 0x294   : > { %6156 = vst [vmem:[#allocation22_spill] sm:$0xff] %v5149_v60  ;;  %6157 = vst [vmem:[#allocation23_spill] sm:$0xff] %v5153_v61  ;;  %v1964_v60 = vmul.bf16 %v4925_v62, %v6141_v47  ;;  %v2090_v61 = vmul.bf16 %v4942_v15, %v6143_v13 }
 0x297   : > { %2893 = vrot.lane.b32.xlu0 %v2878_v19, %s4139_s11  ;;  %2539 = vrot.lane.b32.xlu1 %v2524_v46, %s4138_s10  ;;  %v2131_v19 = vmul.bf16 %v4921_v24, %v4415_v23  ;;  %v1921_v46 = vmul.bf16 %v4937_v12, %v4345_v3  ;;  %v2567_v24 = vmul.bf16 %v4925_v62, %v4383_v14 }
 0x29b   : > { %1667 = vrot.lane.b32.xlu0 %v1651_v11, %s4143_s21  ;;  %2851 = vrot.lane.b32.xlu1 %v2836_v0, %s4139_s11  ;;  %v5161_v11 = vpop.permute.xlu1 %2097  ;;  %v2399_v0 = vmul.bf16 %v4925_v62, %v4426_v26 }
 0x29c   : > { %6158 = vst [vmem:[#allocation24_spill] sm:$0xff] %v5161_v11 }
 0x29f   : > { %1979 = vrot.lane.b32.xlu0 %v1963_v31, %s4142_s20  ;;  %1625 = vrot.lane.b32.xlu1 %v1609_v10, %s4143_s21  ;;  %v2089_v31 = vmul.bf16 %v4937_v12, %v4415_v23  ;;  %v5167_v10 = vpop.permute.xlu0 %2139  ;;  %v2525_v12 = vmul.bf16 %v4942_v15, %v4383_v14 }
 0x2a0   : > { %6159 = vst [vmem:[#allocation25_spill] sm:$0xff] %v5167_v10 }
 0x2a3   : > { %2147 = vrot.lane.b32.xlu0 %v2131_v19, %s4141_s19  ;;  %1937 = vrot.lane.b32.xlu1 %v1921_v46, %s4142_s20  ;;  %v2357_v19 = vmul.bf16 %v4942_v15, %v4426_v26  ;;  %v5175_v46 = vpop.permute.xlu1 %2103  ;;  %v5179_v11 = vpop.permute.xlu0 %2145 }
 0x2a4   : > { %6160 = vst [vmem:[#allocation26_spill] sm:$0xff] %v5175_v46  ;;  %6161 = vst [vmem:[#allocation27_spill] sm:$0xff] %v5179_v11 }
 0x2a7   : > { %2415 = vrot.lane.b32.xlu0 %v2399_v0, %s4140_s18  ;;  %2105 = vrot.lane.b32.xlu1 %v2089_v31, %s4141_s19  ;;  %v2879_v0 = vmul.bf16 %v4925_v62, %v4391_v16  ;;  %v5187_v31 = vpop.permute.xlu1 %1701 }
 0x2a8   : > { %6162 = vst [vmem:[#allocation28_spill] sm:$0xff] %v5187_v31  ;;  %v5208_v31 = vld [vmem:[%s6105_s4 + $0x8] ss:$12 sps:$4 sm:$0xff]  }
 0x2a9   : > { %3958 = vmatprep.mubr.msk.bf16.mxu1 %vm3097_vm8, %v5208_v31  ;;  %3956 = vmatprep.mubr.msk.bf16.mxu0 %vm3097_vm8, %v5208_v31 }
 0x2ab   : > { %2583 = vrot.lane.b32.xlu0 %v2567_v24, %s4138_s10  ;;  %2373 = vrot.lane.b32.xlu1 %v2357_v19, %s4140_s18  ;;  %v2837_v24 = vmul.bf16 %v4942_v15, %v4391_v16  ;;  %v1610_v19 = vmul.bf16 %v4942_v15, %v4265_v41 }
 0x2af   : > { %2541 = vrot.lane.b32.xlu1 %v2525_v12, %s4138_s10  ;;  %2895 = vrot.lane.b32.xlu0 %v2879_v0, %s4139_s11  ;;  %v1652_v12 = vmul.bf16 %v4925_v62, %v4265_v41  ;;  %v1922_v0 = vmul.bf16 %v4942_v15, %v6141_v47  ;;  %v2479_v15 = vmul.bf16 %v5070_v53, %v4284_v48 }
 0x2b1   : > { %v5189_v10 = vpop.permute.xlu0 %1817 }
 0x2b2   : > { %6163 = vst [vmem:[#allocation29_spill] sm:$0xff] %v5189_v10  ;;  %v2437_v10 = vmul.bf16 %v5049_v30, %v4284_v48 }
 0x2b3   : > { %2853 = vrot.lane.b32.xlu1 %v2837_v24, %s4139_s11  ;;  %1627 = vrot.lane.b32.xlu0 %v1610_v19, %s4143_s21 }
 0x2b5   : > { %v5197_v46 = vpop.permute.xlu1 %2695  ;;  %v5199_v11 = vpop.permute.xlu0 %2733 }
 0x2b7   : > { %1669 = vrot.lane.b32.xlu1 %v1652_v12, %s4143_s21  ;;  %1939 = vrot.lane.b32.xlu0 %v1922_v0, %s4142_s20 }
 0x2b9   : > { %v5216_v24 = vpop.permute.xlu1 %2731  ;;  %v5218_v19 = vpop.permute.xlu0 %1783 }
 0x2ba   : > { %6164 = vst [vmem:[#allocation30_spill] sm:$0xff] %v5218_v19 }
 0x2bb   : > { %1981 = vrot.lane.b32.xlu1 %v1964_v60, %s4142_s20  ;;  %2107 = vrot.lane.b32.xlu0 %v2090_v61, %s4141_s19 }
 0x2bd   : > { %v5226_v12 = vpop.permute.xlu1 %1781  ;;  %v2408_v0 = vpop.permute.xlu0 %2407 }
 0x2be   : > { %6165 = vst [vmem:[#allocation31_spill] sm:$0xff] %v5226_v12 }
 0x2bf   : > { %2149 = vrot.lane.b32.xlu1 %v2132_v58, %s4141_s19  ;;  %2805 = vrot.lane.b32.xlu0 %v5077_v5, %s4145_s23  ;;  %v2647_v58 = vmul.bf16 %v5070_v53, %v4292_v51 }
 0x2c1   : > { %v5233_v45 = vpop.permute.xlu1 %2697  ;;  %v5235_v40 = vpop.permute.xlu0 %2575 }
 0x2c3   : > { %2491 = vrot.lane.b32.xlu0 %v2479_v15, %s4140_s18  ;;  %2767 = vrot.lane.b32.xlu1 %v5049_v30, %s4145_s23  ;;  %v2959_v15 = vmul.bf16 %v5070_v53, %v4305_v56 }
 0x2c5   : > { %v5242_v60 = vpop.permute.xlu1 %1819  ;;  %v5244_v62 = vpop.permute.xlu0 %2887 }
 0x2c6   : > { %6166 = vst [vmem:[#allocation32_spill] sm:$0xff] %v5242_v60 }
 0x2c7   : > { %2659 = vrot.lane.b32.xlu0 %v2647_v58, %s4138_s10  ;;  %2803 = vrot.lane.b32.xlu1 %v5070_v53, %s4145_s23  ;;  %v1732_v58 = vmul.bf16 %v5070_v53, %v4337_v1 }
 0x2c9   : > { %v2366_v61 = vpop.permute.xlu1 %2365  ;;  %v5251_v12 = vpop.permute.xlu0 %1661 }
 0x2ca   : > { %6167 = vst [vmem:[#allocation33_spill] sm:$0xff] %v5251_v12 }
 0x2cb   : > { %2971 = vrot.lane.b32.xlu0 %v2959_v15, %s4139_s11  ;;  %2769 = vrot.lane.b32.xlu1 %v5051_v44, %s4145_s23 }
 0x2cd   : > { %v5258_v19 = vpop.permute.xlu1 %2533  ;;  %v5260_v25 = vpop.permute.xlu0 %1973 }
 0x2ce   : > { %6168 = vst [vmem:[#allocation34_spill] sm:$0xff] %v5260_v25  ;;  %v2605_v25 = vmul.bf16 %v5049_v30, %v4292_v51 }
 0x2cf   : > { %1745 = vrot.lane.b32.xlu0 %v1732_v58, %s4143_s21  ;;  %2449 = vrot.lane.b32.xlu1 %v2437_v10, %s4140_s18  ;;  %v2648_v10 = vmul.bf16 %v5077_v5, %v4383_v14 }
 0x2d1   : > { %v5268_v60 = vpop.permute.xlu1 %2845  ;;  %v5270_v15 = vpop.permute.xlu0 %2141 }
 0x2d2   : > { %6169 = vst [vmem:[#allocation35_spill] sm:$0xff] %v5270_v15  ;;  %v2917_v15 = vmul.bf16 %v5049_v30, %v4305_v56 }
 0x2d3   : > { %2493 = vrot.lane.b32.xlu0 %v2480_v32, %s4140_s18  ;;  %2617 = vrot.lane.b32.xlu1 %v2605_v25, %s4138_s10 }
 0x2d5   : > { %v5278_v37 = vpop.permute.xlu1 %1619  ;;  %v2410_v57 = vpop.permute.xlu0 %2409 }
 0x2d6   : > { %6170 = vst [vmem:[#allocation36_spill] sm:$0xff] %v5278_v37  ;;  %v2420_v58 = vsel %vm705_vm4, %v2410_v57, %v4876_v59  ;;  %v2419_v6 = vsel %vm705_vm4, %v2408_v0, %v2410_v57  ;;  %v2960_v37 = vmul.bf16 %v5077_v5, %v4391_v16  ;;  %v1690_v59 = vmul.bf16 %v5049_v30, %v4337_v1 }
 0x2d7   : > { %3161 = vmatprep.subr.bf16.mxu1 %v2420_v58  ;;  %2661 = vrot.lane.b32.xlu0 %v2648_v10, %s4138_s10 }
 0x2d8   : > { %2929 = vrot.lane.b32.xlu1 %v2917_v15, %s4139_s11  ;;  %3162 = vmatpush1.bf16.msra.mxu1 %v2419_v6  ;;  %v1691_v6 = vmul.bf16 %v5051_v44, %v4265_v41  ;;  %v2438_v15 = vmul.bf16 %v5051_v44, %v4426_v26 }
 0x2d9   : > { %v5289_v32 = vpop.permute.xlu1 %1931  ;;  %v5291_v25 = vpop.permute.xlu0 %2577 }
 0x2da   : > { %6171 = vst [vmem:[#allocation37_spill] sm:$0xff] %v5289_v32  ;;  %v2918_v32 = vmul.bf16 %v5051_v44, %v4391_v16 }
 0x2db   : > { %2973 = vrot.lane.b32.xlu0 %v2960_v37, %s4139_s11 }
 0x2dc   : > { %1703 = vrot.lane.b32.xlu1 %v1690_v59, %s4143_s21  ;;  %v2606_v59 = vmul.bf16 %v5051_v44, %v4383_v14 }
 0x2dd   : > { %v5299_v57 = vpop.permute.xlu1 %2099  ;;  %v5301_v0 = vpop.permute.xlu0 %2889 }
 0x2de   : > { %6172 = vst [vmem:[#allocation38_spill] sm:$0xff] %v5299_v57 }
 0x2df   : > { %1705 = vrot.lane.b32.xlu0 %v1691_v6, %s4143_s21 }
 0x2e0   : > { %2451 = vrot.lane.b32.xlu1 %v2438_v15, %s4140_s18 }
 0x2e1   : > { %v2368_v10 = vpop.permute.xlu1 %2367  ;;  %v5309_v58 = vpop.permute.xlu0 %1621 }
 0x2e2   : > { %6173 = vst [vmem:[#allocation39_spill] sm:$0xff] %v5309_v58  ;;  %v2378_v37 = vsel %vm705_vm4, %v2368_v10, %v4878_v18  ;;  %v2377_v57 = vsel %vm705_vm4, %v2366_v61, %v2368_v10  ;;  %v2608_v58 = vmul.bf16 %v5075_v34, %v4292_v51 }
 0x2e3   : > { %3108 = vmatprep.subr.bf16.mxu0 %v2378_v37  ;;  %2773 = vrot.lane.b32.xlu0 %v5075_v34, %s4145_s23  ;;  %v2482_v37 = vmul.bf16 %v5096_v33, %v4284_v48 }
 0x2e4   : > { %2619 = vrot.lane.b32.xlu1 %v2606_v59, %s4138_s10  ;;  %3109 = vmatpush1.bf16.msra.mxu0 %v2377_v57 }
 0x2e5   : > { %v5319_v6 = vpop.permute.xlu1 %2535  ;;  %v5321_v15 = vpop.permute.xlu0 %1933 }
 0x2e6   : > { %6174 = vst [vmem:[#allocation40_spill] sm:$0xff] %v5321_v15  ;;  %v2650_v15 = vmul.bf16 %v5096_v33, %v4292_v51 }
 0x2e7   : > { %2809 = vrot.lane.b32.xlu0 %v5096_v33, %s4145_s23 }
 0x2e8   : > { %2931 = vrot.lane.b32.xlu1 %v2918_v32, %s4139_s11  ;;  %v2440_v32 = vmul.bf16 %v5075_v34, %v4284_v48 }
 0x2e9   : > { %v5328_v18 = vpop.permute.xlu1 %2847  ;;  %v5330_v61 = vpop.permute.xlu0 %2101 }
 0x2ea   : > { %6175 = vst [vmem:[#allocation41_spill] sm:$0xff] %v5330_v61 }
 0x2eb   : > { %2775 = vrot.lane.b32.xlu0 %v5081_v36, %s4145_s23 }
 0x2ec   : > { %2811 = vrot.lane.b32.xlu1 %v5102_v50, %s4145_s23 }
 0x2ed   : > { %v5336_v57 = vpop.permute.xlu1 %1663  ;;  %v5338_v10 = vpop.permute.xlu0 %2701 }
 0x2ee   : > { %6176 = vst [vmem:[#allocation42_spill] sm:$0xff] %v5336_v57 }
 0x2ef   : > { %2497 = vrot.lane.b32.xlu0 %v2482_v37, %s4140_s18  ;;  %v2962_v37 = vmul.bf16 %v5096_v33, %v4305_v56 }
 0x2f0   : > { %2455 = vrot.lane.b32.xlu1 %v2440_v32, %s4140_s18  ;;  %v2920_v32 = vmul.bf16 %v5075_v34, %v4305_v56 }
 0x2f1   : > { %v5346_v59 = vpop.permute.xlu1 %1975  ;;  %v5348_v61 = vpop.permute.xlu0 %2737 }
 0x2f2   : > { %6177 = vst [vmem:[#allocation43_spill] sm:$0xff] %v5346_v59 }
 0x2f3   : > { %2665 = vrot.lane.b32.xlu0 %v2650_v15, %s4138_s10  ;;  %v2441_v15 = vmul.bf16 %v5081_v36, %v4426_v26 }
 0x2f4   : > { %2623 = vrot.lane.b32.xlu1 %v2608_v58, %s4138_s10  ;;  %v2483_v58 = vmul.bf16 %v5102_v50, %v4426_v26  ;;  %v2651_v26 = vmul.bf16 %v5102_v50, %v4383_v14 }
 0x2f5   : > { %v5356_v12 = vpop.permute.xlu1 %2143  ;;  %v5358_v48 = vpop.permute.xlu0 %1787 }
 0x2f6   : > { %6178 = vst [vmem:[#allocation44_spill] sm:$0xff] %v5356_v12  ;;  %6179 = vst [vmem:[#allocation45_spill] sm:$0xff] %v5358_v48 }
 0x2f7   : > { %2977 = vrot.lane.b32.xlu0 %v2962_v37, %s4139_s11  ;;  %v1733_v37 = vmul.bf16 %v5077_v5, %v4265_v41 }
 0x2f8   : > { %2935 = vrot.lane.b32.xlu1 %v2920_v32, %s4139_s11 }
 0x2f9   : > { %v5366_v59 = vpop.permute.xlu1 %1823  ;;  %v5368_v51 = vpop.permute.xlu0 %2703 }
 0x2fa   : > { %6180 = vst [vmem:[#allocation46_spill] sm:$0xff] %v5366_v59 }
 0x2fb   : > { %2499 = vrot.lane.b32.xlu0 %v2483_v58, %s4140_s18  ;;  %v2609_v58 = vmul.bf16 %v5081_v36, %v4383_v14 }
 0x2fc   : > { %2457 = vrot.lane.b32.xlu1 %v2441_v15, %s4140_s18 }
 0x2fd   : > { %v5376_v12 = vpop.permute.xlu1 %2739  ;;  %v5378_v56 = vpop.permute.xlu0 %1825 }
 0x2fe   : > { %6181 = vst [vmem:[#allocation47_spill] sm:$0xff] %v5378_v56  ;;  %v1735_v56 = vmul.bf16 %v5096_v33, %v4337_v1 }
 0x2ff   : > { %1743 = vrot.lane.b32.xlu0 %v4259_v39, %s4143_s21 }
 0x300   : > { %1747 = vrot.lane.b32.xlu1 %v1733_v37, %s4143_s21  ;;  %v1693_v37 = vmul.bf16 %v5075_v34, %v4337_v1 }
 0x301   : > { %v5385_v32 = vpop.permute.xlu1 %1789  ;;  %v2414_v48 = vpop.permute.xlu0 %2413 }
 0x302   : > { %6182 = vst [vmem:[#allocation48_spill] sm:$0xff] %v5385_v32 }
 0x303   : > { %2667 = vrot.lane.b32.xlu0 %v2651_v26, %s4138_s10 }
 0x304   : > { %2625 = vrot.lane.b32.xlu1 %v2609_v58, %s4138_s10  ;;  %v2963_v58 = vmul.bf16 %v5102_v50, %v4391_v16 }
 0x305   : > { %v2372_v15 = vpop.permute.xlu1 %2371  ;;  %v2582_v59 = vpop.permute.xlu0 %2581 }
 0x307   : > { %1751 = vrot.lane.b32.xlu0 %v1735_v56, %s4143_s21 }
 0x308   : > { %1709 = vrot.lane.b32.xlu1 %v1693_v37, %s4143_s21 }
 0x309   : > { %v2540_v32 = vpop.permute.xlu1 %2539  ;;  %v5399_v57 = vpop.permute.xlu0 %2893 }
 0x30b   : > { %1749 = vrot.lane.b32.xlu0 %v4259_v39, %s4143_s21 }
 0x30c   : > { %1707 = vrot.lane.b32.xlu1 %v4259_v39, %s4143_s21  ;;  %v2921_v39 = vmul.bf16 %v5081_v36, %v4391_v16 }
 0x30d   : > { %v5405_v14 = vpop.permute.xlu1 %2851  ;;  %v5407_v26 = vpop.permute.xlu0 %1667 }
 0x30e   : > { %6183 = vst [vmem:[#allocation49_spill] sm:$0xff] %v5407_v26 }
 0x30f   : > { %1855 = vrot.lane.b32.xlu0 %v5051_v44, %s4144_s22 }
 0x310   : > { %1853 = vrot.lane.b32.xlu1 %v5049_v30, %s4144_s22 }
 0x311   : > { %v5413_v1 = vpop.permute.xlu1 %1625  ;;  %v5415_v56 = vpop.permute.xlu0 %1979 }
 0x312   : > { %6184 = vst [vmem:[#allocation50_spill] sm:$0xff] %v5413_v1  ;;  %6185 = vst [vmem:[#allocation51_spill] sm:$0xff] %v5415_v56 }
 0x313   : > { %2979 = vrot.lane.b32.xlu0 %v2963_v58, %s4139_s11  ;;  %v2588_v58 = vsel %vm595_vm1, %v5291_v25, %v4889_v17  ;;  %v2587_v17 = vsel %vm595_vm1, %v5235_v40, %v5291_v25  ;;  %v2545_v40 = vsel %vm595_vm1, %v5258_v19, %v5319_v6  ;;  %v2003_v19 = vmul.bf16 %v5051_v44, %v6141_v47 }
 0x314   : > { %2937 = vrot.lane.b32.xlu1 %v2921_v39, %s4139_s11 }
 0x315   : > { %v5423_v37 = vpop.permute.xlu1 %1937  ;;  %v5425_v26 = vpop.permute.xlu0 %2147 }
 0x317   : > { %1889 = vrot.lane.b32.xlu0 %v5070_v53, %s4144_s22 }
 0x318   : > { %4089 = vrot.lane.b32.xlu1 %v6135_v29, %s4144_s22 }
 0x319   : > { %v5431_v56 = vpop.permute.xlu1 %2105  ;;  %v2416_v1 = vpop.permute.xlu0 %2415 }
 0x31a   : > { %v2421_v55 = vsel %vm705_vm4, %v2414_v48, %v2416_v1  ;;  %v2422_v16 = vsel %vm705_vm4, %v2416_v1, %v4880_v4 }
 0x31b   : > { %3163 = vmatprep.subr.bf16.mxu1 %v2422_v16  ;;  %1859 = vrot.lane.b32.xlu0 %v5075_v34, %s4144_s22  ;;  %v4062_v16 = vunpack.i.h.bf16 %v4948_v54 }
 0x31c   : > { %1891 = vrot.lane.b32.xlu1 %v5077_v5, %s4144_s22  ;;  %3164 = vmatpush1.bf16.msra.mxu1 %v2421_v55  ;;  %v2546_v55 = vsel %vm595_vm1, %v5319_v6, %v4903_v7  ;;  %v2002_v6 = vmul.bf16 %v5049_v30, %v4345_v3 }
 0x31d   : > { %v2374_v39 = vpop.permute.xlu1 %2373  ;;  %v2584_v2 = vpop.permute.xlu0 %2583  ;;  %3165 = vmatprep.subr.bf16.mxu1 %v2588_v58 }
 0x31e   : > { %v2379_v48 = vsel %vm705_vm4, %v2372_v15, %v2374_v39  ;;  %v2380_v4 = vsel %vm705_vm4, %v2374_v39, %v4886_v22  ;;  %v2590_v22 = vsel %vm595_vm1, %v2584_v2, %v4909_v35  ;;  %v2589_v7 = vsel %vm595_vm1, %v2582_v59, %v2584_v2 }
 0x31f   : > { %3110 = vmatprep.subr.bf16.mxu0 %v2380_v4  ;;  %4094 = vrot.lane.b32.xlu0 %v6135_v29, %s4144_s22  ;;  %v2744_v39 = vsel %vm1024_vm7, %v5199_v11, %v4062_v16  ;;  %v4061_v2 = vunpack.i.l.bf16 %v4948_v54 }
 0x320   : > { %1861 = vrot.lane.b32.xlu1 %v5081_v36, %s4144_s22  ;;  %3111 = vmatpush1.bf16.msra.mxu0 %v2379_v48  ;;  %v2743_v48 = vsel %vm1024_vm7, %v5216_v24, %v5199_v11  ;;  %v2707_v24 = vsel %vm1024_vm7, %v5197_v46, %v5233_v45  ;;  %v1694_v46 = vmul.bf16 %v5081_v36, %v4265_v41 }
 0x321   : > { %3166 = vmatpush1.bf16.msra.mxu1 %v2587_v17  ;;  %v2542_v15 = vpop.permute.xlu1 %2541  ;;  %v5456_v1 = vpop.permute.xlu0 %2895  ;;  %3112 = vmatprep.subr.bf16.mxu0 %v2546_v55  ;;  %v2708_v54 = vsel %vm1024_vm7, %v5233_v45, %v4061_v2  ;;  %v2044_v55 = vmul.bf16 %v5070_v53, %v4345_v3  ;;  %v2900_v45 = vsel %vm418_vm0, %v5301_v0, %v4953_v52 }
 0x322   : > { %3167 = vmatprep.subr.bf16.mxu1 %v2590_v22  ;;  %v2548_v25 = vsel %vm595_vm1, %v2542_v15, %v4928_v21  ;;  %v4067_v21 = vunpack.i.h.bf16 %v4934_v27  ;;  %v2547_v59 = vsel %vm595_vm1, %v2540_v32, %v2542_v15  ;;  %v4066_v15 = vunpack.i.l.bf16 %v4934_v27 }
 0x323   : > { %1897 = vrot.lane.b32.xlu0 %v5102_v50, %s4144_s22  ;;  %v2745_v22 = vsel %vm1024_vm7, %v5348_v61, %v5376_v12  ;;  %v2709_v61 = vsel %vm1024_vm7, %v5338_v10, %v5368_v51  ;;  %v2899_v52 = vsel %vm418_vm0, %v5244_v62, %v5301_v0  ;;  %v1736_v10 = vmul.bf16 %v5102_v50, %v4265_v41 }
 0x324   : > { %1895 = vrot.lane.b32.xlu1 %v5096_v33, %s4144_s22  ;;  %3113 = vmatpush1.bf16.msra.mxu0 %v2545_v40  ;;  %v2746_v32 = vsel %vm1024_vm7, %v5376_v12, %v4067_v21  ;;  %v2710_v27 = vsel %vm1024_vm7, %v5368_v51, %v4066_v15  ;;  %v2170_v15 = vmul.bf16 %v5049_v30, %v4415_v23  ;;  %s3986_s22 = sshll.u32 %s6235_s9, 5 }
 0x325   : > { %3168 = vmatpush1.bf16.msra.mxu1 %v2589_v7  ;;  %v5471_v35 = vpop.permute.xlu1 %2853  ;;  %v5473_v58 = vpop.permute.xlu0 %1627  ;;  %3114 = vmatprep.subr.bf16.mxu0 %v2548_v25  ;;  %v2045_v7 = vmul.bf16 %v5077_v5, %v6141_v47  ;;  %v2858_v25 = vsel %vm418_vm0, %v5328_v18, %v4960_v43  ;;  %v2857_v43 = vsel %vm418_vm0, %v5268_v60, %v5328_v18  ;;  %v5565_v60 = vld [vmem:[%s6105_s4 + $0x4] ss:$12 sps:$4 sm:$0xff]   ;;  %s6080_s12 = scalar_lea.vmem %s6109_s8, %s3986_s22 }
 0x326   : > { %3169 = vmatprep.subr.bf16.mxu1 %v2744_v39  ;;  %v2860_v41 = vsel %vm418_vm0, %v5471_v35, %v4973_v38  ;;  %v2006_v18 = vmul.bf16 %v5081_v36, %v6141_v47  ;;  %v5575_v38 = vld [vmem:[%s6105_s4 + $0x20] ss:$12 sps:$4 sm:$0xff]  }
 0x327   : > { %2017 = vrot.lane.b32.xlu0 %v2003_v19, %s4142_s20  ;;  %v2902_v19 = vsel %vm418_vm0, %v5456_v1, %v4965_v20  ;;  %v2901_v20 = vsel %vm418_vm0, %v5399_v57, %v5456_v1  ;;  %v2005_v57 = vmul.bf16 %v5075_v34, %v4345_v3  ;;  %v2859_v1 = vsel %vm418_vm0, %v5405_v14, %v5471_v35 }
 0x328   : > { %2015 = vrot.lane.b32.xlu1 %v2002_v6, %s4142_s20  ;;  %3115 = vmatpush1.bf16.msra.mxu0 %v2547_v59  ;;  %v2047_v59 = vmul.bf16 %v5096_v33, %v4345_v3 }
 0x329   : > { %3170 = vmatpush1.bf16.msra.mxu1 %v2743_v48  ;;  %v5491_v4 = vpop.permute.xlu1 %1669  ;;  %v1940_v17 = vpop.permute.xlu0 %1939  ;;  %3116 = vmatprep.subr.bf16.mxu0 %v2708_v54  ;;  %v5610_v48 = vld [vmem:[%s6105_s4 + $0x1c] ss:$12 sps:$4 sm:$0xff]   ;;  %v2048_v54 = vmul.bf16 %v5102_v50, %v6141_v47 }
 0x32a   : > { %3171 = vmatprep.subr.bf16.mxu1 %v2746_v32  ;;  %v5500_v11 = vsel %vm612_vm2, %v5423_v37, %v1940_v17 }
 0x32b   : > { %2057 = vrot.lane.b32.xlu0 %v2044_v55, %s4142_s20  ;;  %v2171_v55 = vmul.bf16 %v5051_v44, %v6143_v13 }
 0x32c   : > { %2013 = vrot.lane.b32.xlu1 %v4286_v49, %s4142_s20  ;;  %3117 = vmatpush1.bf16.msra.mxu0 %v2707_v24 }
 0x32d   : > { %3172 = vmatpush1.bf16.msra.mxu1 %v2745_v22  ;;  %v5513_v16 = vpop.permute.xlu1 %1981  ;;  %v2108_v40 = vpop.permute.xlu0 %2107  ;;  %3118 = vmatprep.subr.bf16.mxu0 %v2710_v27 }
 0x32e   : > { %3173 = vmatprep.subr.bf16.mxu1 %v2900_v45  ;;  %v5524_v12 = vsel %vm722_vm5, %v5431_v56, %v2108_v40  ;;  %v2173_v45 = vmul.bf16 %v5075_v34, %v4415_v23 }
 0x32f   : > { %1711 = vrot.lane.b32.xlu0 %v1694_v46, %s4143_s21  ;;  %v2215_v46 = vmul.bf16 %v5096_v33, %v4415_v23 }
 0x330   : > { %2059 = vrot.lane.b32.xlu1 %v2045_v7, %s4142_s20  ;;  %3119 = vmatpush1.bf16.msra.mxu0 %v2709_v61 }
 0x331   : > { %3174 = vmatpush1.bf16.msra.mxu1 %v2899_v52  ;;  %v2150_v39 = vpop.permute.xlu1 %2149  ;;  %v5540_v2 = vpop.permute.xlu0 %2805  ;;  %3120 = vmatprep.subr.bf16.mxu0 %v2858_v25 }
 0x332   : > { %3175 = vmatprep.subr.bf16.mxu1 %v2902_v19  ;;  %v5546_v62 = vsel %vm722_vm5, %v5425_v26, %v2150_v39  ;;  %v1595_v39 = vld [vmem:[%s6106_s5] sm:$0xff] }
 0x333   : > { %2055 = vrot.lane.b32.xlu0 %v4286_v49, %s4142_s20 }
 0x334   : > { %1753 = vrot.lane.b32.xlu1 %v1736_v10, %s4143_s21  ;;  %3121 = vmatpush1.bf16.msra.mxu0 %v2857_v43  ;;  %v3643_v43 = vld [vmem:[%s6108_s7 + $0x8] sm:$0x3] }
 0x335   : > { %3176 = vmatpush1.bf16.msra.mxu1 %v2901_v20  ;;  %v2492_v0 = vpop.permute.xlu0 %2491  ;;  %3122 = vmatprep.subr.bf16.mxu0 %v2860_v41  ;;  %v5560_v51 = vpop.permute.xlu1 %2767  ;;  %v3642_v41 = vld [vmem:[%s6108_s7] sm:$0xff] }
 0x336   : > { %3263 = vmatprep.subr.bf16.mxu1 %v5077_v5 }
 0x337   : > { %2023 = vrot.lane.b32.xlu0 %v2006_v18, %s4142_s20 }
 0x338   : > { %2021 = vrot.lane.b32.xlu1 %v2005_v57, %s4142_s20  ;;  %3123 = vmatpush1.bf16.msra.mxu0 %v2859_v1 }
 0x339   : > { %3190 = vmatmul.mubr.bf16.vlgmr.msra.gmra.mrb[16].mxu1 %v5565_v60  ;;  %v5583_v6 = vpop.permute.xlu0 %2659  ;;  %3210 = vmatprep.subr.bf16.mxu0 %v5051_v44  ;;  %v2804_v21 = vpop.permute.xlu1 %2803  ;;  %v2212_v44 = vmul.bf16 %v5070_v53, %v4415_v23 }
 0x33a   : > { %3264 = vmatpush1.bf16.msra.mxu1 %v5070_v53  ;;  %v5591_v14 = vsel %vm1024_vm7, %v2804_v21, %v5540_v2  ;;  %3959 = vmatprep.mubr.msk.bf16.mxu1 %vm3097_vm8, %v5575_v38  ;;  %v2213_v53 = vmul.bf16 %v5077_v5, %v6143_v13 }
 0x33b   : > { %3265 = vmatprep.subr.bf16.mxu1 %v5102_v50  ;;  %2063 = vrot.lane.b32.xlu0 %v2047_v59, %s4142_s20 }
 0x33c   : > { %2019 = vrot.lane.b32.xlu1 %v4286_v49, %s4142_s20  ;;  %3137 = vmatmul.mubr.bf16.vlgmr.msra.gmra.mrb[16].mxu0 %v5565_v60 }
 0x33d   : > { %3211 = vmatpush1.bf16.msra.mxu0 %v5049_v30  ;;  %v5601_v3 = vpop.permute.xlu0 %2971  ;;  %v5603_v35 = vpop.permute.xlu1 %2769  ;;  %3957 = vmatprep.mubr.msk.bf16.mxu0 %vm3097_vm8, %v5575_v38 }
 0x33e   : > { %3266 = vmatpush1.bf16.msra.mxu1 %v5096_v33  ;;  %3212 = vmatprep.subr.bf16.mxu0 %v5081_v36  ;;  %v2216_v33 = vmul.bf16 %v5102_v50, %v6143_v13  ;;  %v1597_v50 = vld [vmem:[%s6106_s5 + $0x10] sm:$0xff] }
 0x33f   : > { %2061 = vrot.lane.b32.xlu0 %v4286_v49, %s4142_s20 }
 0x340   : > { %2065 = vrot.lane.b32.xlu1 %v2048_v54, %s4142_s20 }
 0x341   : > { %3213 = vmatpush1.bf16.msra.mxu0 %v5075_v34  ;;  %v5620_v17 = vpop.permute.xlu0 %1745  ;;  %v2450_v32 = vpop.permute.xlu1 %2449  ;;  %3200 = vmatmul.mubr.bf16.gmra.mrb[20].mxu1 %v5610_v48 }
 0x342   : > { %3962 = vmatprep.mubr.msk.bf16.mxu1 %vm3097_vm8, %v5208_v31 }
 0x343   : > { %2185 = vrot.lane.b32.xlu0 %v2171_v55, %s4141_s19 }
 0x344   : > { %2183 = vrot.lane.b32.xlu1 %v2170_v15, %s4141_s19  ;;  %3147 = vmatmul.mubr.bf16.gmra.mrb[20].mxu0 %v5610_v48 }
 0x345   : > { %v2494_v49 = vpop.permute.xlu0 %2493  ;;  %v5632_v47 = vpop.permute.xlu1 %2617  ;;  %3960 = vmatprep.mubr.msk.bf16.mxu0 %vm3097_vm8, %v5208_v31  ;;  %v2174_v31 = vmul.bf16 %v5081_v36, %v6143_v13 }
 0x346   : > { %v2503_v30 = vsel %vm705_vm4, %v2492_v0, %v2494_v49  ;;  %v2504_v24 = vsel %vm705_vm4, %v2494_v49, %v4979_v28  ;;  %v6186_v49 = vld [vmem:[#allocation6_spill] sm:$0xff] }
 0x347   : > { %3267 = vmatprep.subr.bf16.mxu1 %v2504_v24  ;;  %2225 = vrot.lane.b32.xlu0 %v2212_v44, %s4141_s19 }
 0x348   : > { %2181 = vrot.lane.b32.xlu1 %v4363_v9, %s4141_s19  ;;  %3268 = vmatpush1.bf16.msra.mxu1 %v2503_v30  ;;  %v6187_v30 = vld [vmem:[#allocation7_spill] sm:$0xff] }
 0x349   : > { %v5644_v22 = vpop.permute.xlu0 %2661 }
 0x34a   : > { %v5646_v27 = vpop.permute.xlu1 %2929  ;;  %v2672_v24 = vsel %vm595_vm1, %v5644_v22, %v6187_v30 }
 0x34b   : > { %2223 = vrot.lane.b32.xlu0 %v4363_v9, %s4141_s19 }
 0x34c   : > { %2227 = vrot.lane.b32.xlu1 %v2213_v53, %s4141_s19 }
 0x34d   : > { %v5653_v28 = vpop.permute.xlu0 %2973 }
 0x34e   : > { %v5657_v40 = vpop.permute.xlu1 %1703 }
 0x34f   : > { %2191 = vrot.lane.b32.xlu0 %v2174_v31, %s4141_s19  ;;  %v6188_v31 = vld [vmem:[#allocation8_spill] sm:$0xff] }
 0x350   : > { %2189 = vrot.lane.b32.xlu1 %v2173_v45, %s4141_s19 }
 0x351   : > { %v1706_v5 = vpop.permute.xlu0 %1705 }
 0x352   : > { %v2452_v7 = vpop.permute.xlu1 %2451  ;;  %v5667_v61 = vsel %vm435_vm3, %v5657_v40, %v1706_v5  ;;  %v2671_v5 = vsel %vm595_vm1, %v5583_v6, %v5644_v22 }
 0x353   : > { %v2461_v36 = vsel %vm705_vm4, %v2450_v32, %v2452_v7  ;;  %2231 = vrot.lane.b32.xlu0 %v2215_v46, %s4141_s19  ;;  %v2462_v34 = vsel %vm705_vm4, %v2452_v7, %v4987_v8  ;;  %v1596_v8 = vld [vmem:[%s6106_s5 + $0x8] sm:$0xff] }
 0x354   : > { %2187 = vrot.lane.b32.xlu1 %v4363_v9, %s4141_s19  ;;  %3214 = vmatprep.subr.bf16.mxu0 %v2462_v34 }
 0x355   : > { %3215 = vmatpush1.bf16.msra.mxu0 %v2461_v36  ;;  %v5675_v52 = vpop.permute.xlu0 %2773  ;;  %v6189_v36 = vld [vmem:[#allocation5_spill] sm:$0xff] }
 0x356   : > { %v2620_v23 = vpop.permute.xlu1 %2619  ;;  %v4072_v34 = vunpack.i.h.bf16 %v6189_v36 }
 0x357   : > { %2229 = vrot.lane.b32.xlu0 %v4363_v9, %s4141_s19  ;;  %v1598_v9 = vld [vmem:[%s6106_s5 + $0x18] sm:$0xff]  ;;  %v2630_v45 = vsel %vm595_vm1, %v2620_v23, %v6188_v31  ;;  %v2629_v46 = vsel %vm595_vm1, %v5632_v47, %v2620_v23 }
 0x358   : > { %2233 = vrot.lane.b32.xlu1 %v2216_v33, %s4141_s19  ;;  %v2816_v47 = vsel %vm1024_vm7, %v5540_v2, %v4072_v34  ;;  %v6200_v34 = vld [vmem:[#allocation15_spill] sm:$0xff] }
 0x359   : > { %v5685_v25 = vpop.permute.xlu0 %2809 }
 0x35a   : > { %v5690_v19 = vpop.permute.xlu1 %2931 }
 0x35b   : > { %3547 = vperm.xlu0 %4056, %v1596_v8  }
 0x35c   : > { %3542 = vperm.xlu1 %4057, %v1595_v39   ;;  %v6190_v39 = vld [vmem:[#allocation9_spill] sm:$0xff] }
 0x35d   : > { %v5695_v13 = vpop.permute.xlu0 %2775 }
 0x35e   : > { %v5700_v10 = vpop.permute.xlu1 %2811 }
 0x35f   : > { %3557 = vperm.xlu0 %4056, %v1598_v9  }
 0x360   : > { %3552 = vperm.xlu1 %4057, %v1597_v50   ;;  %v4071_v50 = vunpack.i.l.bf16 %v6189_v36 }
 0x361   : > { %v2498_v20 = vpop.permute.xlu0 %2497 }
 0x362   : > { %v2456_v0 = vpop.permute.xlu1 %2455  ;;  %v2780_v23 = vsel %vm1024_vm7, %v5603_v35, %v4071_v50 }
 0x363   : > { %3651 = vperm.xlu0 %4056, %v3643_v43  }
 0x364   : > { %3646 = vperm.xlu1 %4057, %v3642_v41   ;;  %v6192_v41 = vld [vmem:[#allocation4_spill] sm:$0xff] }
 0x365   : > { %v2666_v18 = vpop.permute.xlu0 %2665 }
 0x366   : > { %v2624_v57 = vpop.permute.xlu1 %2623 }
 0x369   : > { %v5708_v1 = vpop.permute.xlu0 %2977 }
 0x36a   : > { %v5710_v21 = vpop.permute.xlu1 %2935 }
 0x36d   : > { %v2500_v59 = vpop.permute.xlu0 %2499 }
 0x36e   : > { %v2505_v54 = vsel %vm705_vm4, %v2498_v20, %v2500_v59  ;;  %v2458_v32 = vpop.permute.xlu1 %2457  ;;  %v2506_v55 = vsel %vm705_vm4, %v2500_v59, %v4991_v42  ;;  %v6191_v20 = vld [vmem:[#allocation10_spill] sm:$0xff]  ;;  %v2779_v59 = vsel %vm1024_vm7, %v5560_v51, %v5603_v35  ;;  %v2781_v51 = vsel %vm1024_vm7, %v5675_v52, %v5695_v13 }
 0x36f   : > { %v2463_v15 = vsel %vm705_vm4, %v2456_v0, %v2458_v32  ;;  %v2464_v44 = vsel %vm705_vm4, %v2458_v32, %v6186_v49  ;;  %3269 = vmatprep.subr.bf16.mxu1 %v2506_v55  ;;  %v4077_v0 = vunpack.i.h.bf16 %v6192_v41  ;;  %v2983_v52 = vsel %vm418_vm0, %v5601_v3, %v5653_v28 }
 0x370   : > { %3216 = vmatprep.subr.bf16.mxu0 %v2464_v44  ;;  %3270 = vmatpush1.bf16.msra.mxu1 %v2505_v54  ;;  %v2942_v44 = vsel %vm418_vm0, %v5690_v19, %v5065_v63  ;;  %v6194_v63 = vld [vmem:[#allocation12_spill] sm:$0xff] }
 0x371   : > { %3217 = vmatpush1.bf16.msra.mxu0 %v2463_v15  ;;  %3271 = vmatprep.subr.bf16.mxu1 %v2672_v24  ;;  %v5721_v53 = vpop.permute.xlu0 %1743  ;;  %v2818_v2 = vsel %vm1024_vm7, %v5700_v10, %v4077_v0  ;;  %v2817_v15 = vsel %vm1024_vm7, %v5685_v25, %v5700_v10  ;;  %v2941_v25 = vsel %vm418_vm0, %v5646_v27, %v5690_v19  ;;  %v6196_v27 = vld [vmem:[#allocation42_spill] sm:$0xff]  ;;  %v6207_v0 = vld [vmem:[#allocation29_spill] sm:$0xff] }
 0x372   : > { %3218 = vmatprep.subr.bf16.mxu0 %v2630_v45  ;;  %v5725_v42 = vpop.permute.xlu1 %1747 }
 0x374   : > { %3272 = vmatpush1.bf16.msra.mxu1 %v2671_v5  ;;  %v6195_v5 = vld [vmem:[#allocation13_spill] sm:$0xff] }
 0x375   : > { %3219 = vmatpush1.bf16.msra.mxu0 %v2629_v46  ;;  %v2668_v7 = vpop.permute.xlu0 %2667 }
 0x376   : > { %v2673_v33 = vsel %vm595_vm1, %v2666_v18, %v2668_v7  ;;  %v2626_v8 = vpop.permute.xlu1 %2625  ;;  %v2674_v9 = vsel %vm595_vm1, %v2668_v7, %v6190_v39  ;;  %v6199_v7 = vld [vmem:[#allocation36_spill] sm:$0xff] }
 0x377   : > { %v2631_v43 = vsel %vm595_vm1, %v2624_v57, %v2626_v8  ;;  %v2632_v6 = vsel %vm595_vm1, %v2626_v8, %v6191_v20  ;;  %3273 = vmatprep.subr.bf16.mxu1 %v2674_v9  ;;  %v4076_v57 = vunpack.i.l.bf16 %v6192_v41  ;;  %v6201_v8 = vld [vmem:[#allocation14_spill] sm:$0xff]  ;;  %v6202_v9 = vld [vmem:[#allocation49_spill] sm:$0xff] }
 0x378   : > { %3220 = vmatprep.subr.bf16.mxu0 %v2632_v6  ;;  %3274 = vmatpush1.bf16.msra.mxu1 %v2673_v33  ;;  %v1629_v39 = vsel %vm435_vm3, %v6201_v8, %v6199_v7  ;;  %v1674_v50 = vsel %vm435_vm3, %v6202_v9, %v5491_v4  ;;  %v6203_v20 = vld [vmem:[#allocation50_spill] sm:$0xff]  ;;  %v6205_v4 = vld [vmem:[#allocation16_spill] sm:$0xff]  ;;  %v6219_v8 = vld [vmem:[#allocation37_spill] sm:$0xff] }
 0x379   : > { %3221 = vmatpush1.bf16.msra.mxu0 %v2631_v43  ;;  %3275 = vmatprep.subr.bf16.mxu1 %v2816_v47  ;;  %v5742_v22 = vpop.permute.xlu0 %1751  ;;  %v2782_v32 = vsel %vm1024_vm7, %v5695_v13, %v4076_v57  ;;  %v1632_v6 = vsel %vm435_vm3, %v6203_v20, %v5473_v58  ;;  %v1631_v41 = vsel %vm435_vm3, %v6205_v4, %v6203_v20  ;;  %v6206_v58 = vld [vmem:[#allocation32_spill] sm:$0xff] }
 0x37a   : > { %3222 = vmatprep.subr.bf16.mxu0 %v2780_v23  ;;  %v5747_v18 = vpop.permute.xlu1 %1709  ;;  %v1828_v57 = vsel %vm517_vm6, %v6207_v0, %v6206_v58 }
 0x37c   : > { %3276 = vmatpush1.bf16.msra.mxu1 %v5591_v14  ;;  %v6193_v14 = vld [vmem:[#allocation11_spill] sm:$0xff] }
 0x37d   : > { %3223 = vmatpush1.bf16.msra.mxu0 %v2779_v59  ;;  %v5756_v54 = vpop.permute.xlu0 %1749  ;;  %3277 = vmatprep.subr.bf16.mxu1 %v2818_v2  ;;  %v2984_v35 = vsel %vm418_vm0, %v5653_v28, %v6193_v14  ;;  %v6197_v28 = vld [vmem:[#allocation33_spill] sm:$0xff]  ;;  %v6208_v59 = vld [vmem:[#allocation18_spill] sm:$0xff] }
 0x37e   : > { %3224 = vmatprep.subr.bf16.mxu0 %v2782_v32  ;;  %v5760_v55 = vpop.permute.xlu1 %1707  ;;  %v1672_v19 = vsel %vm435_vm3, %v6197_v28, %v6196_v27  ;;  %v1671_v33 = vsel %vm435_vm3, %v6200_v34, %v6197_v28  ;;  %v4082_v2 = vunpack.i.h.bf16 %v6208_v59 }
 0x380   : > { %3278 = vmatpush1.bf16.msra.mxu1 %v2817_v15  ;;  %v6209_v15 = vld [vmem:[#allocation30_spill] sm:$0xff] }
 0x381   : > { %3225 = vmatpush1.bf16.msra.mxu0 %v2781_v51  ;;  %v5771_v49 = vpop.permute.xlu0 %1855  ;;  %3279 = vmatprep.subr.bf16.mxu1 %v2984_v35  ;;  %v6210_v51 = vld [vmem:[#allocation31_spill] sm:$0xff] }
 0x382   : > { %3226 = vmatprep.subr.bf16.mxu0 %v2942_v44  ;;  %v5776_v30 = vpop.permute.xlu1 %1853  ;;  %v1792_v14 = vsel %vm517_vm6, %v6210_v51, %v6209_v15  ;;  %v1827_v44 = vsel %vm517_vm6, %v4082_v2, %v6207_v0  ;;  %v6223_v0 = vld [vmem:[#allocation23_spill] sm:$0xff]  ;;  %v6225_v15 = vld [vmem:[#allocation44_spill] sm:$0xff] }
 0x384   : > { %3280 = vmatpush1.bf16.msra.mxu1 %v2983_v52 }
 0x385   : > { %3227 = vmatpush1.bf16.msra.mxu0 %v2941_v25  ;;  %v2980_v13 = vpop.permute.xlu0 %2979  ;;  %v6211_v25 = vld [vmem:[#allocation47_spill] sm:$0xff] }
 0x386   : > { %v2985_v10 = vsel %vm418_vm0, %v5708_v1, %v2980_v13  ;;  %v2938_v24 = vpop.permute.xlu1 %2937  ;;  %v2986_v31 = vsel %vm418_vm0, %v2980_v13, %v6194_v63  ;;  %v6198_v1 = vld [vmem:[#allocation39_spill] sm:$0xff]  ;;  %v6212_v13 = vld [vmem:[#allocation46_spill] sm:$0xff] }
 0x387   : > { %v2943_v45 = vsel %vm418_vm0, %v5710_v21, %v2938_v24  ;;  %v2944_v3 = vsel %vm418_vm0, %v2938_v24, %v6195_v5  ;;  %3281 = vmatprep.subr.bf16.mxu1 %v2986_v31  ;;  %v1630_v36 = vsel %vm435_vm3, %v6199_v7, %v6198_v1  ;;  %v6213_v24 = vld [vmem:[#allocation19_spill] sm:$0xff]  ;;  %v6215_v5 = vld [vmem:[#allocation45_spill] sm:$0xff]  ;;  %v6217_v7 = vld [vmem:[#allocation34_spill] sm:$0xff] }
 0x388   : > { %3228 = vmatprep.subr.bf16.mxu0 %v2944_v3  ;;  %3282 = vmatpush1.bf16.msra.mxu1 %v2985_v10  ;;  %v1830_v10 = vsel %vm517_vm6, %v6212_v13, %v6211_v25  ;;  %v4087_v63 = vunpack.i.h.bf16 %v6213_v24  ;;  %v4086_v27 = vunpack.i.l.bf16 %v6213_v24  ;;  %v6216_v1 = vld [vmem:[#allocation43_spill] sm:$0xff]  ;;  %v6229_v25 = vld [vmem:[#allocation25_spill] sm:$0xff] }
 0x389   : > { %3229 = vmatpush1.bf16.msra.mxu0 %v2943_v45  ;;  %v5795_v46 = vpop.permute.xlu0 %1889  ;;  %3381 = vmatprep.subr.bf16.mxu1 %v1672_v19  ;;  %v6214_v45 = vld [vmem:[#allocation48_spill] sm:$0xff] }
 0x38a   : > { %3328 = vmatprep.subr.bf16.mxu0 %v1630_v36  ;;  %v5800_v21 = vpop.permute.xlu1 %4089  ;;  %v1794_v3 = vsel %vm517_vm6, %v6215_v5, %v6214_v45  ;;  %v1793_v19 = vsel %vm517_vm6, %v4086_v27, %v6215_v5  ;;  %v1984_v36 = vsel %vm612_vm2, %v6217_v7, %v6216_v1  ;;  %v6231_v45 = vld [vmem:[#allocation27_spill] sm:$0xff]  ;;  %v6232_v27 = vld [vmem:[#allocation26_spill] sm:$0xff] }
 0x38b   : > { %3296 = vmatmul.mubr.bf16.vlgmr.msra.gmra.mrb[24].mxu1 %v5565_v60  ;;  %v2153_v5 = vsel %vm722_vm5, %v6231_v45, %v5425_v26 }
 0x38c   : > { %3243 = vmatmul.mubr.bf16.vlgmr.msra.gmra.mrb[24].mxu0 %v5565_v60  ;;  %3382 = vmatpush1.bf16.msra.mxu1 %v1671_v33  ;;  %v6204_v60 = vld [vmem:[#allocation17_spill] sm:$0xff]  ;;  %v6218_v33 = vld [vmem:[#allocation40_spill] sm:$0xff] }
 0x38d   : > { %3329 = vmatpush1.bf16.msra.mxu0 %v1629_v39  ;;  %v5813_v43 = vpop.permute.xlu0 %1859  ;;  %3383 = vmatprep.subr.bf16.mxu1 %v1674_v50  ;;  %v1673_v23 = vsel %vm435_vm3, %v6204_v60, %v6202_v9  ;;  %v1942_v39 = vsel %vm612_vm2, %v6219_v8, %v6218_v33  ;;  %v6220_v50 = vld [vmem:[#allocation21_spill] sm:$0xff]  ;;  %v1715_v33 = vsel %vm435_vm3, %v5760_v55, %v5747_v18 }
 0x38e   : > { %3330 = vmatprep.subr.bf16.mxu0 %v1632_v6  ;;  %v5818_v47 = vpop.permute.xlu1 %1891  ;;  %3961 = vmatprep.mubr.msk.bf16.mxu0 %vm3097_vm8, %v5575_v38  ;;  %v1983_v20 = vsel %vm612_vm2, %v6220_v50, %v6217_v7  ;;  %v6221_v6 = vld [vmem:[#allocation20_spill] sm:$0xff] }
 0x38f   : > { %3963 = vmatprep.mubr.msk.bf16.mxu1 %vm3097_vm8, %v5575_v38  ;;  %v4081_v38 = vunpack.i.l.bf16 %v6208_v59  ;;  %v1941_v60 = vsel %vm612_vm2, %v6221_v6, %v6219_v8  ;;  %v6224_v59 = vld [vmem:[#allocation22_spill] sm:$0xff]  ;;  %v4091_v8 = vunpack.i.l.bf16 %v5800_v21 }
 0x390   : > { %3384 = vmatpush1.bf16.msra.mxu1 %v1673_v23  ;;  %v6222_v23 = vld [vmem:[#allocation51_spill] sm:$0xff]  ;;  %v1943_v2 = vsel %vm612_vm2, %v6224_v59, %v5423_v37  ;;  %v6230_v37 = vld [vmem:[#allocation24_spill] sm:$0xff] }
 0x391   : > { %3331 = vmatpush1.bf16.msra.mxu0 %v1631_v41  ;;  %v5834_v32 = vpop.permute.xlu0 %4094  ;;  %3385 = vmatprep.subr.bf16.mxu1 %v1828_v57  ;;  %v1791_v52 = vsel %vm517_vm6, %v4081_v38, %v6210_v51  ;;  %v1986_v4 = vsel %vm612_vm2, %v6222_v23, %v5513_v16  ;;  %v1985_v57 = vsel %vm612_vm2, %v6223_v0, %v6222_v23  ;;  %v6226_v51 = vld [vmem:[#allocation35_spill] sm:$0xff]  ;;  %v6227_v38 = vld [vmem:[#allocation41_spill] sm:$0xff] }
 0x392   : > { %3332 = vmatprep.subr.bf16.mxu0 %v1792_v14  ;;  %v5840_v35 = vpop.permute.xlu1 %1861  ;;  %v2152_v16 = vsel %vm722_vm5, %v6226_v51, %v6225_v15  ;;  %v4096_v55 = vunpack.i.l.bf16 %v5834_v32 }
 0x393   : > { %3306 = vmatmul.mubr.bf16.gmra.mrb[28].mxu1 %v5610_v48  ;;  %v1866_v6 = vsel %vm517_vm6, %v5813_v43, %v5840_v35 }
 0x394   : > { %3386 = vmatpush1.bf16.msra.mxu1 %v1827_v44  ;;  %3253 = vmatmul.mubr.bf16.gmra.mrb[28].mxu0 %v5610_v48  ;;  %v1829_v48 = vsel %vm517_vm6, %v4087_v63, %v6212_v13  ;;  %v6228_v44 = vld [vmem:[#allocation38_spill] sm:$0xff]  ;;  %v2151_v13 = vsel %vm722_vm5, %v6229_v25, %v6226_v51 }
 0x395   : > { %3333 = vmatpush1.bf16.msra.mxu0 %v1791_v52  ;;  %v5852_v31 = vpop.permute.xlu0 %1897  ;;  %3387 = vmatprep.subr.bf16.mxu1 %v1830_v10  ;;  %v2109_v10 = vsel %vm722_vm5, %v6230_v37, %v6228_v44 }
 0x396   : > { %3334 = vmatprep.subr.bf16.mxu0 %v1794_v3  ;;  %v5858_v28 = vpop.permute.xlu1 %1895  ;;  %3360 = vmatprep.mubr.bf16.mxu0 %v6135_v29  ;;  %v5920_v3 = vld [vmem:[%s6105_s4] ss:$12 sps:$4 sm:$0xff]  }
 0x397   : > { %3413 = vmatprep.mubr.bf16.mxu1 %v6135_v29 }
 0x398   : > { %3388 = vmatpush1.bf16.msra.mxu1 %v1829_v48  ;;  %v2111_v48 = vsel %vm722_vm5, %v6232_v27, %v5431_v56  ;;  %v6233_v56 = vld [vmem:[#allocation28_spill] sm:$0xff] }
 0x399   : > { %3335 = vmatpush1.bf16.msra.mxu0 %v1793_v19  ;;  %v5869_v34 = vpop.permute.xlu0 %2017  ;;  %3389 = vmatprep.subr.bf16.mxu1 %v1984_v36  ;;  %v1755_v19 = vsel %vm435_vm3, %v5721_v53, %v5620_v17  ;;  %v1713_v1 = vsel %vm435_vm3, %v6233_v56, %v5657_v40  ;;  %v1757_v40 = vsel %vm435_vm3, %v5756_v54, %v5742_v22  ;;  %v4092_v53 = vunpack.i.h.bf16 %v5800_v21  ;;  %v5954_v36 = vld [vmem:[%s6105_s4 + $0x18] ss:$12 sps:$4 sm:$0xff]  }
 0x39a   : > { %3336 = vmatprep.subr.bf16.mxu0 %v1942_v39  ;;  %v5874_v9 = vpop.permute.xlu1 %2015  ;;  %v1864_v39 = vsel %vm517_vm6, %v5776_v30, %v5771_v49  ;;  %v1863_v21 = vsel %vm517_vm6, %v4091_v8, %v5776_v30  ;;  %v1902_v49 = vsel %vm517_vm6, %v5858_v28, %v5852_v31  ;;  %v1865_v30 = vsel %vm517_vm6, %v4096_v55, %v5813_v43 }
 0x39c   : > { %3390 = vmatpush1.bf16.msra.mxu1 %v1983_v20  ;;  %v4097_v20 = vunpack.i.h.bf16 %v5834_v32 }
 0x39d   : > { %3337 = vmatpush1.bf16.msra.mxu0 %v1941_v60  ;;  %v5885_v41 = vpop.permute.xlu0 %2057  ;;  %3391 = vmatprep.subr.bf16.mxu1 %v1986_v4  ;;  %v2026_v60 = vsel %vm612_vm2, %v5874_v9, %v5869_v34 }
 0x39e   : > { %3338 = vmatprep.subr.bf16.mxu0 %v5500_v11  ;;  %v5888_v58 = vpop.permute.xlu1 %2013  ;;  %v2110_v11 = vsel %vm722_vm5, %v6228_v44, %v6227_v38  ;;  %v1901_v32 = vsel %vm517_vm6, %v4097_v20, %v5858_v28 }
 0x39f   : > { %v2025_v43 = vsel %vm612_vm2, %v5888_v58, %v5874_v9 }
 0x3a0   : > { %3392 = vmatpush1.bf16.msra.mxu1 %v1985_v57 }
 0x3a1   : > { %3339 = vmatpush1.bf16.msra.mxu0 %v1943_v2  ;;  %v1712_v14 = vpop.permute.xlu0 %1711  ;;  %3393 = vmatprep.subr.bf16.mxu1 %v2152_v16 }
 0x3a2   : > { %3340 = vmatprep.subr.bf16.mxu0 %v2110_v11  ;;  %v5902_v52 = vpop.permute.xlu1 %2059  ;;  %v1716_v7 = vsel %vm435_vm3, %v5747_v18, %v1712_v14  ;;  %v1899_v18 = vsel %vm517_vm6, %v4092_v53, %v5795_v46 }
 0x3a3   : > { %v2068_v31 = vsel %vm612_vm2, %v5885_v41, %v5902_v52 }
 0x3a4   : > { %3394 = vmatpush1.bf16.msra.mxu1 %v2151_v13 }
 0x3a5   : > { %3341 = vmatpush1.bf16.msra.mxu0 %v2109_v10  ;;  %v5910_v24 = vpop.permute.xlu0 %2055  ;;  %3395 = vmatprep.subr.bf16.mxu1 %v5546_v62  ;;  %v1756_v62 = vsel %vm435_vm3, %v5620_v17, %v5725_v42 }
 0x3a6   : > { %3342 = vmatprep.subr.bf16.mxu0 %v5524_v12  ;;  %v1754_v63 = vpop.permute.xlu1 %1753  ;;  %v2067_v28 = vsel %vm612_vm2, %v5910_v24, %v5885_v41 }
 0x3a7   : > { %v1758_v42 = vsel %vm435_vm3, %v5742_v22, %v1754_v63  ;;  %v1900_v22 = vsel %vm517_vm6, %v5795_v46, %v5818_v47 }
 0x3a8   : > { %3396 = vmatpush1.bf16.msra.mxu1 %v2153_v5 }
 0x3a9   : > { %3343 = vmatpush1.bf16.msra.mxu0 %v2111_v48  ;;  %v5928_v12 = vpop.permute.xlu0 %2023  ;;  %3487 = vmatprep.subr.bf16.mxu1 %v1756_v62 }
 0x3aa   : > { %3434 = vmatprep.subr.bf16.mxu0 %v5667_v61  ;;  %v5931_v26 = vpop.permute.xlu1 %2021 }
 0x3ab   : > { %3414 = vmatmul.mubr.bf16.vlgmr.msra.gmra.mrb[16].mxu1 %v5920_v3  ;;  %v2028_v34 = vsel %vm612_vm2, %v5931_v26, %v5928_v12 }
 0x3ac   : > { %3361 = vmatmul.mubr.bf16.vlgmr.msra.gmra.mrb[16].mxu0 %v5920_v3  ;;  %3488 = vmatpush1.bf16.msra.mxu1 %v1755_v19 }
 0x3ad   : > { %3435 = vmatpush1.bf16.msra.mxu0 %v1713_v1  ;;  %v2064_v61 = vpop.permute.xlu0 %2063  ;;  %3489 = vmatprep.subr.bf16.mxu1 %v1758_v42 }
 0x3ae   : > { %3436 = vmatprep.subr.bf16.mxu0 %v1716_v7  ;;  %v2020_v17 = vpop.permute.xlu1 %2019  ;;  %3370 = vmatprep.mubr.bf16.mxu0 %v6135_v29 }
 0x3af   : > { %3423 = vmatprep.mubr.bf16.mxu1 %v6135_v29  ;;  %v2027_v41 = vsel %vm612_vm2, %v2020_v17, %v5931_v26 }
 0x3b0   : > { %3490 = vmatpush1.bf16.msra.mxu1 %v1757_v40 }
 0x3b1   : > { %3437 = vmatpush1.bf16.msra.mxu0 %v1715_v33  ;;  %v2062_v54 = vpop.permute.xlu0 %2061  ;;  %3491 = vmatprep.subr.bf16.mxu1 %v1900_v22 }
 0x3b2   : > { %3438 = vmatprep.subr.bf16.mxu0 %v1864_v39  ;;  %v2066_v50 = vpop.permute.xlu1 %2065  ;;  %v2069_v59 = vsel %vm612_vm2, %v2062_v54, %v2064_v61 }
 0x3b3   : > { %3424 = vmatmul.mubr.bf16.gmra.mrb[20].mxu1 %v5954_v36  ;;  %v2070_v4 = vsel %vm612_vm2, %v2064_v61, %v2066_v50 }
 0x3b4   : > { %3371 = vmatmul.mubr.bf16.gmra.mrb[20].mxu0 %v5954_v36  ;;  %3492 = vmatpush1.bf16.msra.mxu1 %v1899_v18 }
 0x3b5   : > { %3439 = vmatpush1.bf16.msra.mxu0 %v1863_v21  ;;  %v2186_v47 = vpop.permute.xlu0 %2185  ;;  %3493 = vmatprep.subr.bf16.mxu1 %v1902_v49 }
 0x3b6   : > { %v2184_v46 = vpop.permute.xlu1 %2183  ;;  %3440 = vmatprep.subr.bf16.mxu0 %v1866_v6  ;;  %3466 = vmatprep.mubr.bf16.mxu0 %v6135_v29 }
 0x3b7   : > { %3519 = vmatprep.mubr.bf16.mxu1 %v6135_v29  ;;  %v2194_v2 = vsel %vm722_vm5, %v2184_v46, %v2186_v47 }
 0x3b8   : > { %3494 = vmatpush1.bf16.msra.mxu1 %v1901_v32 }
 0x3b9   : > { %3441 = vmatpush1.bf16.msra.mxu0 %v1865_v30  ;;  %v2226_v35 = vpop.permute.xlu0 %2225  ;;  %3495 = vmatprep.subr.bf16.mxu1 %v2068_v31 }
 0x3ba   : > { %v2182_v23 = vpop.permute.xlu1 %2181  ;;  %3442 = vmatprep.subr.bf16.mxu0 %v2026_v60 }
 0x3bb   : > { %v2193_v16 = vsel %vm722_vm5, %v2182_v23, %v2184_v46 }
 0x3bc   : > { %3496 = vmatpush1.bf16.msra.mxu1 %v2067_v28 }
 0x3bd   : > { %3443 = vmatpush1.bf16.msra.mxu0 %v2025_v43  ;;  %v2224_v0 = vpop.permute.xlu0 %2223  ;;  %3497 = vmatprep.subr.bf16.mxu1 %v2070_v4 }
 0x3be   : > { %v2228_v57 = vpop.permute.xlu1 %2227  ;;  %3444 = vmatprep.subr.bf16.mxu0 %v2028_v34  ;;  %v2235_v51 = vsel %vm722_vm5, %v2224_v0, %v2226_v35 }
 0x3bf   : > { %v2236_v9 = vsel %vm722_vm5, %v2226_v35, %v2228_v57 }
 0x3c0   : > { %3498 = vmatpush1.bf16.msra.mxu1 %v2069_v59 }
 0x3c1   : > { %3445 = vmatpush1.bf16.msra.mxu0 %v2027_v41  ;;  %v2192_v58 = vpop.permute.xlu0 %2191  ;;  %3499 = vmatprep.subr.bf16.mxu1 %v2236_v9 }
 0x3c2   : > { %v2190_v15 = vpop.permute.xlu1 %2189  ;;  %3446 = vmatprep.subr.bf16.mxu0 %v2194_v2 }
 0x3c3   : > { %v2196_v38 = vsel %vm722_vm5, %v2190_v15, %v2192_v58 }
 0x3c4   : > { %3500 = vmatpush1.bf16.msra.mxu1 %v2235_v51 }
 0x3c5   : > { %3447 = vmatpush1.bf16.msra.mxu0 %v2193_v16  ;;  %v2232_v14 = vpop.permute.xlu0 %2231 }
 0x3c6   : > { %v2188_v44 = vpop.permute.xlu1 %2187  ;;  %3448 = vmatprep.subr.bf16.mxu0 %v2196_v38 }
 0x3c7   : > { %v2195_v11 = vsel %vm722_vm5, %v2188_v44, %v2190_v15 }
 0x3c9   : > { %3449 = vmatpush1.bf16.msra.mxu0 %v2195_v11  ;;  %v2230_v52 = vpop.permute.xlu0 %2229 }
 0x3ca   : > { %v2237_v25 = vsel %vm722_vm5, %v2230_v52, %v2232_v14  ;;  %v2234_v13 = vpop.permute.xlu1 %2233 }
 0x3cb   : > { %v2238_v37 = vsel %vm722_vm5, %v2232_v14, %v2234_v13 }
 0x3cc   : > { %3467 = vmatmul.mubr.bf16.vlgmr.msra.gmra.mrb[24].mxu0 %v5920_v3  ;;  %3501 = vmatprep.subr.bf16.mxu1 %v2238_v37 }
 0x3cd   : > { %3502 = vmatpush1.bf16.msra.mxu1 %v2237_v25  ;;  %3476 = vmatprep.mubr.bf16.mxu0 %v6135_v29  ;;  %v6048_v25 = vld [vmem:[%s6107_s6] sm:$0x1f]  }
 0x3d0   : > { %3520 = vmatmul.mubr.bf16.vlgmr.msra.gmra.mrb[24].mxu1 %v5920_v3 }
 0x3d1   : > { %3529 = vmatprep.mubr.bf16.mxu1 %v6135_v29 }
 0x3d4   : > { %3477 = vmatmul.mubr.bf16.gmra.mrb[28].mxu0 %v5954_v36 }
 0x3d5   : > { %3694 = vmatprep.mubr.bf16.mxu0 %v6135_v29 }
 0x3d8   : > { %3530 = vmatmul.mubr.bf16.gmra.mrb[28].mxu1 %v5954_v36 }
 0x3d9   : > { %3737 = vmatprep.mubr.bf16.mxu1 %v6135_v29 }
 0x3da   : > { %v6021_v10 = vpop.permute.xlu0 %3547 }
 0x3db   : > { %v6023_v24 = vpop.permute.xlu1 %3542 }
 0x3de   : > { %v6033_v54 = vpop.permute.xlu0 %3557 }
 0x3df   : > { %v6035_v18 = vpop.permute.xlu1 %3552 }
 0x47e   : > { %v3415_v63 = vpop.f32.mrb[16].mxu1 }
 0x47f   : > { %v3362_v45 = vpop.f32.mrb[16].mxu0  ;;  %v3562_v5 = vadd.f32 %v6023_v24, %v3415_v63  ;;  %v3417_v27 = vpop.f32.mrb[17].mxu1 }
 0x480   : > { %v3560_v3 = vadd.f32 %v6023_v24, %v3362_v45  ;;  %v3364_v48 = vpop.f32.mrb[17].mxu0  ;;  %v3563_v62 = vadd.f32 %v6023_v24, %v3417_v27  ;;  %v3419_v12 = vpop.f32.mrb[18].mxu1 }
 0x481   : > { %v3561_v26 = vadd.f32 %v6023_v24, %v3364_v48  ;;  %v3366_v19 = vpop.f32.mrb[18].mxu0  ;;  %v3570_v56 = vadd.f32 %v6021_v10, %v3419_v12  ;;  %v3421_v1 = vpop.f32.mrb[19].mxu1  ;;  %v3594_v17 = vmax.f32 %v3562_v5, 0.0 }
 0x482   : > { %v3568_v42 = vadd.f32 %v6021_v10, %v3366_v19  ;;  %v3368_v61 = vpop.f32.mrb[19].mxu0  ;;  %v3571_v7 = vadd.f32 %v6021_v10, %v3421_v1  ;;  %v3592_v36 = vmax.f32 %v3560_v3, 0.0  ;;  %v3595_v33 = vmax.f32 %v3563_v62, 0.0 }
 0x483   : > { %v3602_v40 = vmax.f32 %v3570_v56, 0.0  ;;  %v3569_v53 = vadd.f32 %v6021_v10, %v3368_v61  ;;  %v3593_v39 = vmax.f32 %v3561_v26, 0.0 }
 0x484   : > { %v3600_v8 = vmax.f32 %v3568_v42, 0.0  ;;  %v3603_v22 = vmax.f32 %v3571_v7, 0.0 }
 0x485   : > { %v3628_v50 = vpack.c.bf16 %v3602_v40, %v3594_v17  ;;  %v3601_v20 = vmax.f32 %v3569_v53, 0.0 }
 0x486   : > { %v3626_v55 = vpack.c.bf16 %v3600_v8, %v3592_v36  ;;  %v3629_v21 = vpack.c.bf16 %v3603_v22, %v3595_v33  ;;  %v3425_v49 = vpop.f32.mrb[20].mxu1 }
 0x487   : > { %v3627_v47 = vpack.c.bf16 %v3601_v20, %v3593_v39  ;;  %v3372_v6 = vpop.f32.mrb[20].mxu0  ;;  %v3578_v46 = vadd.f32 %v6035_v18, %v3425_v49  ;;  %v3427_v32 = vpop.f32.mrb[21].mxu1 }
 0x488   : > { %v3576_v30 = vadd.f32 %v6035_v18, %v3372_v6  ;;  %v3374_v31 = vpop.f32.mrb[21].mxu0  ;;  %v3579_v35 = vadd.f32 %v6035_v18, %v3427_v32  ;;  %v3429_v60 = vpop.f32.mrb[22].mxu1  ;;  %3705 = vmatprep.subr.bf16.mxu1 %v3629_v21 }
 0x489   : > { %v3577_v23 = vadd.f32 %v6035_v18, %v3374_v31  ;;  %v3376_v28 = vpop.f32.mrb[22].mxu0  ;;  %v3586_v43 = vadd.f32 %v6033_v54, %v3429_v60  ;;  %3662 = vmatprep.subr.bf16.mxu0 %v3627_v47  ;;  %v3431_v4 = vpop.f32.mrb[23].mxu1  ;;  %3706 = vmatpush1.bf16.msra.mxu1 %v3628_v50  ;;  %v3610_v59 = vmax.f32 %v3578_v46, 0.0 }
 0x48a   : > { %v3584_v0 = vadd.f32 %v6033_v54, %v3376_v28  ;;  %v3378_v34 = vpop.f32.mrb[23].mxu0  ;;  %v3587_v57 = vadd.f32 %v6033_v54, %v3431_v4  ;;  %3663 = vmatpush1.bf16.msra.mxu0 %v3626_v55  ;;  %v3608_v58 = vmax.f32 %v3576_v30, 0.0  ;;  %v3611_v2 = vmax.f32 %v3579_v35, 0.0 }
 0x48b   : > { %v3618_v41 = vmax.f32 %v3586_v43, 0.0  ;;  %v3585_v9 = vadd.f32 %v6033_v54, %v3378_v34  ;;  %v3609_v16 = vmax.f32 %v3577_v23, 0.0 }
 0x48c   : > { %v3616_v15 = vmax.f32 %v3584_v0, 0.0  ;;  %v3619_v51 = vmax.f32 %v3587_v57, 0.0 }
 0x48d   : > { %v3636_v14 = vpack.c.bf16 %v3618_v41, %v3610_v59  ;;  %v3617_v38 = vmax.f32 %v3585_v9, 0.0 }
 0x48e   : > { %v3634_v44 = vpack.c.bf16 %v3616_v15, %v3608_v58  ;;  %v3637_v11 = vpack.c.bf16 %v3619_v51, %v3611_v2 }
 0x48f   : > { %v3635_v52 = vpack.c.bf16 %v3617_v38, %v3609_v16 }
 0x490   : > { %3707 = vmatprep.subr.bf16.mxu1 %v3637_v11 }
 0x491   : > { %3664 = vmatprep.subr.bf16.mxu0 %v3635_v52  ;;  %3708 = vmatpush1.bf16.msra.mxu1 %v3636_v14  ;;  %v3647_v14 = vpop.permute.xlu1 %3646 }
 0x492   : > { %3665 = vmatpush1.bf16.msra.mxu0 %v3634_v44 }
 0x494   : > { %3968 = vmatmul.mubr.msk.bf16.vlgmr.msra.gmra.mrb[32].mxu1 %vm3097_vm8, %v6048_v25 }
 0x495   : > { %3967 = vmatmul.mubr.msk.bf16.vlgmr.msra.gmra.mrb[32].mxu0 %vm3097_vm8, %v6048_v25  ;;  %3823 = vmatprep.mubr.bf16.mxu1 %v6135_v29 }
 0x496   : > { %3780 = vmatprep.mubr.bf16.mxu0 %v6135_v29 }
 0x49f   : > { %v3468_v13 = vpop.f32.mrb[24].mxu0 }
 0x4a0   : > { %v3564_v37 = vadd.f32 %v6023_v24, %v3468_v13  ;;  %v3470_v63 = vpop.f32.mrb[25].mxu0 }
 0x4a1   : > { %v3565_v45 = vadd.f32 %v6023_v24, %v3470_v63  ;;  %v3472_v5 = vpop.f32.mrb[26].mxu0 }
 0x4a2   : > { %v3572_v27 = vadd.f32 %v6021_v10, %v3472_v5  ;;  %v3474_v3 = vpop.f32.mrb[27].mxu0  ;;  %v3596_v12 = vmax.f32 %v3564_v37, 0.0 }
 0x4a3   : > { %v3573_v48 = vadd.f32 %v6021_v10, %v3474_v3  ;;  %v3521_v62 = vpop.f32.mrb[24].mxu1  ;;  %v3597_v1 = vmax.f32 %v3565_v45, 0.0 }
 0x4a4   : > { %v3604_v26 = vmax.f32 %v3572_v27, 0.0  ;;  %v3566_v19 = vadd.f32 %v6023_v24, %v3521_v62  ;;  %v3523_v56 = vpop.f32.mrb[25].mxu1 }
 0x4a5   : > { %v3605_v29 = vmax.f32 %v3573_v48, 0.0  ;;  %v3567_v42 = vadd.f32 %v6023_v24, %v3523_v56  ;;  %v3525_v61 = vpop.f32.mrb[26].mxu1 }
 0x4a6   : > { %v3630_v7 = vpack.c.bf16 %v3604_v26, %v3596_v12  ;;  %v3574_v17 = vadd.f32 %v6021_v10, %v3525_v61  ;;  %v3527_v40 = vpop.f32.mrb[27].mxu1  ;;  %v3598_v8 = vmax.f32 %v3566_v19, 0.0 }
 0x4a7   : > { %v3631_v53 = vpack.c.bf16 %v3605_v29, %v3597_v1  ;;  %v3575_v36 = vadd.f32 %v6021_v10, %v3527_v40  ;;  %v3478_v33 = vpop.f32.mrb[28].mxu0  ;;  %v3599_v20 = vmax.f32 %v3567_v42, 0.0 }
 0x4a8   : > { %v3606_v22 = vmax.f32 %v3574_v17, 0.0  ;;  %v3580_v39 = vadd.f32 %v6035_v18, %v3478_v33  ;;  %v3480_v50 = vpop.f32.mrb[29].mxu0 }
 0x4a9   : > { %v3607_v55 = vmax.f32 %v3575_v36, 0.0  ;;  %v3581_v21 = vadd.f32 %v6035_v18, %v3480_v50  ;;  %v3482_v49 = vpop.f32.mrb[30].mxu0  ;;  %3748 = vmatprep.subr.bf16.mxu0 %v3631_v53 }
 0x4aa   : > { %v3632_v24 = vpack.c.bf16 %v3606_v22, %v3598_v8  ;;  %v3588_v47 = vadd.f32 %v6033_v54, %v3482_v49  ;;  %v3484_v6 = vpop.f32.mrb[31].mxu0  ;;  %3749 = vmatpush1.bf16.msra.mxu0 %v3630_v7  ;;  %v3612_v30 = vmax.f32 %v3580_v39, 0.0 }
 0x4ab   : > { %v3633_v46 = vpack.c.bf16 %v3607_v55, %v3599_v20  ;;  %v3589_v10 = vadd.f32 %v6033_v54, %v3484_v6  ;;  %v3531_v32 = vpop.f32.mrb[28].mxu1  ;;  %v3613_v23 = vmax.f32 %v3581_v21, 0.0 }
 0x4ac   : > { %v3620_v31 = vmax.f32 %v3588_v47, 0.0  ;;  %v3582_v35 = vadd.f32 %v6035_v18, %v3531_v32  ;;  %v3533_v60 = vpop.f32.mrb[29].mxu1 }
 0x4ad   : > { %v3621_v28 = vmax.f32 %v3589_v10, 0.0  ;;  %v3583_v43 = vadd.f32 %v6035_v18, %v3533_v60  ;;  %v3535_v4 = vpop.f32.mrb[30].mxu1  ;;  %3791 = vmatprep.subr.bf16.mxu1 %v3633_v46  ;;  %v3652_v18 = vpop.permute.xlu0 %3651 }
 0x4ae   : > { %v3638_v0 = vpack.c.bf16 %v3620_v31, %v3612_v30  ;;  %v3590_v34 = vadd.f32 %v6033_v54, %v3535_v4  ;;  %v3537_v57 = vpop.f32.mrb[31].mxu1  ;;  %3792 = vmatpush1.bf16.msra.mxu1 %v3632_v24  ;;  %v3614_v9 = vmax.f32 %v3582_v35, 0.0 }
 0x4af   : > { %v3639_v59 = vpack.c.bf16 %v3621_v28, %v3613_v23  ;;  %v3591_v41 = vadd.f32 %v6033_v54, %v3537_v57  ;;  %v3615_v2 = vmax.f32 %v3583_v43, 0.0 }
 0x4b0   : > { %v3622_v58 = vmax.f32 %v3590_v34, 0.0 }
 0x4b1   : > { %v3623_v15 = vmax.f32 %v3591_v41, 0.0  ;;  %3750 = vmatprep.subr.bf16.mxu0 %v3639_v59 }
 0x4b2   : > { %v3640_v51 = vpack.c.bf16 %v3622_v58, %v3614_v9  ;;  %3751 = vmatpush1.bf16.msra.mxu0 %v3638_v0 }
 0x4b3   : > { %v3641_v16 = vpack.c.bf16 %v3623_v15, %v3615_v2 }
 0x4b5   : > { %3969 = vmatmul.mubr.msk.bf16.vlgmr.msra.gmra.mrb[36].mxu0 %vm3097_vm8, %v6048_v25  ;;  %3793 = vmatprep.subr.bf16.mxu1 %v3641_v16 }
 0x4b6   : > { %3794 = vmatpush1.bf16.msra.mxu1 %v3640_v51 }
 0x4b9   : > { %3970 = vmatmul.mubr.msk.bf16.vlgmr.msra.gmra.mrb[36].mxu1 %vm3097_vm8, %v6048_v25 }
 0x567   : > { %v3739_v54 = vpop.f32.mrb[32].mxu1 }
 0x568   : > { %v3696_v38 = vpop.f32.mrb[32].mxu0  ;;  %v3740_v44 = vadd.f32 %v3739_v54, %v3647_v14  ;;  %v3741_v11 = vpop.f32.mrb[33].mxu1 }
 0x569   : > { %v3697_v52 = vadd.f32 %v3696_v38, %v3647_v14  ;;  %v3698_v13 = vpop.f32.mrb[33].mxu0  ;;  %v3742_v25 = vadd.f32 %v3741_v11, %v3647_v14  ;;  %v3743_v37 = vpop.f32.mrb[34].mxu1 }
 0x56a   : > { %v3699_v63 = vadd.f32 %v3698_v13, %v3647_v14  ;;  %v3700_v45 = vpop.f32.mrb[34].mxu0  ;;  %v3744_v5 = vadd.f32 %v3743_v37, %v3652_v18  ;;  %v3745_v27 = vpop.f32.mrb[35].mxu1  ;;  %3971 = vst [vmem:[%s6080_s12 + $0x20] sm:$0xff] %v3740_v44 }
 0x56b   : > { %3834 = vst [vmem:[%s6080_s12] sm:$0xff] %v3697_v52  ;;  %v3701_v3 = vadd.f32 %v3700_v45, %v3652_v18  ;;  %v3702_v48 = vpop.f32.mrb[35].mxu0  ;;  %v3746_v62 = vadd.f32 %v3745_v27, %v3652_v18  ;;  %3972 = vst [vmem:[%s6080_s12 + $0x28] sm:$0xff] %v3742_v25 }
 0x56c   : > { %3835 = vst [vmem:[%s6080_s12 + $0x8] sm:$0xff] %v3699_v63  ;;  %v3703_v12 = vadd.f32 %v3702_v48, %v3652_v18  ;;  %3973 = vst [vmem:[%s6080_s12 + $0x30] sm:$0x3] %v3744_v5 }
 0x56d   : > { %3836 = vst [vmem:[%s6080_s12 + $0x10] sm:$0x3] %v3701_v3  ;;  %3974 = vst [vmem:[%s6080_s12 + $0x38] sm:$0x3] %v3746_v62 }
 0x56e   : > { %3837 = vst [vmem:[%s6080_s12 + $0x18] sm:$0x3] %v3703_v12 }
 0x588   : > { %v3782_v26 = vpop.f32.mrb[36].mxu0 }
 0x589   : > { %v3783_v19 = vadd.f32 %v3782_v26, %v3647_v14  ;;  %v3784_v56 = vpop.f32.mrb[37].mxu0 }
 0x58a   : > { %v3785_v1 = vadd.f32 %v3784_v56, %v3647_v14  ;;  %v3786_v29 = vpop.f32.mrb[38].mxu0 }
 0x58b   : > { %3975 = vst [vmem:[%s6080_s12 + $0x40] sm:$0xff] %v3783_v19  ;;  %v3787_v42 = vadd.f32 %v3786_v29, %v3652_v18  ;;  %v3788_v61 = vpop.f32.mrb[39].mxu0 }
 0x58c   : > { %3976 = vst [vmem:[%s6080_s12 + $0x48] sm:$0xff] %v3785_v1  ;;  %v3789_v7 = vadd.f32 %v3788_v61, %v3652_v18  ;;  %v3825_v17 = vpop.f32.mrb[36].mxu1 }
 0x58d   : > { %3977 = vst [vmem:[%s6080_s12 + $0x50] sm:$0x3] %v3787_v42  ;;  %v3826_v40 = vadd.f32 %v3825_v17, %v3647_v14  ;;  %v3827_v53 = vpop.f32.mrb[37].mxu1 }
 0x58e   : > { %3978 = vst [vmem:[%s6080_s12 + $0x58] sm:$0x3] %v3789_v7  ;;  %v3828_v36 = vadd.f32 %v3827_v53, %v3647_v14  ;;  %v3829_v33 = vpop.f32.mrb[38].mxu1 }
 0x58f   : > { %3979 = vst [vmem:[%s6080_s12 + $0x60] sm:$0xff] %v3826_v40  ;;  %v3830_v8 = vadd.f32 %v3829_v33, %v3652_v18  ;;  %v3831_v22 = vpop.f32.mrb[39].mxu1 }
 0x590   : > { %3980 = vst [vmem:[%s6080_s12 + $0x68] sm:$0xff] %v3828_v36  ;;  %v3832_v39 = vadd.f32 %v3831_v22, %v3652_v18 }
 0x591   : > { %3981 = vst [vmem:[%s6080_s12 + $0x70] sm:$0x3] %v3830_v8 }
 0x592   : > { %3982 = vst [vmem:[%s6080_s12 + $0x78] sm:$0x3] %v3832_v39 }
 0x593 PF: > { %s18_s27 = sadd.s32 1, %s4135_s27  }
 0x594   : > { %p15_p4 = scmp.ge.s32.totalorder %s18_s27, 4  }
 0x596   :  { %17 = sbr.rel (!%p15_p4) target bundleno = 1 (0x1), region = 88 }

</bundles_post_ra>
